<compile_context>
chip_gen: v5e
topology: v5e:2x2
jax: 0.10.0
libtpu: 0.0.40
codegen_flags: <defaults>
</compile_context>

<pallas_src>
import math

import jax
import jax.numpy as jnp
from jax import lax
from jax.experimental import pallas as pl
from jax.experimental.pallas import tpu as pltpu

BN_EPS = 1e-5          # nn.BatchNorm1d default eps
LANE = 128             # every written channel dim is padded to a multiple of this
MAX_TILE_R = 512       # R-tile size cap: double-buffered (512 x 128) tiles are well
                       # under 1 MiB, fine for v5e/v6e (128 MiB) and v7x (64 MiB) VMEM


def _round_up(n, m):
    return ((n + m - 1) // m) * m


def _cdiv(a, b):
    return (a + b - 1) // b


_VMEM_LIMIT = None


def _vmem_limit_bytes():
    """Per-generation VMEM request: <= 3/4 of capacity, hard-capped at 48 MiB."""
    global _VMEM_LIMIT
    if _VMEM_LIMIT is None:
        cap = 64 * 1024 * 1024
        try:
            cap = int(pltpu.get_tpu_info().vmem_capacity_bytes)
        except Exception:
            pass
        _VMEM_LIMIT = int(min(3 * cap // 4, 48 * 1024 * 1024))
    return _VMEM_LIMIT


# ---------------------------------------------------------------------------
# Fused Linear -> BatchNorm1d(train) -> ReLU [-> Linear] kernel, two-phase BN
# ---------------------------------------------------------------------------
def _make_lbr_kernel(*, n_rows, tile_r, has_global, final_lin):
    inv_r = 1.0 / float(n_rows)
    inv_c0 = 1.0 / float(min(tile_r, n_rows))   # valid rows in tile 0

    def kernel(*refs):
        it = iter(refs)
        x_ref = next(it)
        w_ref = next(it)
        g_ref = next(it)
        bt_ref = next(it)
        if has_global:
            oh_ref = next(it)   # (tile_r, B_pad) f32 one-hot of row -> batch
            gf_ref = next(it)   # (B_pad, Ce_pad) bf16 per-cloud global features
            wg_ref = next(it)   # (Ce_pad, Cmid_pad) bf16 split weight
        if final_lin:
            wf_ref = next(it)   # (Cmid_pad, Cout_pad) bf16 fused final Linear
            bf_ref = next(it)   # (1, Cout_pad) f32
        o_ref = next(it)
        c_sc = next(it)         # (1, Cmid_pad) shifted-mean anchor
        s1_sc = next(it)        # (1, Cmid_pad) sum(y - c)      -> reused as scale
        s2_sc = next(it)        # (1, Cmid_pad) sum((y - c)^2)  -> reused as shift
        if has_global:
            gterm_sc = next(it)  # (B_pad, Cmid_pad) gf @ Wg, computed once

        p = pl.program_id(0)     # phase: 0 = stats, 1 = normalize
        r = pl.program_id(1)     # R tile
        first = jnp.logical_and(p == 0, r == 0)

        # Linear: bf16 operands, f32 MXU accumulation.  The nn.Linear bias of a
        # BN'd layer is intentionally omitted (it cancels under mean subtraction).
        y = jnp.dot(x_ref[...], w_ref[...], preferred_element_type=jnp.float32)

        if has_global:
            @pl.when(first)
            def _():
                gterm_sc[...] = jnp.dot(gf_ref[...], wg_ref[...],
                                        preferred_element_type=jnp.float32)
            # broadcast the per-cloud term to rows via a tiny one-hot matmul
            y = y + jnp.dot(oh_ref[...], gterm_sc[...],
                            preferred_element_type=jnp.float32)

        rows = r * tile_r + lax.broadcasted_iota(jnp.int32, (tile_r, 1), 0)
        valid = rows < n_rows                       # mask zero-padded rows

        # ---------------- phase 0: shifted one-pass batch statistics ----------
        @pl.when(first)
        def _():
            c_sc[...] = jnp.sum(jnp.where(valid, y, 0.0),
                                axis=0, keepdims=True) * inv_c0
            s1_sc[...] = jnp.zeros_like(s1_sc)
            s2_sc[...] = jnp.zeros_like(s2_sc)

        @pl.when(p == 0)
        def _():
            d = jnp.where(valid, y - c_sc[...], 0.0)
            s1_sc[...] = s1_sc[...] + jnp.sum(d, axis=0, keepdims=True)
            s2_sc[...] = s2_sc[...] + jnp.sum(d * d, axis=0, keepdims=True)

        # ---------------- phase 1: fold BN into one per-channel FMA ----------
        @pl.when(jnp.logical_and(p == 1, r == 0))
        def _():
            m1 = s1_sc[...] * inv_r
            mean = c_sc[...] + m1
            var = jnp.maximum(s2_sc[...] * inv_r - m1 * m1, 0.0)
            scale = g_ref[...] * lax.rsqrt(var + BN_EPS)
            s1_sc[...] = scale                       # reuse scratch: scale
            s2_sc[...] = bt_ref[...] - mean * scale  # reuse scratch: shift

        @pl.when(p == 1)
        def _():
            h = jnp.maximum(y * s1_sc[...] + s2_sc[...], 0.0)
            if final_lin:
                o = jnp.dot(h.astype(jnp.bfloat16), wf_ref[...],
                            preferred_element_type=jnp.float32) + bf_ref[...]
            else:
                o = h
            o_ref[...] = o.astype(o_ref.dtype)

    return kernel


def _lbr_call(h, call, *, n_rows, tile_r, onehot=None, gf=None,
              out_dtype=jnp.bfloat16):
    """One fused Linear/BN/ReLU(/Linear) block over an R-tiled (2, n_tiles) grid."""
    r_pad, cin_pad = h.shape
    assert cin_pad == call["cin_pad"]
    n_tiles = r_pad // tile_r
    has_global = call["wg"] is not None
    final_lin = call["wf"] is not None
    mid_pad = call["mid_pad"]
    out_pad = call["out_pad"]

    kernel = _make_lbr_kernel(n_rows=n_rows, tile_r=tile_r,
                              has_global=has_global, final_lin=final_lin)

    args = [h, call["w"], call["gamma"], call["beta"]]
    in_specs = [
        pl.BlockSpec((tile_r, cin_pad), lambda p, r: (r, 0)),
        # NOTE: constant index maps keep params resident; they are small enough
        # that skipping double-buffering (pl.Buffered(1)) is not worth the risk.
        pl.BlockSpec(call["w"].shape, lambda p, r: (0, 0)),
        pl.BlockSpec(call["gamma"].shape, lambda p, r: (0, 0)),
        pl.BlockSpec(call["beta"].shape, lambda p, r: (0, 0)),
    ]
    if has_global:
        b_pad = gf.shape[0]
        args += [onehot, gf, call["wg"]]
        in_specs += [pl.BlockSpec((tile_r, b_pad), lambda p, r: (r, 0)),
                     pl.BlockSpec(gf.shape, lambda p, r: (0, 0)),
                     pl.BlockSpec(call["wg"].shape, lambda p, r: (0, 0))]
    if final_lin:
        args += [call["wf"], call["bf"]]
        in_specs += [pl.BlockSpec(call["wf"].shape, lambda p, r: (0, 0)),
                     pl.BlockSpec(call["bf"].shape, lambda p, r: (0, 0))]

    scratch = [pltpu.VMEM((1, mid_pad), jnp.float32) for _ in range(3)]
    if has_global:
        scratch.append(pltpu.VMEM((gf.shape[0], mid_pad), jnp.float32))

    flops = 2 * 2 * r_pad * cin_pad * mid_pad          # both phases recompute x@W
    if has_global:
        flops += 2 * (gf.shape[0] * gf.shape[1] * mid_pad
                      + 2 * r_pad * gf.shape[0] * mid_pad)
    if final_lin:
        flops += 2 * r_pad * mid_pad * out_pad
    bytes_in = sum(int(a.size) * a.dtype.itemsize for a in args)
    bytes_out = r_pad * out_pad * jnp.dtype(out_dtype).itemsize
    bytes_accessed = int(bytes_in + int(h.size) * h.dtype.itemsize + bytes_out)

    out = pl.pallas_call(
        kernel,
        out_shape=jax.ShapeDtypeStruct((r_pad, out_pad), out_dtype),
        grid=(2, n_tiles),
        in_specs=in_specs,
        # Phase 0 never writes the output; routing phase-0 steps to block (0, 0)
        # means every output HBM block is written exactly once (on its phase-1
        # visit) -- no garbage writebacks, no revisit ordering hazard.
        out_specs=pl.BlockSpec((tile_r, out_pad), lambda p, r: (p * r, 0)),
        scratch_shapes=scratch,
        compiler_params=pltpu.CompilerParams(
            # Both axes carry the BN-stats scratch state, so both stay serial.
            # TODO(synk): split stats/normalize into two pallas_calls so the
            # normalize phase's R axis can be "parallel" across v7x's two TCs.
            dimension_semantics=("arbitrary", "arbitrary"),
            vmem_limit_bytes=_vmem_limit_bytes(),
        ),
        cost_estimate=pl.CostEstimate(flops=int(flops),
                                      transcendentals=int(mid_pad),
                                      bytes_accessed=bytes_accessed),
    )(*args)
    return out


# ---------------------------------------------------------------------------
# Parameter init (mirrors nn.Linear / nn.BatchNorm1d defaults) + packing
# ---------------------------------------------------------------------------
def init_encoder_params(key, cs, linear_out=None):
    raw = []
    for i in range(1, len(cs)):
        key, k1, k2 = jax.random.split(key, 3)
        bound = 1.0 / math.sqrt(cs[i - 1])
        w = jax.random.uniform(k1, (cs[i - 1], cs[i]), jnp.float32, -bound, bound)
        b = jax.random.uniform(k2, (cs[i],), jnp.float32, -bound, bound)
        raw.append(("lbr", w, b,
                    jnp.ones((cs[i],), jnp.float32),
                    jnp.zeros((cs[i],), jnp.float32)))
    if linear_out is not None:
        key, k1, k2 = jax.random.split(key, 3)
        bound = 1.0 / math.sqrt(cs[-1])
        w = jax.random.uniform(k1, (cs[-1], linear_out), jnp.float32, -bound, bound)
        b = jax.random.uniform(k2, (linear_out,), jnp.float32, -bound, bound)
        raw.append(("lin", w, b))
    return raw, key


def pack_stack(raw, *, first_in_pad, split_first=None):
    """Pad channel dims to 128 lanes, cast weights bf16, fuse a trailing Linear
    into the last BN block, optionally split the first weight for the fused
    global-feature path.  gamma/beta are ZERO-padded (keeps padded lanes at 0)."""
    lbrs = [p for p in raw if p[0] == "lbr"]
    fin = raw[-1] if raw[-1][0] == "lin" else None
    assert lbrs, "stack must contain at least one Linear+BN+ReLU block"
    calls = []
    prev_pad = first_in_pad
    for i, (_, w, b, g, bt) in enumerate(lbrs):
        cin, cout = w.shape
        mid_pad = _round_up(cout, LANE)
        wg = None
        if i == 0 and split_first is not None:
            ce = split_first
            assert cin == 2 * ce
            w_p = (jnp.zeros((prev_pad, mid_pad), jnp.float32)
                   .at[:ce, :cout].set(w[:ce]).astype(jnp.bfloat16))
            wg = (jnp.zeros((prev_pad, mid_pad), jnp.float32)
                  .at[:ce, :cout].set(w[ce:]).astype(jnp.bfloat16))
        else:
            assert cin <= prev_pad
            w_p = (jnp.zeros((prev_pad, mid_pad), jnp.float32)
                   .at[:cin, :cout].set(w).astype(jnp.bfloat16))
        # nn.Linear bias `b` is dropped: it cancels exactly under BatchNorm.
        g_p = jnp.zeros((1, mid_pad), jnp.float32).at[0, :cout].set(g)
        bt_p = jnp.zeros((1, mid_pad), jnp.float32).at[0, :cout].set(bt)
        call = dict(w=w_p, gamma=g_p, beta=bt_p, wg=wg, wf=None, bf=None,
                    cin_pad=prev_pad, mid_pad=mid_pad, out_pad=mid_pad, cout=cout)
        if i == len(lbrs) - 1 and fin is not None:
            _, wf, bfin = fin
            lin_in, lin_out = wf.shape
            out_pad = _round_up(lin_out, LANE)
            call["wf"] = (jnp.zeros((mid_pad, out_pad), jnp.float32)
                          .at[:lin_in, :lin_out].set(wf).astype(jnp.bfloat16))
            call["bf"] = jnp.zeros((1, out_pad), jnp.float32).at[0, :lin_out].set(bfin)
            call["out_pad"] = out_pad
            call["cout"] = lin_out
        calls.append(call)
        prev_pad = mid_pad
    return calls


def build_params(key, cs_en, cs_dec, cs_t_en, cs_t_dec, num_classes=20):
    raw = {}
    raw["t_enc"], key = init_encoder_params(key, cs_t_en)
    raw["t_dec"], key = init_encoder_params(key, cs_t_dec, linear_out=9)
    raw["enc"], key = init_encoder_params(key, cs_en)
    raw["dec"], key = init_encoder_params(key, cs_dec, linear_out=num_classes)
    packed = {
        "t_enc": pack_stack(raw["t_enc"], first_in_pad=cs_t_en[0]),
        "t_dec": pack_stack(raw["t_dec"], first_in_pad=_round_up(cs_t_dec[0], LANE)),
        "enc": pack_stack(raw["enc"], first_in_pad=cs_en[0]),
        "dec": pack_stack(raw["dec"], first_in_pad=_round_up(cs_en[-1], LANE),
                          split_first=cs_en[-1]),
    }
    return raw, packed


# ---------------------------------------------------------------------------
# Stack runner + full forward pass (matches PointNetFull.forward)
# ---------------------------------------------------------------------------
def run_stack(x2d, calls, *, gf=None, rows_per_batch=None, out_dtype=jnp.float32):
    """Run one PointNetEncoder stack.  x2d: (R, Cin) unpadded.  Returns (R, Cout)."""
    R, cin = x2d.shape
    n_tiles = _cdiv(R, MAX_TILE_R)
    tile_r = _round_up(_cdiv(R, n_tiles), 8)
    r_pad = tile_r * n_tiles
    cin_pad = calls[0]["cin_pad"]
    h = (jnp.zeros((r_pad, cin_pad), jnp.bfloat16)
         .at[:R, :cin].set(x2d.astype(jnp.bfloat16)))

    onehot = None
    gf_pad = None
    if gf is not None:
        b = gf.shape[0]
        b_pad = _round_up(b, 8)
        ce_pad = calls[0]["cin_pad"]
        gf_pad = (jnp.zeros((b_pad, ce_pad), jnp.bfloat16)
                  .at[:b, :gf.shape[1]].set(gf.astype(jnp.bfloat16)))
        onehot = ((jnp.arange(r_pad)[:, None] // rows_per_batch)
                  == jnp.arange(b_pad)[None, :]).astype(jnp.float32)

    for i, call in enumerate(calls):
        last = i == len(calls) - 1
        use_g = call["wg"] is not None
        h = _lbr_call(h, call, n_rows=R, tile_r=tile_r,
                      onehot=onehot if use_g else None,
                      gf=gf_pad if use_g else None,
                      out_dtype=(out_dtype if last else jnp.bfloat16))
    return h[:R, :calls[-1]["cout"]]


def pointnet_full_apply(x, packed):
    B, N, C = x.shape
    R = B * N
    # ---- T-Net ------------------------------------------------------------
    tfeat = run_stack(x.reshape(R, C), packed["t_enc"], out_dtype=jnp.bfloat16)
    # TODO(synk): fuse this per-cloud max-pool into the last t_enc kernel epilogue.
    gt = jnp.max(tfeat.reshape(B, N, -1), axis=1)                       # (B, Ct)
    t9 = run_stack(gt, packed["t_dec"], out_dtype=jnp.float32)          # (B, 9)
    trans = t9.reshape(B, 3, 3) + jnp.eye(3, dtype=jnp.float32)[None]
    # bmm(point_trans, x^T)^T == einsum; kept in JAX (R x 3, negligible).
    # TODO(synk): fold the per-batch 3x3 transform into the first enc weight
    # (precompute T^T @ W1 per batch) to drop this extra R x 3 sweep.
    xt = jnp.einsum("bij,bnj->bni", trans, x.astype(jnp.float32))
    # ---- joint encoder / decoder ------------------------------------------
    pf = run_stack(xt.reshape(R, C), packed["enc"], out_dtype=jnp.bfloat16)
    gfeat = jnp.max(pf.reshape(B, N, -1), axis=1)                       # (B, Ce)
    # joint_feats = concat([pf, broadcast(gfeat)]) is never materialized: the
    # first decoder weight is split and the global term is added in-kernel.
    out = run_stack(pf, packed["dec"], gf=gfeat, rows_per_batch=N,
                    out_dtype=jnp.float32)                              # (R, classes)
    return out.reshape(B, N, -1)


# ---------------------------------------------------------------------------
# Pure-JAX reference (module semantics; mirrors the kernel's precision policy:
# bf16 matmul operands / bf16 inter-layer activations, f32 BN math)
# ---------------------------------------------------------------------------
def ref_encoder(h, raw_layers):
    for p in raw_layers:
        if p[0] == "lbr":
            _, w, b, g, bt = p
            y = jnp.dot(h.astype(jnp.bfloat16), w.astype(jnp.bfloat16),
                        preferred_element_type=jnp.float32) + b
            mean = jnp.mean(y, axis=0, keepdims=True)
            var = jnp.mean(jnp.square(y - mean), axis=0, keepdims=True)
            h = jnp.maximum(g * (y - mean) * lax.rsqrt(var + BN_EPS) + bt, 0.0)
            h = h.astype(jnp.bfloat16)
        else:
            _, w, b = p
            h = jnp.dot(h.astype(jnp.bfloat16), w.astype(jnp.bfloat16),
                        preferred_element_type=jnp.float32) + b
    return h


def ref_full(x, raw):
    B, N, C = x.shape
    t = ref_encoder(x.reshape(B * N, C), raw["t_enc"]).reshape(B, N, -1)
    gt = jnp.max(t, axis=1)
    t9 = ref_encoder(gt, raw["t_dec"])
    trans = t9.reshape(B, 3, 3).astype(jnp.float32) + jnp.eye(3, dtype=jnp.float32)[None]
    xt = jnp.einsum("bij,bnj->bni", trans, x)
    pf = ref_encoder(xt.reshape(B * N, C), raw["enc"]).reshape(B, N, -1)
    gf = jnp.max(pf, axis=1, keepdims=True)
    joint = jnp.concatenate([pf, jnp.broadcast_to(gf, pf.shape)], axis=2)
    return ref_encoder(joint.reshape(B * N, -1), raw["dec"]).reshape(B, N, -1)


# ---------------------------------------------------------------------------
if __name__ == "__main__":
    key = jax.random.PRNGKey(0)
    k_x, k_p = jax.random.split(key)

    # Small deterministic demo shapes consistent with PointNetFull.
    B, N = 2, 8
    cs_t_en = [3, 32, 64]
    cs_t_dec = [64, 32, 16]           # + linear_out=9 -> 3x3 transform
    cs_en = [3, 32, 64]
    cs_dec = [2 * cs_en[-1], 64, 32]  # + linear_out=num_classes
    num_classes = 20

    x = jax.random.normal(k_x, (B, N, 3), dtype=jnp.float32)
    raw, packed = build_params(k_p, cs_en, cs_dec, cs_t_en, cs_t_dec, num_classes)

    fwd = jax.jit(lambda pts: pointnet_full_apply(pts, packed))
    out = jax.block_until_ready(fwd(x))

    ref = ref_full(x, raw)
    assert out.shape == (B, N, num_classes), out.shape
    err = float(jnp.max(jnp.abs(out - ref.astype(jnp.float32))))
    assert err < 2e-2, f"mismatch vs reference, max abs err = {err}"

    print("KERNEL_OK")
</pallas_src>

<mosaic_0001>
module attributes {stable_mosaic.version = 11 : i64} {
  func.func @kernel(%arg0: i32, %arg1: i32, %arg2: memref<16x128xbf16, #tpu.memory_space<vmem>>, %arg3: memref<128x128xbf16, #tpu.memory_space<vmem>>, %arg4: memref<1x128xf32, #tpu.memory_space<vmem>>, %arg5: memref<1x128xf32, #tpu.memory_space<vmem>>, %arg6: memref<16x128xbf16, #tpu.memory_space<vmem>>, %arg7: memref<1x128xf32, #tpu.memory_space<vmem>>, %arg8: memref<1x128xf32, #tpu.memory_space<vmem>>, %arg9: memref<1x128xf32, #tpu.memory_space<vmem>>) attributes {dimension_semantics = [#tpu.dimension_semantics<arbitrary>, #tpu.dimension_semantics<arbitrary>], iteration_bounds = array<i64: 2, 1>, scalar_prefetch = 0 : i64, scratch_operands = 3 : i64, tpu.core_type = #tpu.core_type<tc>, window_params = [{transform_indices = @transform_0, window_bounds = array<i64: 16, 128>}, {pipeline_mode = #tpu.pipeline_mode<synchronous>, transform_indices = @transform_1, window_bounds = array<i64: 128, 128>}, {pipeline_mode = #tpu.pipeline_mode<synchronous>, transform_indices = @transform_2, window_bounds = array<i64: 1, 128>}, {pipeline_mode = #tpu.pipeline_mode<synchronous>, transform_indices = @transform_3, window_bounds = array<i64: 1, 128>}, {transform_indices = @transform_4, window_bounds = array<i64: 16, 128>}]} {
    %c0_i32 = arith.constant 0 : i32
    %0 = arith.cmpi eq, %arg0, %c0_i32 : i32
    %c0_i32_0 = arith.constant 0 : i32
    %1 = arith.cmpi eq, %arg1, %c0_i32_0 : i32
    %2 = arith.andi %0, %1 : i1
    %c0 = arith.constant 0 : index
    %c0_1 = arith.constant 0 : index
    %3 = vector.load %arg2[%c0, %c0_1] : memref<16x128xbf16, #tpu.memory_space<vmem>>, vector<16x128xbf16>
    %c0_2 = arith.constant 0 : index
    %c0_3 = arith.constant 0 : index
    %4 = vector.load %arg3[%c0_2, %c0_3] : memref<128x128xbf16, #tpu.memory_space<vmem>>, vector<128x128xbf16>
    %cst = arith.constant dense<0.000000e+00> : vector<16x128xf32>
    %5 = tpu.matmul %3, %4, %cst {dimension_numbers = #tpu.dot_dimension_numbers<[1], [0], [0], [1], [0, 0, 1, 1], [], []>} : vector<16x128xbf16>, vector<128x128xbf16>, vector<16x128xf32> -> vector<16x128xf32>
    %c16_i32 = arith.constant 16 : i32
    %6 = arith.muli %arg1, %c16_i32 : i32
    %7 = tpu.iota {dimensions = array<i32: 0>} : vector<16x1xi32>
    %8 = vector.broadcast %6 : i32 to vector<16x1xi32>
    %9 = arith.addi %8, %7 : vector<16x1xi32>
    %c16_i32_4 = arith.constant 16 : i32
    %10 = vector.broadcast %c16_i32_4 : i32 to vector<16x1xi32>
    %11 = arith.cmpi slt, %9, %10 : vector<16x1xi32>
    %12 = arith.extui %2 : i1 to i32
    %c0_i32_5 = arith.constant 0 : i32
    %13 = arith.cmpi ne, %12, %c0_i32_5 : i32
    scf.if %13 {
      %cst_12 = arith.constant 0.000000e+00 : f32
      %25 = vector.shape_cast %11 : vector<16x1xi1> to vector<16x1xi1>
      %26 = vector.broadcast %25 : vector<16x1xi1> to vector<16x128xi1>
      %27 = vector.broadcast %cst_12 : f32 to vector<16x128xf32>
      %28 = arith.select %26, %5, %27 : vector<16x128xi1>, vector<16x128xf32>
      %cst_13 = arith.constant dense<0.000000e+00> : vector<128xf32>
      %29 = vector.multi_reduction <add>, %28, %cst_13 [0] : vector<16x128xf32> to vector<128xf32>
      %30 = vector.shape_cast %29 : vector<128xf32> to vector<1x128xf32>
      %cst_14 = arith.constant 6.250000e-02 : f32
      %31 = vector.broadcast %cst_14 : f32 to vector<1x128xf32>
      %32 = arith.mulf %30, %31 : vector<1x128xf32>
      %c0_15 = arith.constant 0 : index
      %c0_16 = arith.constant 0 : index
      %33 = vector.load %arg7[%c0_15, %c0_16] : memref<1x128xf32, #tpu.memory_space<vmem>>, vector<1x128xf32>
      tpu.vector_store %arg7[%c0_15, %c0_16], %32 {strides = array<i32>} : memref<1x128xf32, #tpu.memory_space<vmem>>, vector<1x128xf32>,
      %cst_17 = arith.constant 0.000000e+00 : f32
      %34 = vector.broadcast %cst_17 : f32 to vector<1x128xf32>
      %c0_18 = arith.constant 0 : index
      %c0_19 = arith.constant 0 : index
      %35 = vector.load %arg8[%c0_18, %c0_19] : memref<1x128xf32, #tpu.memory_space<vmem>>, vector<1x128xf32>
      tpu.vector_store %arg8[%c0_18, %c0_19], %34 {strides = array<i32>} : memref<1x128xf32, #tpu.memory_space<vmem>>, vector<1x128xf32>,
      %cst_20 = arith.constant 0.000000e+00 : f32
      %36 = vector.broadcast %cst_20 : f32 to vector<1x128xf32>
      %c0_21 = arith.constant 0 : index
      %c0_22 = arith.constant 0 : index
      %37 = vector.load %arg9[%c0_21, %c0_22] : memref<1x128xf32, #tpu.memory_space<vmem>>, vector<1x128xf32>
      tpu.vector_store %arg9[%c0_21, %c0_22], %36 {strides = array<i32>} : memref<1x128xf32, #tpu.memory_space<vmem>>, vector<1x128xf32>,
    } else {
    }
    %c0_i32_6 = arith.constant 0 : i32
    %14 = arith.cmpi eq, %arg0, %c0_i32_6 : i32
    %15 = arith.extui %14 : i1 to i32
    %c0_i32_7 = arith.constant 0 : i32
    %16 = arith.cmpi ne, %15, %c0_i32_7 : i32
    scf.if %16 {
      %c0_12 = arith.constant 0 : index
      %c0_13 = arith.constant 0 : index
      %25 = vector.load %arg7[%c0_12, %c0_13] : memref<1x128xf32, #tpu.memory_space<vmem>>, vector<1x128xf32>
      %26 = vector.broadcast %25 : vector<1x128xf32> to vector<16x128xf32>
      %27 = arith.subf %5, %26 : vector<16x128xf32>
      %cst_14 = arith.constant 0.000000e+00 : f32
      %28 = vector.shape_cast %11 : vector<16x1xi1> to vector<16x1xi1>
      %29 = vector.broadcast %28 : vector<16x1xi1> to vector<16x128xi1>
      %30 = vector.broadcast %cst_14 : f32 to vector<16x128xf32>
      %31 = arith.select %29, %27, %30 : vector<16x128xi1>, vector<16x128xf32>
      %c0_15 = arith.constant 0 : index
      %c0_16 = arith.constant 0 : index
      %32 = vector.load %arg8[%c0_15, %c0_16] : memref<1x128xf32, #tpu.memory_space<vmem>>, vector<1x128xf32>
      %cst_17 = arith.constant dense<0.000000e+00> : vector<128xf32>
      %33 = vector.multi_reduction <add>, %31, %cst_17 [0] : vector<16x128xf32> to vector<128xf32>
      %34 = vector.shape_cast %33 : vector<128xf32> to vector<1x128xf32>
      %35 = arith.addf %32, %34 : vector<1x128xf32>
      %c0_18 = arith.constant 0 : index
      %c0_19 = arith.constant 0 : index
      %36 = vector.load %arg8[%c0_18, %c0_19] : memref<1x128xf32, #tpu.memory_space<vmem>>, vector<1x128xf32>
      tpu.vector_store %arg8[%c0_18, %c0_19], %35 {strides = array<i32>} : memref<1x128xf32, #tpu.memory_space<vmem>>, vector<1x128xf32>,
      %c0_20 = arith.constant 0 : index
      %c0_21 = arith.constant 0 : index
      %37 = vector.load %arg9[%c0_20, %c0_21] : memref<1x128xf32, #tpu.memory_space<vmem>>, vector<1x128xf32>
      %38 = arith.mulf %31, %31 : vector<16x128xf32>
      %cst_22 = arith.constant dense<0.000000e+00> : vector<128xf32>
      %39 = vector.multi_reduction <add>, %38, %cst_22 [0] : vector<16x128xf32> to vector<128xf32>
      %40 = vector.shape_cast %39 : vector<128xf32> to vector<1x128xf32>
      %41 = arith.addf %37, %40 : vector<1x128xf32>
      %c0_23 = arith.constant 0 : index
      %c0_24 = arith.constant 0 : index
      %42 = vector.load %arg9[%c0_23, %c0_24] : memref<1x128xf32, #tpu.memory_space<vmem>>, vector<1x128xf32>
      tpu.vector_store %arg9[%c0_23, %c0_24], %41 {strides = array<i32>} : memref<1x128xf32, #tpu.memory_space<vmem>>, vector<1x128xf32>,
    } else {
    }
    %c1_i32 = arith.constant 1 : i32
    %17 = arith.cmpi eq, %arg0, %c1_i32 : i32
    %c0_i32_8 = arith.constant 0 : i32
    %18 = arith.cmpi eq, %arg1, %c0_i32_8 : i32
    %19 = arith.andi %17, %18 : i1
    %20 = arith.extui %19 : i1 to i32
    %c0_i32_9 = arith.constant 0 : i32
    %21 = arith.cmpi ne, %20, %c0_i32_9 : i32
    scf.if %21 {
      %c0_12 = arith.constant 0 : index
      %c0_13 = arith.constant 0 : index
      %25 = vector.load %arg8[%c0_12, %c0_13] : memref<1x128xf32, #tpu.memory_space<vmem>>, vector<1x128xf32>
      %cst_14 = arith.constant 6.250000e-02 : f32
      %26 = vector.broadcast %cst_14 : f32 to vector<1x128xf32>
      %27 = arith.mulf %25, %26 : vector<1x128xf32>
      %c0_15 = arith.constant 0 : index
      %c0_16 = arith.constant 0 : index
      %28 = vector.load %arg7[%c0_15, %c0_16] : memref<1x128xf32, #tpu.memory_space<vmem>>, vector<1x128xf32>
      %29 = arith.addf %28, %27 : vector<1x128xf32>
      %c0_17 = arith.constant 0 : index
      %c0_18 = arith.constant 0 : index
      %30 = vector.load %arg9[%c0_17, %c0_18] : memref<1x128xf32, #tpu.memory_space<vmem>>, vector<1x128xf32>
      %cst_19 = arith.constant 6.250000e-02 : f32
      %31 = vector.broadcast %cst_19 : f32 to vector<1x128xf32>
      %32 = arith.mulf %30, %31 : vector<1x128xf32>
      %33 = arith.mulf %27, %27 : vector<1x128xf32>
      %34 = arith.subf %32, %33 : vector<1x128xf32>
      %cst_20 = arith.constant 0.000000e+00 : f32
      %35 = vector.broadcast %cst_20 : f32 to vector<1x128xf32>
      %36 = arith.maximumf %34, %35 : vector<1x128xf32>
      %c0_21 = arith.constant 0 : index
      %c0_22 = arith.constant 0 : index
      %37 = vector.load %arg4[%c0_21, %c0_22] : memref<1x128xf32, #tpu.memory_space<vmem>>, vector<1x128xf32>
      %cst_23 = arith.constant 9.99999974E-6 : f32
      %38 = vector.broadcast %cst_23 : f32 to vector<1x128xf32>
      %39 = arith.addf %36, %38 : vector<1x128xf32>
      %40 = math.rsqrt %39 : vector<1x128xf32>
      %41 = arith.mulf %37, %40 : vector<1x128xf32>
      %c0_24 = arith.constant 0 : index
      %c0_25 = arith.constant 0 : index
      %42 = vector.load %arg8[%c0_24, %c0_25] : memref<1x128xf32, #tpu.memory_space<vmem>>, vector<1x128xf32>
      tpu.vector_store %arg8[%c0_24, %c0_25], %41 {strides = array<i32>} : memref<1x128xf32, #tpu.memory_space<vmem>>, vector<1x128xf32>,
      %c0_26 = arith.constant 0 : index
      %c0_27 = arith.constant 0 : index
      %43 = vector.load %arg5[%c0_26, %c0_27] : memref<1x128xf32, #tpu.memory_space<vmem>>, vector<1x128xf32>
      %44 = arith.mulf %29, %41 : vector<1x128xf32>
      %45 = arith.subf %43, %44 : vector<1x128xf32>
      %c0_28 = arith.constant 0 : index
      %c0_29 = arith.constant 0 : index
      %46 = vector.load %arg9[%c0_28, %c0_29] : memref<1x128xf32, #tpu.memory_space<vmem>>, vector<1x128xf32>
      tpu.vector_store %arg9[%c0_28, %c0_29], %45 {strides = array<i32>} : memref<1x128xf32, #tpu.memory_space<vmem>>, vector<1x128xf32>,
    } else {
    }
    %c1_i32_10 = arith.constant 1 : i32
    %22 = arith.cmpi eq, %arg0, %c1_i32_10 : i32
    %23 = arith.extui %22 : i1 to i32
    %c0_i32_11 = arith.constant 0 : i32
    %24 = arith.cmpi ne, %23, %c0_i32_11 : i32
    scf.if %24 {
      %c0_12 = arith.constant 0 : index
      %c0_13 = arith.constant 0 : index
      %25 = vector.load %arg8[%c0_12, %c0_13] : memref<1x128xf32, #tpu.memory_space<vmem>>, vector<1x128xf32>
      %26 = vector.broadcast %25 : vector<1x128xf32> to vector<16x128xf32>
      %27 = arith.mulf %5, %26 : vector<16x128xf32>
      %c0_14 = arith.constant 0 : index
      %c0_15 = arith.constant 0 : index
      %28 = vector.load %arg9[%c0_14, %c0_15] : memref<1x128xf32, #tpu.memory_space<vmem>>, vector<1x128xf32>
      %29 = vector.broadcast %28 : vector<1x128xf32> to vector<16x128xf32>
      %30 = arith.addf %27, %29 : vector<16x128xf32>
      %cst_16 = arith.constant 0.000000e+00 : f32
      %31 = vector.broadcast %cst_16 : f32 to vector<16x128xf32>
      %32 = arith.maximumf %30, %31 : vector<16x128xf32>
      %33 = arith.truncf %32 : vector<16x128xf32> to vector<16x128xbf16>
      %c0_17 = arith.constant 0 : index
      %c0_18 = arith.constant 0 : index
      %34 = vector.load %arg6[%c0_17, %c0_18] : memref<16x128xbf16, #tpu.memory_space<vmem>>, vector<16x128xbf16>
      tpu.vector_store %arg6[%c0_17, %c0_18], %33 {strides = array<i32>} : memref<16x128xbf16, #tpu.memory_space<vmem>>, vector<16x128xbf16>,
    } else {
    }
    return
  }
  func.func @transform_0(%arg0: i32, %arg1: i32) -> (i32, i32) {
    %c0_i32 = arith.constant 0 : i32
    %c0_i32_0 = arith.constant 0 : i32
    return %arg1, %c0_i32 : i32, i32
  }
  func.func @transform_1(%arg0: i32, %arg1: i32) -> (i32, i32) {
    %c0_i32 = arith.constant 0 : i32
    %c0_i32_0 = arith.constant 0 : i32
    %c0_i32_1 = arith.constant 0 : i32
    return %c0_i32, %c0_i32_0 : i32, i32
  }
  func.func @transform_2(%arg0: i32, %arg1: i32) -> (i32, i32) {
    %c0_i32 = arith.constant 0 : i32
    %c0_i32_0 = arith.constant 0 : i32
    %c0_i32_1 = arith.constant 0 : i32
    return %c0_i32, %c0_i32_0 : i32, i32
  }
  func.func @transform_3(%arg0: i32, %arg1: i32) -> (i32, i32) {
    %c0_i32 = arith.constant 0 : i32
    %c0_i32_0 = arith.constant 0 : i32
    %c0_i32_1 = arith.constant 0 : i32
    return %c0_i32, %c0_i32_0 : i32, i32
  }
  func.func @transform_4(%arg0: i32, %arg1: i32) -> (i32, i32) {
    %0 = arith.muli %arg0, %arg1 : i32
    %c0_i32 = arith.constant 0 : i32
    %c0_i32_0 = arith.constant 0 : i32
    return %0, %c0_i32 : i32, i32
  }
}

module attributes {stable_mosaic.version = 11 : i64} {
  func.func @kernel(%arg0: i32, %arg1: i32, %arg2: memref<16x3xbf16, #tpu.memory_space<vmem>>, %arg3: memref<3x128xbf16, #tpu.memory_space<vmem>>, %arg4: memref<1x128xf32, #tpu.memory_space<vmem>>, %arg5: memref<1x128xf32, #tpu.memory_space<vmem>>, %arg6: memref<16x128xbf16, #tpu.memory_space<vmem>>, %arg7: memref<1x128xf32, #tpu.memory_space<vmem>>, %arg8: memref<1x128xf32, #tpu.memory_space<vmem>>, %arg9: memref<1x128xf32, #tpu.memory_space<vmem>>) attributes {dimension_semantics = [#tpu.dimension_semantics<arbitrary>, #tpu.dimension_semantics<arbitrary>], iteration_bounds = array<i64: 2, 1>, scalar_prefetch = 0 : i64, scratch_operands = 3 : i64, tpu.core_type = #tpu.core_type<tc>, window_params = [{transform_indices = @transform_0, window_bounds = array<i64: 16, 3>}, {pipeline_mode = #tpu.pipeline_mode<synchronous>, transform_indices = @transform_1, window_bounds = array<i64: 3, 128>}, {pipeline_mode = #tpu.pipeline_mode<synchronous>, transform_indices = @transform_2, window_bounds = array<i64: 1, 128>}, {pipeline_mode = #tpu.pipeline_mode<synchronous>, transform_indices = @transform_3, window_bounds = array<i64: 1, 128>}, {transform_indices = @transform_4, window_bounds = array<i64: 16, 128>}]} {
    %c0_i32 = arith.constant 0 : i32
    %0 = arith.cmpi eq, %arg0, %c0_i32 : i32
    %c0_i32_0 = arith.constant 0 : i32
    %1 = arith.cmpi eq, %arg1, %c0_i32_0 : i32
    %2 = arith.andi %0, %1 : i1
    %c0 = arith.constant 0 : index
    %c0_1 = arith.constant 0 : index
    %3 = vector.load %arg2[%c0, %c0_1] : memref<16x3xbf16, #tpu.memory_space<vmem>>, vector<16x3xbf16>
    %c0_2 = arith.constant 0 : index
    %c0_3 = arith.constant 0 : index
    %4 = vector.load %arg3[%c0_2, %c0_3] : memref<3x128xbf16, #tpu.memory_space<vmem>>, vector<3x128xbf16>
    %cst = arith.constant dense<0.000000e+00> : vector<16x128xf32>
    %5 = tpu.matmul %3, %4, %cst {dimension_numbers = #tpu.dot_dimension_numbers<[1], [0], [0], [1], [0, 0, 1, 1], [], []>} : vector<16x3xbf16>, vector<3x128xbf16>, vector<16x128xf32> -> vector<16x128xf32>
    %c16_i32 = arith.constant 16 : i32
    %6 = arith.muli %arg1, %c16_i32 : i32
    %7 = tpu.iota {dimensions = array<i32: 0>} : vector<16x1xi32>
    %8 = vector.broadcast %6 : i32 to vector<16x1xi32>
    %9 = arith.addi %8, %7 : vector<16x1xi32>
    %c16_i32_4 = arith.constant 16 : i32
    %10 = vector.broadcast %c16_i32_4 : i32 to vector<16x1xi32>
    %11 = arith.cmpi slt, %9, %10 : vector<16x1xi32>
    %12 = arith.extui %2 : i1 to i32
    %c0_i32_5 = arith.constant 0 : i32
    %13 = arith.cmpi ne, %12, %c0_i32_5 : i32
    scf.if %13 {
      %cst_12 = arith.constant 0.000000e+00 : f32
      %25 = vector.shape_cast %11 : vector<16x1xi1> to vector<16x1xi1>
      %26 = vector.broadcast %25 : vector<16x1xi1> to vector<16x128xi1>
      %27 = vector.broadcast %cst_12 : f32 to vector<16x128xf32>
      %28 = arith.select %26, %5, %27 : vector<16x128xi1>, vector<16x128xf32>
      %cst_13 = arith.constant dense<0.000000e+00> : vector<128xf32>
      %29 = vector.multi_reduction <add>, %28, %cst_13 [0] : vector<16x128xf32> to vector<128xf32>
      %30 = vector.shape_cast %29 : vector<128xf32> to vector<1x128xf32>
      %cst_14 = arith.constant 6.250000e-02 : f32
      %31 = vector.broadcast %cst_14 : f32 to vector<1x128xf32>
      %32 = arith.mulf %30, %31 : vector<1x128xf32>
      %c0_15 = arith.constant 0 : index
      %c0_16 = arith.constant 0 : index
      %33 = vector.load %arg7[%c0_15, %c0_16] : memref<1x128xf32, #tpu.memory_space<vmem>>, vector<1x128xf32>
      tpu.vector_store %arg7[%c0_15, %c0_16], %32 {strides = array<i32>} : memref<1x128xf32, #tpu.memory_space<vmem>>, vector<1x128xf32>,
      %cst_17 = arith.constant 0.000000e+00 : f32
      %34 = vector.broadcast %cst_17 : f32 to vector<1x128xf32>
      %c0_18 = arith.constant 0 : index
      %c0_19 = arith.constant 0 : index
      %35 = vector.load %arg8[%c0_18, %c0_19] : memref<1x128xf32, #tpu.memory_space<vmem>>, vector<1x128xf32>
      tpu.vector_store %arg8[%c0_18, %c0_19], %34 {strides = array<i32>} : memref<1x128xf32, #tpu.memory_space<vmem>>, vector<1x128xf32>,
      %cst_20 = arith.constant 0.000000e+00 : f32
      %36 = vector.broadcast %cst_20 : f32 to vector<1x128xf32>
      %c0_21 = arith.constant 0 : index
      %c0_22 = arith.constant 0 : index
      %37 = vector.load %arg9[%c0_21, %c0_22] : memref<1x128xf32, #tpu.memory_space<vmem>>, vector<1x128xf32>
      tpu.vector_store %arg9[%c0_21, %c0_22], %36 {strides = array<i32>} : memref<1x128xf32, #tpu.memory_space<vmem>>, vector<1x128xf32>,
    } else {
    }
    %c0_i32_6 = arith.constant 0 : i32
    %14 = arith.cmpi eq, %arg0, %c0_i32_6 : i32
    %15 = arith.extui %14 : i1 to i32
    %c0_i32_7 = arith.constant 0 : i32
    %16 = arith.cmpi ne, %15, %c0_i32_7 : i32
    scf.if %16 {
      %c0_12 = arith.constant 0 : index
      %c0_13 = arith.constant 0 : index
      %25 = vector.load %arg7[%c0_12, %c0_13] : memref<1x128xf32, #tpu.memory_space<vmem>>, vector<1x128xf32>
      %26 = vector.broadcast %25 : vector<1x128xf32> to vector<16x128xf32>
      %27 = arith.subf %5, %26 : vector<16x128xf32>
      %cst_14 = arith.constant 0.000000e+00 : f32
      %28 = vector.shape_cast %11 : vector<16x1xi1> to vector<16x1xi1>
      %29 = vector.broadcast %28 : vector<16x1xi1> to vector<16x128xi1>
      %30 = vector.broadcast %cst_14 : f32 to vector<16x128xf32>
      %31 = arith.select %29, %27, %30 : vector<16x128xi1>, vector<16x128xf32>
      %c0_15 = arith.constant 0 : index
      %c0_16 = arith.constant 0 : index
      %32 = vector.load %arg8[%c0_15, %c0_16] : memref<1x128xf32, #tpu.memory_space<vmem>>, vector<1x128xf32>
      %cst_17 = arith.constant dense<0.000000e+00> : vector<128xf32>
      %33 = vector.multi_reduction <add>, %31, %cst_17 [0] : vector<16x128xf32> to vector<128xf32>
      %34 = vector.shape_cast %33 : vector<128xf32> to vector<1x128xf32>
      %35 = arith.addf %32, %34 : vector<1x128xf32>
      %c0_18 = arith.constant 0 : index
      %c0_19 = arith.constant 0 : index
      %36 = vector.load %arg8[%c0_18, %c0_19] : memref<1x128xf32, #tpu.memory_space<vmem>>, vector<1x128xf32>
      tpu.vector_store %arg8[%c0_18, %c0_19], %35 {strides = array<i32>} : memref<1x128xf32, #tpu.memory_space<vmem>>, vector<1x128xf32>,
      %c0_20 = arith.constant 0 : index
      %c0_21 = arith.constant 0 : index
      %37 = vector.load %arg9[%c0_20, %c0_21] : memref<1x128xf32, #tpu.memory_space<vmem>>, vector<1x128xf32>
      %38 = arith.mulf %31, %31 : vector<16x128xf32>
      %cst_22 = arith.constant dense<0.000000e+00> : vector<128xf32>
      %39 = vector.multi_reduction <add>, %38, %cst_22 [0] : vector<16x128xf32> to vector<128xf32>
      %40 = vector.shape_cast %39 : vector<128xf32> to vector<1x128xf32>
      %41 = arith.addf %37, %40 : vector<1x128xf32>
      %c0_23 = arith.constant 0 : index
      %c0_24 = arith.constant 0 : index
      %42 = vector.load %arg9[%c0_23, %c0_24] : memref<1x128xf32, #tpu.memory_space<vmem>>, vector<1x128xf32>
      tpu.vector_store %arg9[%c0_23, %c0_24], %41 {strides = array<i32>} : memref<1x128xf32, #tpu.memory_space<vmem>>, vector<1x128xf32>,
    } else {
    }
    %c1_i32 = arith.constant 1 : i32
    %17 = arith.cmpi eq, %arg0, %c1_i32 : i32
    %c0_i32_8 = arith.constant 0 : i32
    %18 = arith.cmpi eq, %arg1, %c0_i32_8 : i32
    %19 = arith.andi %17, %18 : i1
    %20 = arith.extui %19 : i1 to i32
    %c0_i32_9 = arith.constant 0 : i32
    %21 = arith.cmpi ne, %20, %c0_i32_9 : i32
    scf.if %21 {
      %c0_12 = arith.constant 0 : index
      %c0_13 = arith.constant 0 : index
      %25 = vector.load %arg8[%c0_12, %c0_13] : memref<1x128xf32, #tpu.memory_space<vmem>>, vector<1x128xf32>
      %cst_14 = arith.constant 6.250000e-02 : f32
      %26 = vector.broadcast %cst_14 : f32 to vector<1x128xf32>
      %27 = arith.mulf %25, %26 : vector<1x128xf32>
      %c0_15 = arith.constant 0 : index
      %c0_16 = arith.constant 0 : index
      %28 = vector.load %arg7[%c0_15, %c0_16] : memref<1x128xf32, #tpu.memory_space<vmem>>, vector<1x128xf32>
      %29 = arith.addf %28, %27 : vector<1x128xf32>
      %c0_17 = arith.constant 0 : index
      %c0_18 = arith.constant 0 : index
      %30 = vector.load %arg9[%c0_17, %c0_18] : memref<1x128xf32, #tpu.memory_space<vmem>>, vector<1x128xf32>
      %cst_19 = arith.constant 6.250000e-02 : f32
      %31 = vector.broadcast %cst_19 : f32 to vector<1x128xf32>
      %32 = arith.mulf %30, %31 : vector<1x128xf32>
      %33 = arith.mulf %27, %27 : vector<1x128xf32>
      %34 = arith.subf %32, %33 : vector<1x128xf32>
      %cst_20 = arith.constant 0.000000e+00 : f32
      %35 = vector.broadcast %cst_20 : f32 to vector<1x128xf32>
      %36 = arith.maximumf %34, %35 : vector<1x128xf32>
      %c0_21 = arith.constant 0 : index
      %c0_22 = arith.constant 0 : index
      %37 = vector.load %arg4[%c0_21, %c0_22] : memref<1x128xf32, #tpu.memory_space<vmem>>, vector<1x128xf32>
      %cst_23 = arith.constant 9.99999974E-6 : f32
      %38 = vector.broadcast %cst_23 : f32 to vector<1x128xf32>
      %39 = arith.addf %36, %38 : vector<1x128xf32>
      %40 = math.rsqrt %39 : vector<1x128xf32>
      %41 = arith.mulf %37, %40 : vector<1x128xf32>
      %c0_24 = arith.constant 0 : index
      %c0_25 = arith.constant 0 : index
      %42 = vector.load %arg8[%c0_24, %c0_25] : memref<1x128xf32, #tpu.memory_space<vmem>>, vector<1x128xf32>
      tpu.vector_store %arg8[%c0_24, %c0_25], %41 {strides = array<i32>} : memref<1x128xf32, #tpu.memory_space<vmem>>, vector<1x128xf32>,
      %c0_26 = arith.constant 0 : index
      %c0_27 = arith.constant 0 : index
      %43 = vector.load %arg5[%c0_26, %c0_27] : memref<1x128xf32, #tpu.memory_space<vmem>>, vector<1x128xf32>
      %44 = arith.mulf %29, %41 : vector<1x128xf32>
      %45 = arith.subf %43, %44 : vector<1x128xf32>
      %c0_28 = arith.constant 0 : index
      %c0_29 = arith.constant 0 : index
      %46 = vector.load %arg9[%c0_28, %c0_29] : memref<1x128xf32, #tpu.memory_space<vmem>>, vector<1x128xf32>
      tpu.vector_store %arg9[%c0_28, %c0_29], %45 {strides = array<i32>} : memref<1x128xf32, #tpu.memory_space<vmem>>, vector<1x128xf32>,
    } else {
    }
    %c1_i32_10 = arith.constant 1 : i32
    %22 = arith.cmpi eq, %arg0, %c1_i32_10 : i32
    %23 = arith.extui %22 : i1 to i32
    %c0_i32_11 = arith.constant 0 : i32
    %24 = arith.cmpi ne, %23, %c0_i32_11 : i32
    scf.if %24 {
      %c0_12 = arith.constant 0 : index
      %c0_13 = arith.constant 0 : index
      %25 = vector.load %arg8[%c0_12, %c0_13] : memref<1x128xf32, #tpu.memory_space<vmem>>, vector<1x128xf32>
      %26 = vector.broadcast %25 : vector<1x128xf32> to vector<16x128xf32>
      %27 = arith.mulf %5, %26 : vector<16x128xf32>
      %c0_14 = arith.constant 0 : index
      %c0_15 = arith.constant 0 : index
      %28 = vector.load %arg9[%c0_14, %c0_15] : memref<1x128xf32, #tpu.memory_space<vmem>>, vector<1x128xf32>
      %29 = vector.broadcast %28 : vector<1x128xf32> to vector<16x128xf32>
      %30 = arith.addf %27, %29 : vector<16x128xf32>
      %cst_16 = arith.constant 0.000000e+00 : f32
      %31 = vector.broadcast %cst_16 : f32 to vector<16x128xf32>
      %32 = arith.maximumf %30, %31 : vector<16x128xf32>
      %33 = arith.truncf %32 : vector<16x128xf32> to vector<16x128xbf16>
      %c0_17 = arith.constant 0 : index
      %c0_18 = arith.constant 0 : index
      %34 = vector.load %arg6[%c0_17, %c0_18] : memref<16x128xbf16, #tpu.memory_space<vmem>>, vector<16x128xbf16>
      tpu.vector_store %arg6[%c0_17, %c0_18], %33 {strides = array<i32>} : memref<16x128xbf16, #tpu.memory_space<vmem>>, vector<16x128xbf16>,
    } else {
    }
    return
  }
  func.func @transform_0(%arg0: i32, %arg1: i32) -> (i32, i32) {
    %c0_i32 = arith.constant 0 : i32
    %c0_i32_0 = arith.constant 0 : i32
    return %arg1, %c0_i32 : i32, i32
  }
  func.func @transform_1(%arg0: i32, %arg1: i32) -> (i32, i32) {
    %c0_i32 = arith.constant 0 : i32
    %c0_i32_0 = arith.constant 0 : i32
    %c0_i32_1 = arith.constant 0 : i32
    return %c0_i32, %c0_i32_0 : i32, i32
  }
  func.func @transform_2(%arg0: i32, %arg1: i32) -> (i32, i32) {
    %c0_i32 = arith.constant 0 : i32
    %c0_i32_0 = arith.constant 0 : i32
    %c0_i32_1 = arith.constant 0 : i32
    return %c0_i32, %c0_i32_0 : i32, i32
  }
  func.func @transform_3(%arg0: i32, %arg1: i32) -> (i32, i32) {
    %c0_i32 = arith.constant 0 : i32
    %c0_i32_0 = arith.constant 0 : i32
    %c0_i32_1 = arith.constant 0 : i32
    return %c0_i32, %c0_i32_0 : i32, i32
  }
  func.func @transform_4(%arg0: i32, %arg1: i32) -> (i32, i32) {
    %0 = arith.muli %arg0, %arg1 : i32
    %c0_i32 = arith.constant 0 : i32
    %c0_i32_0 = arith.constant 0 : i32
    return %0, %c0_i32 : i32, i32
  }
}

module attributes {stable_mosaic.version = 11 : i64} {
  func.func @kernel(%arg0: i32, %arg1: i32, %arg2: memref<8x128xbf16, #tpu.memory_space<vmem>>, %arg3: memref<128x128xbf16, #tpu.memory_space<vmem>>, %arg4: memref<1x128xf32, #tpu.memory_space<vmem>>, %arg5: memref<1x128xf32, #tpu.memory_space<vmem>>, %arg6: memref<8x128xbf16, #tpu.memory_space<vmem>>, %arg7: memref<1x128xf32, #tpu.memory_space<vmem>>, %arg8: memref<1x128xf32, #tpu.memory_space<vmem>>, %arg9: memref<1x128xf32, #tpu.memory_space<vmem>>) attributes {dimension_semantics = [#tpu.dimension_semantics<arbitrary>, #tpu.dimension_semantics<arbitrary>], iteration_bounds = array<i64: 2, 1>, scalar_prefetch = 0 : i64, scratch_operands = 3 : i64, tpu.core_type = #tpu.core_type<tc>, window_params = [{transform_indices = @transform_0, window_bounds = array<i64: 8, 128>}, {pipeline_mode = #tpu.pipeline_mode<synchronous>, transform_indices = @transform_1, window_bounds = array<i64: 128, 128>}, {pipeline_mode = #tpu.pipeline_mode<synchronous>, transform_indices = @transform_2, window_bounds = array<i64: 1, 128>}, {pipeline_mode = #tpu.pipeline_mode<synchronous>, transform_indices = @transform_3, window_bounds = array<i64: 1, 128>}, {transform_indices = @transform_4, window_bounds = array<i64: 8, 128>}]} {
    %c0_i32 = arith.constant 0 : i32
    %0 = arith.cmpi eq, %arg0, %c0_i32 : i32
    %c0_i32_0 = arith.constant 0 : i32
    %1 = arith.cmpi eq, %arg1, %c0_i32_0 : i32
    %2 = arith.andi %0, %1 : i1
    %c0 = arith.constant 0 : index
    %c0_1 = arith.constant 0 : index
    %3 = vector.load %arg2[%c0, %c0_1] : memref<8x128xbf16, #tpu.memory_space<vmem>>, vector<8x128xbf16>
    %c0_2 = arith.constant 0 : index
    %c0_3 = arith.constant 0 : index
    %4 = vector.load %arg3[%c0_2, %c0_3] : memref<128x128xbf16, #tpu.memory_space<vmem>>, vector<128x128xbf16>
    %cst = arith.constant dense<0.000000e+00> : vector<8x128xf32>
    %5 = tpu.matmul %3, %4, %cst {dimension_numbers = #tpu.dot_dimension_numbers<[1], [0], [0], [1], [0, 0, 1, 1], [], []>} : vector<8x128xbf16>, vector<128x128xbf16>, vector<8x128xf32> -> vector<8x128xf32>
    %c8_i32 = arith.constant 8 : i32
    %6 = arith.muli %arg1, %c8_i32 : i32
    %7 = tpu.iota {dimensions = array<i32: 0>} : vector<8x1xi32>
    %8 = vector.broadcast %6 : i32 to vector<8x1xi32>
    %9 = arith.addi %8, %7 : vector<8x1xi32>
    %c2_i32 = arith.constant 2 : i32
    %10 = vector.broadcast %c2_i32 : i32 to vector<8x1xi32>
    %11 = arith.cmpi slt, %9, %10 : vector<8x1xi32>
    %12 = arith.extui %2 : i1 to i32
    %c0_i32_4 = arith.constant 0 : i32
    %13 = arith.cmpi ne, %12, %c0_i32_4 : i32
    scf.if %13 {
      %cst_11 = arith.constant 0.000000e+00 : f32
      %25 = vector.shape_cast %11 : vector<8x1xi1> to vector<8x1xi1>
      %26 = vector.broadcast %25 : vector<8x1xi1> to vector<8x128xi1>
      %27 = vector.broadcast %cst_11 : f32 to vector<8x128xf32>
      %28 = arith.select %26, %5, %27 : vector<8x128xi1>, vector<8x128xf32>
      %cst_12 = arith.constant dense<0.000000e+00> : vector<128xf32>
      %29 = vector.multi_reduction <add>, %28, %cst_12 [0] : vector<8x128xf32> to vector<128xf32>
      %30 = vector.shape_cast %29 : vector<128xf32> to vector<1x128xf32>
      %cst_13 = arith.constant 5.000000e-01 : f32
      %31 = vector.broadcast %cst_13 : f32 to vector<1x128xf32>
      %32 = arith.mulf %30, %31 : vector<1x128xf32>
      %c0_14 = arith.constant 0 : index
      %c0_15 = arith.constant 0 : index
      %33 = vector.load %arg7[%c0_14, %c0_15] : memref<1x128xf32, #tpu.memory_space<vmem>>, vector<1x128xf32>
      tpu.vector_store %arg7[%c0_14, %c0_15], %32 {strides = array<i32>} : memref<1x128xf32, #tpu.memory_space<vmem>>, vector<1x128xf32>,
      %cst_16 = arith.constant 0.000000e+00 : f32
      %34 = vector.broadcast %cst_16 : f32 to vector<1x128xf32>
      %c0_17 = arith.constant 0 : index
      %c0_18 = arith.constant 0 : index
      %35 = vector.load %arg8[%c0_17, %c0_18] : memref<1x128xf32, #tpu.memory_space<vmem>>, vector<1x128xf32>
      tpu.vector_store %arg8[%c0_17, %c0_18], %34 {strides = array<i32>} : memref<1x128xf32, #tpu.memory_space<vmem>>, vector<1x128xf32>,
      %cst_19 = arith.constant 0.000000e+00 : f32
      %36 = vector.broadcast %cst_19 : f32 to vector<1x128xf32>
      %c0_20 = arith.constant 0 : index
      %c0_21 = arith.constant 0 : index
      %37 = vector.load %arg9[%c0_20, %c0_21] : memref<1x128xf32, #tpu.memory_space<vmem>>, vector<1x128xf32>
      tpu.vector_store %arg9[%c0_20, %c0_21], %36 {strides = array<i32>} : memref<1x128xf32, #tpu.memory_space<vmem>>, vector<1x128xf32>,
    } else {
    }
    %c0_i32_5 = arith.constant 0 : i32
    %14 = arith.cmpi eq, %arg0, %c0_i32_5 : i32
    %15 = arith.extui %14 : i1 to i32
    %c0_i32_6 = arith.constant 0 : i32
    %16 = arith.cmpi ne, %15, %c0_i32_6 : i32
    scf.if %16 {
      %c0_11 = arith.constant 0 : index
      %c0_12 = arith.constant 0 : index
      %25 = vector.load %arg7[%c0_11, %c0_12] : memref<1x128xf32, #tpu.memory_space<vmem>>, vector<1x128xf32>
      %26 = vector.broadcast %25 : vector<1x128xf32> to vector<8x128xf32>
      %27 = arith.subf %5, %26 : vector<8x128xf32>
      %cst_13 = arith.constant 0.000000e+00 : f32
      %28 = vector.shape_cast %11 : vector<8x1xi1> to vector<8x1xi1>
      %29 = vector.broadcast %28 : vector<8x1xi1> to vector<8x128xi1>
      %30 = vector.broadcast %cst_13 : f32 to vector<8x128xf32>
      %31 = arith.select %29, %27, %30 : vector<8x128xi1>, vector<8x128xf32>
      %c0_14 = arith.constant 0 : index
      %c0_15 = arith.constant 0 : index
      %32 = vector.load %arg8[%c0_14, %c0_15] : memref<1x128xf32, #tpu.memory_space<vmem>>, vector<1x128xf32>
      %cst_16 = arith.constant dense<0.000000e+00> : vector<128xf32>
      %33 = vector.multi_reduction <add>, %31, %cst_16 [0] : vector<8x128xf32> to vector<128xf32>
      %34 = vector.shape_cast %33 : vector<128xf32> to vector<1x128xf32>
      %35 = arith.addf %32, %34 : vector<1x128xf32>
      %c0_17 = arith.constant 0 : index
      %c0_18 = arith.constant 0 : index
      %36 = vector.load %arg8[%c0_17, %c0_18] : memref<1x128xf32, #tpu.memory_space<vmem>>, vector<1x128xf32>
      tpu.vector_store %arg8[%c0_17, %c0_18], %35 {strides = array<i32>} : memref<1x128xf32, #tpu.memory_space<vmem>>, vector<1x128xf32>,
      %c0_19 = arith.constant 0 : index
      %c0_20 = arith.constant 0 : index
      %37 = vector.load %arg9[%c0_19, %c0_20] : memref<1x128xf32, #tpu.memory_space<vmem>>, vector<1x128xf32>
      %38 = arith.mulf %31, %31 : vector<8x128xf32>
      %cst_21 = arith.constant dense<0.000000e+00> : vector<128xf32>
      %39 = vector.multi_reduction <add>, %38, %cst_21 [0] : vector<8x128xf32> to vector<128xf32>
      %40 = vector.shape_cast %39 : vector<128xf32> to vector<1x128xf32>
      %41 = arith.addf %37, %40 : vector<1x128xf32>
      %c0_22 = arith.constant 0 : index
      %c0_23 = arith.constant 0 : index
      %42 = vector.load %arg9[%c0_22, %c0_23] : memref<1x128xf32, #tpu.memory_space<vmem>>, vector<1x128xf32>
      tpu.vector_store %arg9[%c0_22, %c0_23], %41 {strides = array<i32>} : memref<1x128xf32, #tpu.memory_space<vmem>>, vector<1x128xf32>,
    } else {
    }
    %c1_i32 = arith.constant 1 : i32
    %17 = arith.cmpi eq, %arg0, %c1_i32 : i32
    %c0_i32_7 = arith.constant 0 : i32
    %18 = arith.cmpi eq, %arg1, %c0_i32_7 : i32
    %19 = arith.andi %17, %18 : i1
    %20 = arith.extui %19 : i1 to i32
    %c0_i32_8 = arith.constant 0 : i32
    %21 = arith.cmpi ne, %20, %c0_i32_8 : i32
    scf.if %21 {
      %c0_11 = arith.constant 0 : index
      %c0_12 = arith.constant 0 : index
      %25 = vector.load %arg8[%c0_11, %c0_12] : memref<1x128xf32, #tpu.memory_space<vmem>>, vector<1x128xf32>
      %cst_13 = arith.constant 5.000000e-01 : f32
      %26 = vector.broadcast %cst_13 : f32 to vector<1x128xf32>
      %27 = arith.mulf %25, %26 : vector<1x128xf32>
      %c0_14 = arith.constant 0 : index
      %c0_15 = arith.constant 0 : index
      %28 = vector.load %arg7[%c0_14, %c0_15] : memref<1x128xf32, #tpu.memory_space<vmem>>, vector<1x128xf32>
      %29 = arith.addf %28, %27 : vector<1x128xf32>
      %c0_16 = arith.constant 0 : index
      %c0_17 = arith.constant 0 : index
      %30 = vector.load %arg9[%c0_16, %c0_17] : memref<1x128xf32, #tpu.memory_space<vmem>>, vector<1x128xf32>
      %cst_18 = arith.constant 5.000000e-01 : f32
      %31 = vector.broadcast %cst_18 : f32 to vector<1x128xf32>
      %32 = arith.mulf %30, %31 : vector<1x128xf32>
      %33 = arith.mulf %27, %27 : vector<1x128xf32>
      %34 = arith.subf %32, %33 : vector<1x128xf32>
      %cst_19 = arith.constant 0.000000e+00 : f32
      %35 = vector.broadcast %cst_19 : f32 to vector<1x128xf32>
      %36 = arith.maximumf %34, %35 : vector<1x128xf32>
      %c0_20 = arith.constant 0 : index
      %c0_21 = arith.constant 0 : index
      %37 = vector.load %arg4[%c0_20, %c0_21] : memref<1x128xf32, #tpu.memory_space<vmem>>, vector<1x128xf32>
      %cst_22 = arith.constant 9.99999974E-6 : f32
      %38 = vector.broadcast %cst_22 : f32 to vector<1x128xf32>
      %39 = arith.addf %36, %38 : vector<1x128xf32>
      %40 = math.rsqrt %39 : vector<1x128xf32>
      %41 = arith.mulf %37, %40 : vector<1x128xf32>
      %c0_23 = arith.constant 0 : index
      %c0_24 = arith.constant 0 : index
      %42 = vector.load %arg8[%c0_23, %c0_24] : memref<1x128xf32, #tpu.memory_space<vmem>>, vector<1x128xf32>
      tpu.vector_store %arg8[%c0_23, %c0_24], %41 {strides = array<i32>} : memref<1x128xf32, #tpu.memory_space<vmem>>, vector<1x128xf32>,
      %c0_25 = arith.constant 0 : index
      %c0_26 = arith.constant 0 : index
      %43 = vector.load %arg5[%c0_25, %c0_26] : memref<1x128xf32, #tpu.memory_space<vmem>>, vector<1x128xf32>
      %44 = arith.mulf %29, %41 : vector<1x128xf32>
      %45 = arith.subf %43, %44 : vector<1x128xf32>
      %c0_27 = arith.constant 0 : index
      %c0_28 = arith.constant 0 : index
      %46 = vector.load %arg9[%c0_27, %c0_28] : memref<1x128xf32, #tpu.memory_space<vmem>>, vector<1x128xf32>
      tpu.vector_store %arg9[%c0_27, %c0_28], %45 {strides = array<i32>} : memref<1x128xf32, #tpu.memory_space<vmem>>, vector<1x128xf32>,
    } else {
    }
    %c1_i32_9 = arith.constant 1 : i32
    %22 = arith.cmpi eq, %arg0, %c1_i32_9 : i32
    %23 = arith.extui %22 : i1 to i32
    %c0_i32_10 = arith.constant 0 : i32
    %24 = arith.cmpi ne, %23, %c0_i32_10 : i32
    scf.if %24 {
      %c0_11 = arith.constant 0 : index
      %c0_12 = arith.constant 0 : index
      %25 = vector.load %arg8[%c0_11, %c0_12] : memref<1x128xf32, #tpu.memory_space<vmem>>, vector<1x128xf32>
      %26 = vector.broadcast %25 : vector<1x128xf32> to vector<8x128xf32>
      %27 = arith.mulf %5, %26 : vector<8x128xf32>
      %c0_13 = arith.constant 0 : index
      %c0_14 = arith.constant 0 : index
      %28 = vector.load %arg9[%c0_13, %c0_14] : memref<1x128xf32, #tpu.memory_space<vmem>>, vector<1x128xf32>
      %29 = vector.broadcast %28 : vector<1x128xf32> to vector<8x128xf32>
      %30 = arith.addf %27, %29 : vector<8x128xf32>
      %cst_15 = arith.constant 0.000000e+00 : f32
      %31 = vector.broadcast %cst_15 : f32 to vector<8x128xf32>
      %32 = arith.maximumf %30, %31 : vector<8x128xf32>
      %33 = arith.truncf %32 : vector<8x128xf32> to vector<8x128xbf16>
      %c0_16 = arith.constant 0 : index
      %c0_17 = arith.constant 0 : index
      %34 = vector.load %arg6[%c0_16, %c0_17] : memref<8x128xbf16, #tpu.memory_space<vmem>>, vector<8x128xbf16>
      tpu.vector_store %arg6[%c0_16, %c0_17], %33 {strides = array<i32>} : memref<8x128xbf16, #tpu.memory_space<vmem>>, vector<8x128xbf16>,
    } else {
    }
    return
  }
  func.func @transform_0(%arg0: i32, %arg1: i32) -> (i32, i32) {
    %c0_i32 = arith.constant 0 : i32
    %c0_i32_0 = arith.constant 0 : i32
    return %arg1, %c0_i32 : i32, i32
  }
  func.func @transform_1(%arg0: i32, %arg1: i32) -> (i32, i32) {
    %c0_i32 = arith.constant 0 : i32
    %c0_i32_0 = arith.constant 0 : i32
    %c0_i32_1 = arith.constant 0 : i32
    return %c0_i32, %c0_i32_0 : i32, i32
  }
  func.func @transform_2(%arg0: i32, %arg1: i32) -> (i32, i32) {
    %c0_i32 = arith.constant 0 : i32
    %c0_i32_0 = arith.constant 0 : i32
    %c0_i32_1 = arith.constant 0 : i32
    return %c0_i32, %c0_i32_0 : i32, i32
  }
  func.func @transform_3(%arg0: i32, %arg1: i32) -> (i32, i32) {
    %c0_i32 = arith.constant 0 : i32
    %c0_i32_0 = arith.constant 0 : i32
    %c0_i32_1 = arith.constant 0 : i32
    return %c0_i32, %c0_i32_0 : i32, i32
  }
  func.func @transform_4(%arg0: i32, %arg1: i32) -> (i32, i32) {
    %0 = arith.muli %arg0, %arg1 : i32
    %c0_i32 = arith.constant 0 : i32
    %c0_i32_0 = arith.constant 0 : i32
    return %0, %c0_i32 : i32, i32
  }
}

module attributes {stable_mosaic.version = 11 : i64} {
  func.func @kernel(%arg0: i32, %arg1: i32, %arg2: memref<8x128xbf16, #tpu.memory_space<vmem>>, %arg3: memref<128x128xbf16, #tpu.memory_space<vmem>>, %arg4: memref<1x128xf32, #tpu.memory_space<vmem>>, %arg5: memref<1x128xf32, #tpu.memory_space<vmem>>, %arg6: memref<128x128xbf16, #tpu.memory_space<vmem>>, %arg7: memref<1x128xf32, #tpu.memory_space<vmem>>, %arg8: memref<8x128xf32, #tpu.memory_space<vmem>>, %arg9: memref<1x128xf32, #tpu.memory_space<vmem>>, %arg10: memref<1x128xf32, #tpu.memory_space<vmem>>, %arg11: memref<1x128xf32, #tpu.memory_space<vmem>>) attributes {dimension_semantics = [#tpu.dimension_semantics<arbitrary>, #tpu.dimension_semantics<arbitrary>], iteration_bounds = array<i64: 2, 1>, scalar_prefetch = 0 : i64, scratch_operands = 3 : i64, tpu.core_type = #tpu.core_type<tc>, window_params = [{transform_indices = @transform_0, window_bounds = array<i64: 8, 128>}, {pipeline_mode = #tpu.pipeline_mode<synchronous>, transform_indices = @transform_1, window_bounds = array<i64: 128, 128>}, {pipeline_mode = #tpu.pipeline_mode<synchronous>, transform_indices = @transform_2, window_bounds = array<i64: 1, 128>}, {pipeline_mode = #tpu.pipeline_mode<synchronous>, transform_indices = @transform_3, window_bounds = array<i64: 1, 128>}, {pipeline_mode = #tpu.pipeline_mode<synchronous>, transform_indices = @transform_4, window_bounds = array<i64: 128, 128>}, {pipeline_mode = #tpu.pipeline_mode<synchronous>, transform_indices = @transform_5, window_bounds = array<i64: 1, 128>}, {transform_indices = @transform_6, window_bounds = array<i64: 8, 128>}]} {
    %c0_i32 = arith.constant 0 : i32
    %0 = arith.cmpi eq, %arg0, %c0_i32 : i32
    %c0_i32_0 = arith.constant 0 : i32
    %1 = arith.cmpi eq, %arg1, %c0_i32_0 : i32
    %2 = arith.andi %0, %1 : i1
    %c0 = arith.constant 0 : index
    %c0_1 = arith.constant 0 : index
    %3 = vector.load %arg2[%c0, %c0_1] : memref<8x128xbf16, #tpu.memory_space<vmem>>, vector<8x128xbf16>
    %c0_2 = arith.constant 0 : index
    %c0_3 = arith.constant 0 : index
    %4 = vector.load %arg3[%c0_2, %c0_3] : memref<128x128xbf16, #tpu.memory_space<vmem>>, vector<128x128xbf16>
    %cst = arith.constant dense<0.000000e+00> : vector<8x128xf32>
    %5 = tpu.matmul %3, %4, %cst {dimension_numbers = #tpu.dot_dimension_numbers<[1], [0], [0], [1], [0, 0, 1, 1], [], []>} : vector<8x128xbf16>, vector<128x128xbf16>, vector<8x128xf32> -> vector<8x128xf32>
    %c8_i32 = arith.constant 8 : i32
    %6 = arith.muli %arg1, %c8_i32 : i32
    %7 = tpu.iota {dimensions = array<i32: 0>} : vector<8x1xi32>
    %8 = vector.broadcast %6 : i32 to vector<8x1xi32>
    %9 = arith.addi %8, %7 : vector<8x1xi32>
    %c2_i32 = arith.constant 2 : i32
    %10 = vector.broadcast %c2_i32 : i32 to vector<8x1xi32>
    %11 = arith.cmpi slt, %9, %10 : vector<8x1xi32>
    %12 = arith.extui %2 : i1 to i32
    %c0_i32_4 = arith.constant 0 : i32
    %13 = arith.cmpi ne, %12, %c0_i32_4 : i32
    scf.if %13 {
      %cst_11 = arith.constant 0.000000e+00 : f32
      %25 = vector.shape_cast %11 : vector<8x1xi1> to vector<8x1xi1>
      %26 = vector.broadcast %25 : vector<8x1xi1> to vector<8x128xi1>
      %27 = vector.broadcast %cst_11 : f32 to vector<8x128xf32>
      %28 = arith.select %26, %5, %27 : vector<8x128xi1>, vector<8x128xf32>
      %cst_12 = arith.constant dense<0.000000e+00> : vector<128xf32>
      %29 = vector.multi_reduction <add>, %28, %cst_12 [0] : vector<8x128xf32> to vector<128xf32>
      %30 = vector.shape_cast %29 : vector<128xf32> to vector<1x128xf32>
      %cst_13 = arith.constant 5.000000e-01 : f32
      %31 = vector.broadcast %cst_13 : f32 to vector<1x128xf32>
      %32 = arith.mulf %30, %31 : vector<1x128xf32>
      %c0_14 = arith.constant 0 : index
      %c0_15 = arith.constant 0 : index
      %33 = vector.load %arg9[%c0_14, %c0_15] : memref<1x128xf32, #tpu.memory_space<vmem>>, vector<1x128xf32>
      tpu.vector_store %arg9[%c0_14, %c0_15], %32 {strides = array<i32>} : memref<1x128xf32, #tpu.memory_space<vmem>>, vector<1x128xf32>,
      %cst_16 = arith.constant 0.000000e+00 : f32
      %34 = vector.broadcast %cst_16 : f32 to vector<1x128xf32>
      %c0_17 = arith.constant 0 : index
      %c0_18 = arith.constant 0 : index
      %35 = vector.load %arg10[%c0_17, %c0_18] : memref<1x128xf32, #tpu.memory_space<vmem>>, vector<1x128xf32>
      tpu.vector_store %arg10[%c0_17, %c0_18], %34 {strides = array<i32>} : memref<1x128xf32, #tpu.memory_space<vmem>>, vector<1x128xf32>,
      %cst_19 = arith.constant 0.000000e+00 : f32
      %36 = vector.broadcast %cst_19 : f32 to vector<1x128xf32>
      %c0_20 = arith.constant 0 : index
      %c0_21 = arith.constant 0 : index
      %37 = vector.load %arg11[%c0_20, %c0_21] : memref<1x128xf32, #tpu.memory_space<vmem>>, vector<1x128xf32>
      tpu.vector_store %arg11[%c0_20, %c0_21], %36 {strides = array<i32>} : memref<1x128xf32, #tpu.memory_space<vmem>>, vector<1x128xf32>,
    } else {
    }
    %c0_i32_5 = arith.constant 0 : i32
    %14 = arith.cmpi eq, %arg0, %c0_i32_5 : i32
    %15 = arith.extui %14 : i1 to i32
    %c0_i32_6 = arith.constant 0 : i32
    %16 = arith.cmpi ne, %15, %c0_i32_6 : i32
    scf.if %16 {
      %c0_11 = arith.constant 0 : index
      %c0_12 = arith.constant 0 : index
      %25 = vector.load %arg9[%c0_11, %c0_12] : memref<1x128xf32, #tpu.memory_space<vmem>>, vector<1x128xf32>
      %26 = vector.broadcast %25 : vector<1x128xf32> to vector<8x128xf32>
      %27 = arith.subf %5, %26 : vector<8x128xf32>
      %cst_13 = arith.constant 0.000000e+00 : f32
      %28 = vector.shape_cast %11 : vector<8x1xi1> to vector<8x1xi1>
      %29 = vector.broadcast %28 : vector<8x1xi1> to vector<8x128xi1>
      %30 = vector.broadcast %cst_13 : f32 to vector<8x128xf32>
      %31 = arith.select %29, %27, %30 : vector<8x128xi1>, vector<8x128xf32>
      %c0_14 = arith.constant 0 : index
      %c0_15 = arith.constant 0 : index
      %32 = vector.load %arg10[%c0_14, %c0_15] : memref<1x128xf32, #tpu.memory_space<vmem>>, vector<1x128xf32>
      %cst_16 = arith.constant dense<0.000000e+00> : vector<128xf32>
      %33 = vector.multi_reduction <add>, %31, %cst_16 [0] : vector<8x128xf32> to vector<128xf32>
      %34 = vector.shape_cast %33 : vector<128xf32> to vector<1x128xf32>
      %35 = arith.addf %32, %34 : vector<1x128xf32>
      %c0_17 = arith.constant 0 : index
      %c0_18 = arith.constant 0 : index
      %36 = vector.load %arg10[%c0_17, %c0_18] : memref<1x128xf32, #tpu.memory_space<vmem>>, vector<1x128xf32>
      tpu.vector_store %arg10[%c0_17, %c0_18], %35 {strides = array<i32>} : memref<1x128xf32, #tpu.memory_space<vmem>>, vector<1x128xf32>,
      %c0_19 = arith.constant 0 : index
      %c0_20 = arith.constant 0 : index
      %37 = vector.load %arg11[%c0_19, %c0_20] : memref<1x128xf32, #tpu.memory_space<vmem>>, vector<1x128xf32>
      %38 = arith.mulf %31, %31 : vector<8x128xf32>
      %cst_21 = arith.constant dense<0.000000e+00> : vector<128xf32>
      %39 = vector.multi_reduction <add>, %38, %cst_21 [0] : vector<8x128xf32> to vector<128xf32>
      %40 = vector.shape_cast %39 : vector<128xf32> to vector<1x128xf32>
      %41 = arith.addf %37, %40 : vector<1x128xf32>
      %c0_22 = arith.constant 0 : index
      %c0_23 = arith.constant 0 : index
      %42 = vector.load %arg11[%c0_22, %c0_23] : memref<1x128xf32, #tpu.memory_space<vmem>>, vector<1x128xf32>
      tpu.vector_store %arg11[%c0_22, %c0_23], %41 {strides = array<i32>} : memref<1x128xf32, #tpu.memory_space<vmem>>, vector<1x128xf32>,
    } else {
    }
    %c1_i32 = arith.constant 1 : i32
    %17 = arith.cmpi eq, %arg0, %c1_i32 : i32
    %c0_i32_7 = arith.constant 0 : i32
    %18 = arith.cmpi eq, %arg1, %c0_i32_7 : i32
    %19 = arith.andi %17, %18 : i1
    %20 = arith.extui %19 : i1 to i32
    %c0_i32_8 = arith.constant 0 : i32
    %21 = arith.cmpi ne, %20, %c0_i32_8 : i32
    scf.if %21 {
      %c0_11 = arith.constant 0 : index
      %c0_12 = arith.constant 0 : index
      %25 = vector.load %arg10[%c0_11, %c0_12] : memref<1x128xf32, #tpu.memory_space<vmem>>, vector<1x128xf32>
      %cst_13 = arith.constant 5.000000e-01 : f32
      %26 = vector.broadcast %cst_13 : f32 to vector<1x128xf32>
      %27 = arith.mulf %25, %26 : vector<1x128xf32>
      %c0_14 = arith.constant 0 : index
      %c0_15 = arith.constant 0 : index
      %28 = vector.load %arg9[%c0_14, %c0_15] : memref<1x128xf32, #tpu.memory_space<vmem>>, vector<1x128xf32>
      %29 = arith.addf %28, %27 : vector<1x128xf32>
      %c0_16 = arith.constant 0 : index
      %c0_17 = arith.constant 0 : index
      %30 = vector.load %arg11[%c0_16, %c0_17] : memref<1x128xf32, #tpu.memory_space<vmem>>, vector<1x128xf32>
      %cst_18 = arith.constant 5.000000e-01 : f32
      %31 = vector.broadcast %cst_18 : f32 to vector<1x128xf32>
      %32 = arith.mulf %30, %31 : vector<1x128xf32>
      %33 = arith.mulf %27, %27 : vector<1x128xf32>
      %34 = arith.subf %32, %33 : vector<1x128xf32>
      %cst_19 = arith.constant 0.000000e+00 : f32
      %35 = vector.broadcast %cst_19 : f32 to vector<1x128xf32>
      %36 = arith.maximumf %34, %35 : vector<1x128xf32>
      %c0_20 = arith.constant 0 : index
      %c0_21 = arith.constant 0 : index
      %37 = vector.load %arg4[%c0_20, %c0_21] : memref<1x128xf32, #tpu.memory_space<vmem>>, vector<1x128xf32>
      %cst_22 = arith.constant 9.99999974E-6 : f32
      %38 = vector.broadcast %cst_22 : f32 to vector<1x128xf32>
      %39 = arith.addf %36, %38 : vector<1x128xf32>
      %40 = math.rsqrt %39 : vector<1x128xf32>
      %41 = arith.mulf %37, %40 : vector<1x128xf32>
      %c0_23 = arith.constant 0 : index
      %c0_24 = arith.constant 0 : index
      %42 = vector.load %arg10[%c0_23, %c0_24] : memref<1x128xf32, #tpu.memory_space<vmem>>, vector<1x128xf32>
      tpu.vector_store %arg10[%c0_23, %c0_24], %41 {strides = array<i32>} : memref<1x128xf32, #tpu.memory_space<vmem>>, vector<1x128xf32>,
      %c0_25 = arith.constant 0 : index
      %c0_26 = arith.constant 0 : index
      %43 = vector.load %arg5[%c0_25, %c0_26] : memref<1x128xf32, #tpu.memory_space<vmem>>, vector<1x128xf32>
      %44 = arith.mulf %29, %41 : vector<1x128xf32>
      %45 = arith.subf %43, %44 : vector<1x128xf32>
      %c0_27 = arith.constant 0 : index
      %c0_28 = arith.constant 0 : index
      %46 = vector.load %arg11[%c0_27, %c0_28] : memref<1x128xf32, #tpu.memory_space<vmem>>, vector<1x128xf32>
      tpu.vector_store %arg11[%c0_27, %c0_28], %45 {strides = array<i32>} : memref<1x128xf32, #tpu.memory_space<vmem>>, vector<1x128xf32>,
    } else {
    }
    %c1_i32_9 = arith.constant 1 : i32
    %22 = arith.cmpi eq, %arg0, %c1_i32_9 : i32
    %23 = arith.extui %22 : i1 to i32
    %c0_i32_10 = arith.constant 0 : i32
    %24 = arith.cmpi ne, %23, %c0_i32_10 : i32
    scf.if %24 {
      %c0_11 = arith.constant 0 : index
      %c0_12 = arith.constant 0 : index
      %25 = vector.load %arg10[%c0_11, %c0_12] : memref<1x128xf32, #tpu.memory_space<vmem>>, vector<1x128xf32>
      %26 = vector.broadcast %25 : vector<1x128xf32> to vector<8x128xf32>
      %27 = arith.mulf %5, %26 : vector<8x128xf32>
      %c0_13 = arith.constant 0 : index
      %c0_14 = arith.constant 0 : index
      %28 = vector.load %arg11[%c0_13, %c0_14] : memref<1x128xf32, #tpu.memory_space<vmem>>, vector<1x128xf32>
      %29 = vector.broadcast %28 : vector<1x128xf32> to vector<8x128xf32>
      %30 = arith.addf %27, %29 : vector<8x128xf32>
      %cst_15 = arith.constant 0.000000e+00 : f32
      %31 = vector.broadcast %cst_15 : f32 to vector<8x128xf32>
      %32 = arith.maximumf %30, %31 : vector<8x128xf32>
      %33 = arith.truncf %32 : vector<8x128xf32> to vector<8x128xbf16>
      %c0_16 = arith.constant 0 : index
      %c0_17 = arith.constant 0 : index
      %34 = vector.load %arg6[%c0_16, %c0_17] : memref<128x128xbf16, #tpu.memory_space<vmem>>, vector<128x128xbf16>
      %cst_18 = arith.constant dense<0.000000e+00> : vector<8x128xf32>
      %35 = tpu.matmul %33, %34, %cst_18 {dimension_numbers = #tpu.dot_dimension_numbers<[1], [0], [0], [1], [0, 0, 1, 1], [], []>} : vector<8x128xbf16>, vector<128x128xbf16>, vector<8x128xf32> -> vector<8x128xf32>
      %c0_19 = arith.constant 0 : index
      %c0_20 = arith.constant 0 : index
      %36 = vector.load %arg7[%c0_19, %c0_20] : memref<1x128xf32, #tpu.memory_space<vmem>>, vector<1x128xf32>
      %37 = vector.broadcast %36 : vector<1x128xf32> to vector<8x128xf32>
      %38 = arith.addf %35, %37 : vector<8x128xf32>
      %c0_21 = arith.constant 0 : index
      %c0_22 = arith.constant 0 : index
      %39 = vector.load %arg8[%c0_21, %c0_22] : memref<8x128xf32, #tpu.memory_space<vmem>>, vector<8x128xf32>
      tpu.vector_store %arg8[%c0_21, %c0_22], %38 {strides = array<i32>} : memref<8x128xf32, #tpu.memory_space<vmem>>, vector<8x128xf32>,
    } else {
    }
    return
  }
  func.func @transform_0(%arg0: i32, %arg1: i32) -> (i32, i32) {
    %c0_i32 = arith.constant 0 : i32
    %c0_i32_0 = arith.constant 0 : i32
    return %arg1, %c0_i32 : i32, i32
  }
  func.func @transform_1(%arg0: i32, %arg1: i32) -> (i32, i32) {
    %c0_i32 = arith.constant 0 : i32
    %c0_i32_0 = arith.constant 0 : i32
    %c0_i32_1 = arith.constant 0 : i32
    return %c0_i32, %c0_i32_0 : i32, i32
  }
  func.func @transform_2(%arg0: i32, %arg1: i32) -> (i32, i32) {
    %c0_i32 = arith.constant 0 : i32
    %c0_i32_0 = arith.constant 0 : i32
    %c0_i32_1 = arith.constant 0 : i32
    return %c0_i32, %c0_i32_0 : i32, i32
  }
  func.func @transform_3(%arg0: i32, %arg1: i32) -> (i32, i32) {
    %c0_i32 = arith.constant 0 : i32
    %c0_i32_0 = arith.constant 0 : i32
    %c0_i32_1 = arith.constant 0 : i32
    return %c0_i32, %c0_i32_0 : i32, i32
  }
  func.func @transform_4(%arg0: i32, %arg1: i32) -> (i32, i32) {
    %c0_i32 = arith.constant 0 : i32
    %c0_i32_0 = arith.constant 0 : i32
    %c0_i32_1 = arith.constant 0 : i32
    return %c0_i32, %c0_i32_0 : i32, i32
  }
  func.func @transform_5(%arg0: i32, %arg1: i32) -> (i32, i32) {
    %c0_i32 = arith.constant 0 : i32
    %c0_i32_0 = arith.constant 0 : i32
    %c0_i32_1 = arith.constant 0 : i32
    return %c0_i32, %c0_i32_0 : i32, i32
  }
  func.func @transform_6(%arg0: i32, %arg1: i32) -> (i32, i32) {
    %0 = arith.muli %arg0, %arg1 : i32
    %c0_i32 = arith.constant 0 : i32
    %c0_i32_0 = arith.constant 0 : i32
    return %0, %c0_i32 : i32, i32
  }
}

module attributes {stable_mosaic.version = 11 : i64} {
  func.func @kernel(%arg0: i32, %arg1: i32, %arg2: memref<16x128xbf16, #tpu.memory_space<vmem>>, %arg3: memref<128x128xbf16, #tpu.memory_space<vmem>>, %arg4: memref<1x128xf32, #tpu.memory_space<vmem>>, %arg5: memref<1x128xf32, #tpu.memory_space<vmem>>, %arg6: memref<16x128xbf16, #tpu.memory_space<vmem>>, %arg7: memref<1x128xf32, #tpu.memory_space<vmem>>, %arg8: memref<1x128xf32, #tpu.memory_space<vmem>>, %arg9: memref<1x128xf32, #tpu.memory_space<vmem>>) attributes {dimension_semantics = [#tpu.dimension_semantics<arbitrary>, #tpu.dimension_semantics<arbitrary>], iteration_bounds = array<i64: 2, 1>, scalar_prefetch = 0 : i64, scratch_operands = 3 : i64, tpu.core_type = #tpu.core_type<tc>, window_params = [{transform_indices = @transform_0, window_bounds = array<i64: 16, 128>}, {pipeline_mode = #tpu.pipeline_mode<synchronous>, transform_indices = @transform_1, window_bounds = array<i64: 128, 128>}, {pipeline_mode = #tpu.pipeline_mode<synchronous>, transform_indices = @transform_2, window_bounds = array<i64: 1, 128>}, {pipeline_mode = #tpu.pipeline_mode<synchronous>, transform_indices = @transform_3, window_bounds = array<i64: 1, 128>}, {transform_indices = @transform_4, window_bounds = array<i64: 16, 128>}]} {
    %c0_i32 = arith.constant 0 : i32
    %0 = arith.cmpi eq, %arg0, %c0_i32 : i32
    %c0_i32_0 = arith.constant 0 : i32
    %1 = arith.cmpi eq, %arg1, %c0_i32_0 : i32
    %2 = arith.andi %0, %1 : i1
    %c0 = arith.constant 0 : index
    %c0_1 = arith.constant 0 : index
    %3 = vector.load %arg2[%c0, %c0_1] : memref<16x128xbf16, #tpu.memory_space<vmem>>, vector<16x128xbf16>
    %c0_2 = arith.constant 0 : index
    %c0_3 = arith.constant 0 : index
    %4 = vector.load %arg3[%c0_2, %c0_3] : memref<128x128xbf16, #tpu.memory_space<vmem>>, vector<128x128xbf16>
    %cst = arith.constant dense<0.000000e+00> : vector<16x128xf32>
    %5 = tpu.matmul %3, %4, %cst {dimension_numbers = #tpu.dot_dimension_numbers<[1], [0], [0], [1], [0, 0, 1, 1], [], []>} : vector<16x128xbf16>, vector<128x128xbf16>, vector<16x128xf32> -> vector<16x128xf32>
    %c16_i32 = arith.constant 16 : i32
    %6 = arith.muli %arg1, %c16_i32 : i32
    %7 = tpu.iota {dimensions = array<i32: 0>} : vector<16x1xi32>
    %8 = vector.broadcast %6 : i32 to vector<16x1xi32>
    %9 = arith.addi %8, %7 : vector<16x1xi32>
    %c16_i32_4 = arith.constant 16 : i32
    %10 = vector.broadcast %c16_i32_4 : i32 to vector<16x1xi32>
    %11 = arith.cmpi slt, %9, %10 : vector<16x1xi32>
    %12 = arith.extui %2 : i1 to i32
    %c0_i32_5 = arith.constant 0 : i32
    %13 = arith.cmpi ne, %12, %c0_i32_5 : i32
    scf.if %13 {
      %cst_12 = arith.constant 0.000000e+00 : f32
      %25 = vector.shape_cast %11 : vector<16x1xi1> to vector<16x1xi1>
      %26 = vector.broadcast %25 : vector<16x1xi1> to vector<16x128xi1>
      %27 = vector.broadcast %cst_12 : f32 to vector<16x128xf32>
      %28 = arith.select %26, %5, %27 : vector<16x128xi1>, vector<16x128xf32>
      %cst_13 = arith.constant dense<0.000000e+00> : vector<128xf32>
      %29 = vector.multi_reduction <add>, %28, %cst_13 [0] : vector<16x128xf32> to vector<128xf32>
      %30 = vector.shape_cast %29 : vector<128xf32> to vector<1x128xf32>
      %cst_14 = arith.constant 6.250000e-02 : f32
      %31 = vector.broadcast %cst_14 : f32 to vector<1x128xf32>
      %32 = arith.mulf %30, %31 : vector<1x128xf32>
      %c0_15 = arith.constant 0 : index
      %c0_16 = arith.constant 0 : index
      %33 = vector.load %arg7[%c0_15, %c0_16] : memref<1x128xf32, #tpu.memory_space<vmem>>, vector<1x128xf32>
      tpu.vector_store %arg7[%c0_15, %c0_16], %32 {strides = array<i32>} : memref<1x128xf32, #tpu.memory_space<vmem>>, vector<1x128xf32>,
      %cst_17 = arith.constant 0.000000e+00 : f32
      %34 = vector.broadcast %cst_17 : f32 to vector<1x128xf32>
      %c0_18 = arith.constant 0 : index
      %c0_19 = arith.constant 0 : index
      %35 = vector.load %arg8[%c0_18, %c0_19] : memref<1x128xf32, #tpu.memory_space<vmem>>, vector<1x128xf32>
      tpu.vector_store %arg8[%c0_18, %c0_19], %34 {strides = array<i32>} : memref<1x128xf32, #tpu.memory_space<vmem>>, vector<1x128xf32>,
      %cst_20 = arith.constant 0.000000e+00 : f32
      %36 = vector.broadcast %cst_20 : f32 to vector<1x128xf32>
      %c0_21 = arith.constant 0 : index
      %c0_22 = arith.constant 0 : index
      %37 = vector.load %arg9[%c0_21, %c0_22] : memref<1x128xf32, #tpu.memory_space<vmem>>, vector<1x128xf32>
      tpu.vector_store %arg9[%c0_21, %c0_22], %36 {strides = array<i32>} : memref<1x128xf32, #tpu.memory_space<vmem>>, vector<1x128xf32>,
    } else {
    }
    %c0_i32_6 = arith.constant 0 : i32
    %14 = arith.cmpi eq, %arg0, %c0_i32_6 : i32
    %15 = arith.extui %14 : i1 to i32
    %c0_i32_7 = arith.constant 0 : i32
    %16 = arith.cmpi ne, %15, %c0_i32_7 : i32
    scf.if %16 {
      %c0_12 = arith.constant 0 : index
      %c0_13 = arith.constant 0 : index
      %25 = vector.load %arg7[%c0_12, %c0_13] : memref<1x128xf32, #tpu.memory_space<vmem>>, vector<1x128xf32>
      %26 = vector.broadcast %25 : vector<1x128xf32> to vector<16x128xf32>
      %27 = arith.subf %5, %26 : vector<16x128xf32>
      %cst_14 = arith.constant 0.000000e+00 : f32
      %28 = vector.shape_cast %11 : vector<16x1xi1> to vector<16x1xi1>
      %29 = vector.broadcast %28 : vector<16x1xi1> to vector<16x128xi1>
      %30 = vector.broadcast %cst_14 : f32 to vector<16x128xf32>
      %31 = arith.select %29, %27, %30 : vector<16x128xi1>, vector<16x128xf32>
      %c0_15 = arith.constant 0 : index
      %c0_16 = arith.constant 0 : index
      %32 = vector.load %arg8[%c0_15, %c0_16] : memref<1x128xf32, #tpu.memory_space<vmem>>, vector<1x128xf32>
      %cst_17 = arith.constant dense<0.000000e+00> : vector<128xf32>
      %33 = vector.multi_reduction <add>, %31, %cst_17 [0] : vector<16x128xf32> to vector<128xf32>
      %34 = vector.shape_cast %33 : vector<128xf32> to vector<1x128xf32>
      %35 = arith.addf %32, %34 : vector<1x128xf32>
      %c0_18 = arith.constant 0 : index
      %c0_19 = arith.constant 0 : index
      %36 = vector.load %arg8[%c0_18, %c0_19] : memref<1x128xf32, #tpu.memory_space<vmem>>, vector<1x128xf32>
      tpu.vector_store %arg8[%c0_18, %c0_19], %35 {strides = array<i32>} : memref<1x128xf32, #tpu.memory_space<vmem>>, vector<1x128xf32>,
      %c0_20 = arith.constant 0 : index
      %c0_21 = arith.constant 0 : index
      %37 = vector.load %arg9[%c0_20, %c0_21] : memref<1x128xf32, #tpu.memory_space<vmem>>, vector<1x128xf32>
      %38 = arith.mulf %31, %31 : vector<16x128xf32>
      %cst_22 = arith.constant dense<0.000000e+00> : vector<128xf32>
      %39 = vector.multi_reduction <add>, %38, %cst_22 [0] : vector<16x128xf32> to vector<128xf32>
      %40 = vector.shape_cast %39 : vector<128xf32> to vector<1x128xf32>
      %41 = arith.addf %37, %40 : vector<1x128xf32>
      %c0_23 = arith.constant 0 : index
      %c0_24 = arith.constant 0 : index
      %42 = vector.load %arg9[%c0_23, %c0_24] : memref<1x128xf32, #tpu.memory_space<vmem>>, vector<1x128xf32>
      tpu.vector_store %arg9[%c0_23, %c0_24], %41 {strides = array<i32>} : memref<1x128xf32, #tpu.memory_space<vmem>>, vector<1x128xf32>,
    } else {
    }
    %c1_i32 = arith.constant 1 : i32
    %17 = arith.cmpi eq, %arg0, %c1_i32 : i32
    %c0_i32_8 = arith.constant 0 : i32
    %18 = arith.cmpi eq, %arg1, %c0_i32_8 : i32
    %19 = arith.andi %17, %18 : i1
    %20 = arith.extui %19 : i1 to i32
    %c0_i32_9 = arith.constant 0 : i32
    %21 = arith.cmpi ne, %20, %c0_i32_9 : i32
    scf.if %21 {
      %c0_12 = arith.constant 0 : index
      %c0_13 = arith.constant 0 : index
      %25 = vector.load %arg8[%c0_12, %c0_13] : memref<1x128xf32, #tpu.memory_space<vmem>>, vector<1x128xf32>
      %cst_14 = arith.constant 6.250000e-02 : f32
      %26 = vector.broadcast %cst_14 : f32 to vector<1x128xf32>
      %27 = arith.mulf %25, %26 : vector<1x128xf32>
      %c0_15 = arith.constant 0 : index
      %c0_16 = arith.constant 0 : index
      %28 = vector.load %arg7[%c0_15, %c0_16] : memref<1x128xf32, #tpu.memory_space<vmem>>, vector<1x128xf32>
      %29 = arith.addf %28, %27 : vector<1x128xf32>
      %c0_17 = arith.constant 0 : index
      %c0_18 = arith.constant 0 : index
      %30 = vector.load %arg9[%c0_17, %c0_18] : memref<1x128xf32, #tpu.memory_space<vmem>>, vector<1x128xf32>
      %cst_19 = arith.constant 6.250000e-02 : f32
      %31 = vector.broadcast %cst_19 : f32 to vector<1x128xf32>
      %32 = arith.mulf %30, %31 : vector<1x128xf32>
      %33 = arith.mulf %27, %27 : vector<1x128xf32>
      %34 = arith.subf %32, %33 : vector<1x128xf32>
      %cst_20 = arith.constant 0.000000e+00 : f32
      %35 = vector.broadcast %cst_20 : f32 to vector<1x128xf32>
      %36 = arith.maximumf %34, %35 : vector<1x128xf32>
      %c0_21 = arith.constant 0 : index
      %c0_22 = arith.constant 0 : index
      %37 = vector.load %arg4[%c0_21, %c0_22] : memref<1x128xf32, #tpu.memory_space<vmem>>, vector<1x128xf32>
      %cst_23 = arith.constant 9.99999974E-6 : f32
      %38 = vector.broadcast %cst_23 : f32 to vector<1x128xf32>
      %39 = arith.addf %36, %38 : vector<1x128xf32>
      %40 = math.rsqrt %39 : vector<1x128xf32>
      %41 = arith.mulf %37, %40 : vector<1x128xf32>
      %c0_24 = arith.constant 0 : index
      %c0_25 = arith.constant 0 : index
      %42 = vector.load %arg8[%c0_24, %c0_25] : memref<1x128xf32, #tpu.memory_space<vmem>>, vector<1x128xf32>
      tpu.vector_store %arg8[%c0_24, %c0_25], %41 {strides = array<i32>} : memref<1x128xf32, #tpu.memory_space<vmem>>, vector<1x128xf32>,
      %c0_26 = arith.constant 0 : index
      %c0_27 = arith.constant 0 : index
      %43 = vector.load %arg5[%c0_26, %c0_27] : memref<1x128xf32, #tpu.memory_space<vmem>>, vector<1x128xf32>
      %44 = arith.mulf %29, %41 : vector<1x128xf32>
      %45 = arith.subf %43, %44 : vector<1x128xf32>
      %c0_28 = arith.constant 0 : index
      %c0_29 = arith.constant 0 : index
      %46 = vector.load %arg9[%c0_28, %c0_29] : memref<1x128xf32, #tpu.memory_space<vmem>>, vector<1x128xf32>
      tpu.vector_store %arg9[%c0_28, %c0_29], %45 {strides = array<i32>} : memref<1x128xf32, #tpu.memory_space<vmem>>, vector<1x128xf32>,
    } else {
    }
    %c1_i32_10 = arith.constant 1 : i32
    %22 = arith.cmpi eq, %arg0, %c1_i32_10 : i32
    %23 = arith.extui %22 : i1 to i32
    %c0_i32_11 = arith.constant 0 : i32
    %24 = arith.cmpi ne, %23, %c0_i32_11 : i32
    scf.if %24 {
      %c0_12 = arith.constant 0 : index
      %c0_13 = arith.constant 0 : index
      %25 = vector.load %arg8[%c0_12, %c0_13] : memref<1x128xf32, #tpu.memory_space<vmem>>, vector<1x128xf32>
      %26 = vector.broadcast %25 : vector<1x128xf32> to vector<16x128xf32>
      %27 = arith.mulf %5, %26 : vector<16x128xf32>
      %c0_14 = arith.constant 0 : index
      %c0_15 = arith.constant 0 : index
      %28 = vector.load %arg9[%c0_14, %c0_15] : memref<1x128xf32, #tpu.memory_space<vmem>>, vector<1x128xf32>
      %29 = vector.broadcast %28 : vector<1x128xf32> to vector<16x128xf32>
      %30 = arith.addf %27, %29 : vector<16x128xf32>
      %cst_16 = arith.constant 0.000000e+00 : f32
      %31 = vector.broadcast %cst_16 : f32 to vector<16x128xf32>
      %32 = arith.maximumf %30, %31 : vector<16x128xf32>
      %33 = arith.truncf %32 : vector<16x128xf32> to vector<16x128xbf16>
      %c0_17 = arith.constant 0 : index
      %c0_18 = arith.constant 0 : index
      %34 = vector.load %arg6[%c0_17, %c0_18] : memref<16x128xbf16, #tpu.memory_space<vmem>>, vector<16x128xbf16>
      tpu.vector_store %arg6[%c0_17, %c0_18], %33 {strides = array<i32>} : memref<16x128xbf16, #tpu.memory_space<vmem>>, vector<16x128xbf16>,
    } else {
    }
    return
  }
  func.func @transform_0(%arg0: i32, %arg1: i32) -> (i32, i32) {
    %c0_i32 = arith.constant 0 : i32
    %c0_i32_0 = arith.constant 0 : i32
    return %arg1, %c0_i32 : i32, i32
  }
  func.func @transform_1(%arg0: i32, %arg1: i32) -> (i32, i32) {
    %c0_i32 = arith.constant 0 : i32
    %c0_i32_0 = arith.constant 0 : i32
    %c0_i32_1 = arith.constant 0 : i32
    return %c0_i32, %c0_i32_0 : i32, i32
  }
  func.func @transform_2(%arg0: i32, %arg1: i32) -> (i32, i32) {
    %c0_i32 = arith.constant 0 : i32
    %c0_i32_0 = arith.constant 0 : i32
    %c0_i32_1 = arith.constant 0 : i32
    return %c0_i32, %c0_i32_0 : i32, i32
  }
  func.func @transform_3(%arg0: i32, %arg1: i32) -> (i32, i32) {
    %c0_i32 = arith.constant 0 : i32
    %c0_i32_0 = arith.constant 0 : i32
    %c0_i32_1 = arith.constant 0 : i32
    return %c0_i32, %c0_i32_0 : i32, i32
  }
  func.func @transform_4(%arg0: i32, %arg1: i32) -> (i32, i32) {
    %0 = arith.muli %arg0, %arg1 : i32
    %c0_i32 = arith.constant 0 : i32
    %c0_i32_0 = arith.constant 0 : i32
    return %0, %c0_i32 : i32, i32
  }
}

module attributes {stable_mosaic.version = 11 : i64} {
  func.func @kernel(%arg0: i32, %arg1: i32, %arg2: memref<16x128xbf16, #tpu.memory_space<vmem>>, %arg3: memref<128x128xbf16, #tpu.memory_space<vmem>>, %arg4: memref<1x128xf32, #tpu.memory_space<vmem>>, %arg5: memref<1x128xf32, #tpu.memory_space<vmem>>, %arg6: memref<128x128xbf16, #tpu.memory_space<vmem>>, %arg7: memref<1x128xf32, #tpu.memory_space<vmem>>, %arg8: memref<16x128xf32, #tpu.memory_space<vmem>>, %arg9: memref<1x128xf32, #tpu.memory_space<vmem>>, %arg10: memref<1x128xf32, #tpu.memory_space<vmem>>, %arg11: memref<1x128xf32, #tpu.memory_space<vmem>>) attributes {dimension_semantics = [#tpu.dimension_semantics<arbitrary>, #tpu.dimension_semantics<arbitrary>], iteration_bounds = array<i64: 2, 1>, scalar_prefetch = 0 : i64, scratch_operands = 3 : i64, tpu.core_type = #tpu.core_type<tc>, window_params = [{transform_indices = @transform_0, window_bounds = array<i64: 16, 128>}, {pipeline_mode = #tpu.pipeline_mode<synchronous>, transform_indices = @transform_1, window_bounds = array<i64: 128, 128>}, {pipeline_mode = #tpu.pipeline_mode<synchronous>, transform_indices = @transform_2, window_bounds = array<i64: 1, 128>}, {pipeline_mode = #tpu.pipeline_mode<synchronous>, transform_indices = @transform_3, window_bounds = array<i64: 1, 128>}, {pipeline_mode = #tpu.pipeline_mode<synchronous>, transform_indices = @transform_4, window_bounds = array<i64: 128, 128>}, {pipeline_mode = #tpu.pipeline_mode<synchronous>, transform_indices = @transform_5, window_bounds = array<i64: 1, 128>}, {transform_indices = @transform_6, window_bounds = array<i64: 16, 128>}]} {
    %c0_i32 = arith.constant 0 : i32
    %0 = arith.cmpi eq, %arg0, %c0_i32 : i32
    %c0_i32_0 = arith.constant 0 : i32
    %1 = arith.cmpi eq, %arg1, %c0_i32_0 : i32
    %2 = arith.andi %0, %1 : i1
    %c0 = arith.constant 0 : index
    %c0_1 = arith.constant 0 : index
    %3 = vector.load %arg2[%c0, %c0_1] : memref<16x128xbf16, #tpu.memory_space<vmem>>, vector<16x128xbf16>
    %c0_2 = arith.constant 0 : index
    %c0_3 = arith.constant 0 : index
    %4 = vector.load %arg3[%c0_2, %c0_3] : memref<128x128xbf16, #tpu.memory_space<vmem>>, vector<128x128xbf16>
    %cst = arith.constant dense<0.000000e+00> : vector<16x128xf32>
    %5 = tpu.matmul %3, %4, %cst {dimension_numbers = #tpu.dot_dimension_numbers<[1], [0], [0], [1], [0, 0, 1, 1], [], []>} : vector<16x128xbf16>, vector<128x128xbf16>, vector<16x128xf32> -> vector<16x128xf32>
    %c16_i32 = arith.constant 16 : i32
    %6 = arith.muli %arg1, %c16_i32 : i32
    %7 = tpu.iota {dimensions = array<i32: 0>} : vector<16x1xi32>
    %8 = vector.broadcast %6 : i32 to vector<16x1xi32>
    %9 = arith.addi %8, %7 : vector<16x1xi32>
    %c16_i32_4 = arith.constant 16 : i32
    %10 = vector.broadcast %c16_i32_4 : i32 to vector<16x1xi32>
    %11 = arith.cmpi slt, %9, %10 : vector<16x1xi32>
    %12 = arith.extui %2 : i1 to i32
    %c0_i32_5 = arith.constant 0 : i32
    %13 = arith.cmpi ne, %12, %c0_i32_5 : i32
    scf.if %13 {
      %cst_12 = arith.constant 0.000000e+00 : f32
      %25 = vector.shape_cast %11 : vector<16x1xi1> to vector<16x1xi1>
      %26 = vector.broadcast %25 : vector<16x1xi1> to vector<16x128xi1>
      %27 = vector.broadcast %cst_12 : f32 to vector<16x128xf32>
      %28 = arith.select %26, %5, %27 : vector<16x128xi1>, vector<16x128xf32>
      %cst_13 = arith.constant dense<0.000000e+00> : vector<128xf32>
      %29 = vector.multi_reduction <add>, %28, %cst_13 [0] : vector<16x128xf32> to vector<128xf32>
      %30 = vector.shape_cast %29 : vector<128xf32> to vector<1x128xf32>
      %cst_14 = arith.constant 6.250000e-02 : f32
      %31 = vector.broadcast %cst_14 : f32 to vector<1x128xf32>
      %32 = arith.mulf %30, %31 : vector<1x128xf32>
      %c0_15 = arith.constant 0 : index
      %c0_16 = arith.constant 0 : index
      %33 = vector.load %arg9[%c0_15, %c0_16] : memref<1x128xf32, #tpu.memory_space<vmem>>, vector<1x128xf32>
      tpu.vector_store %arg9[%c0_15, %c0_16], %32 {strides = array<i32>} : memref<1x128xf32, #tpu.memory_space<vmem>>, vector<1x128xf32>,
      %cst_17 = arith.constant 0.000000e+00 : f32
      %34 = vector.broadcast %cst_17 : f32 to vector<1x128xf32>
      %c0_18 = arith.constant 0 : index
      %c0_19 = arith.constant 0 : index
      %35 = vector.load %arg10[%c0_18, %c0_19] : memref<1x128xf32, #tpu.memory_space<vmem>>, vector<1x128xf32>
      tpu.vector_store %arg10[%c0_18, %c0_19], %34 {strides = array<i32>} : memref<1x128xf32, #tpu.memory_space<vmem>>, vector<1x128xf32>,
      %cst_20 = arith.constant 0.000000e+00 : f32
      %36 = vector.broadcast %cst_20 : f32 to vector<1x128xf32>
      %c0_21 = arith.constant 0 : index
      %c0_22 = arith.constant 0 : index
      %37 = vector.load %arg11[%c0_21, %c0_22] : memref<1x128xf32, #tpu.memory_space<vmem>>, vector<1x128xf32>
      tpu.vector_store %arg11[%c0_21, %c0_22], %36 {strides = array<i32>} : memref<1x128xf32, #tpu.memory_space<vmem>>, vector<1x128xf32>,
    } else {
    }
    %c0_i32_6 = arith.constant 0 : i32
    %14 = arith.cmpi eq, %arg0, %c0_i32_6 : i32
    %15 = arith.extui %14 : i1 to i32
    %c0_i32_7 = arith.constant 0 : i32
    %16 = arith.cmpi ne, %15, %c0_i32_7 : i32
    scf.if %16 {
      %c0_12 = arith.constant 0 : index
      %c0_13 = arith.constant 0 : index
      %25 = vector.load %arg9[%c0_12, %c0_13] : memref<1x128xf32, #tpu.memory_space<vmem>>, vector<1x128xf32>
      %26 = vector.broadcast %25 : vector<1x128xf32> to vector<16x128xf32>
      %27 = arith.subf %5, %26 : vector<16x128xf32>
      %cst_14 = arith.constant 0.000000e+00 : f32
      %28 = vector.shape_cast %11 : vector<16x1xi1> to vector<16x1xi1>
      %29 = vector.broadcast %28 : vector<16x1xi1> to vector<16x128xi1>
      %30 = vector.broadcast %cst_14 : f32 to vector<16x128xf32>
      %31 = arith.select %29, %27, %30 : vector<16x128xi1>, vector<16x128xf32>
      %c0_15 = arith.constant 0 : index
      %c0_16 = arith.constant 0 : index
      %32 = vector.load %arg10[%c0_15, %c0_16] : memref<1x128xf32, #tpu.memory_space<vmem>>, vector<1x128xf32>
      %cst_17 = arith.constant dense<0.000000e+00> : vector<128xf32>
      %33 = vector.multi_reduction <add>, %31, %cst_17 [0] : vector<16x128xf32> to vector<128xf32>
      %34 = vector.shape_cast %33 : vector<128xf32> to vector<1x128xf32>
      %35 = arith.addf %32, %34 : vector<1x128xf32>
      %c0_18 = arith.constant 0 : index
      %c0_19 = arith.constant 0 : index
      %36 = vector.load %arg10[%c0_18, %c0_19] : memref<1x128xf32, #tpu.memory_space<vmem>>, vector<1x128xf32>
      tpu.vector_store %arg10[%c0_18, %c0_19], %35 {strides = array<i32>} : memref<1x128xf32, #tpu.memory_space<vmem>>, vector<1x128xf32>,
      %c0_20 = arith.constant 0 : index
      %c0_21 = arith.constant 0 : index
      %37 = vector.load %arg11[%c0_20, %c0_21] : memref<1x128xf32, #tpu.memory_space<vmem>>, vector<1x128xf32>
      %38 = arith.mulf %31, %31 : vector<16x128xf32>
      %cst_22 = arith.constant dense<0.000000e+00> : vector<128xf32>
      %39 = vector.multi_reduction <add>, %38, %cst_22 [0] : vector<16x128xf32> to vector<128xf32>
      %40 = vector.shape_cast %39 : vector<128xf32> to vector<1x128xf32>
      %41 = arith.addf %37, %40 : vector<1x128xf32>
      %c0_23 = arith.constant 0 : index
      %c0_24 = arith.constant 0 : index
      %42 = vector.load %arg11[%c0_23, %c0_24] : memref<1x128xf32, #tpu.memory_space<vmem>>, vector<1x128xf32>
      tpu.vector_store %arg11[%c0_23, %c0_24], %41 {strides = array<i32>} : memref<1x128xf32, #tpu.memory_space<vmem>>, vector<1x128xf32>,
    } else {
    }
    %c1_i32 = arith.constant 1 : i32
    %17 = arith.cmpi eq, %arg0, %c1_i32 : i32
    %c0_i32_8 = arith.constant 0 : i32
    %18 = arith.cmpi eq, %arg1, %c0_i32_8 : i32
    %19 = arith.andi %17, %18 : i1
    %20 = arith.extui %19 : i1 to i32
    %c0_i32_9 = arith.constant 0 : i32
    %21 = arith.cmpi ne, %20, %c0_i32_9 : i32
    scf.if %21 {
      %c0_12 = arith.constant 0 : index
      %c0_13 = arith.constant 0 : index
      %25 = vector.load %arg10[%c0_12, %c0_13] : memref<1x128xf32, #tpu.memory_space<vmem>>, vector<1x128xf32>
      %cst_14 = arith.constant 6.250000e-02 : f32
      %26 = vector.broadcast %cst_14 : f32 to vector<1x128xf32>
      %27 = arith.mulf %25, %26 : vector<1x128xf32>
      %c0_15 = arith.constant 0 : index
      %c0_16 = arith.constant 0 : index
      %28 = vector.load %arg9[%c0_15, %c0_16] : memref<1x128xf32, #tpu.memory_space<vmem>>, vector<1x128xf32>
      %29 = arith.addf %28, %27 : vector<1x128xf32>
      %c0_17 = arith.constant 0 : index
      %c0_18 = arith.constant 0 : index
      %30 = vector.load %arg11[%c0_17, %c0_18] : memref<1x128xf32, #tpu.memory_space<vmem>>, vector<1x128xf32>
      %cst_19 = arith.constant 6.250000e-02 : f32
      %31 = vector.broadcast %cst_19 : f32 to vector<1x128xf32>
      %32 = arith.mulf %30, %31 : vector<1x128xf32>
      %33 = arith.mulf %27, %27 : vector<1x128xf32>
      %34 = arith.subf %32, %33 : vector<1x128xf32>
      %cst_20 = arith.constant 0.000000e+00 : f32
      %35 = vector.broadcast %cst_20 : f32 to vector<1x128xf32>
      %36 = arith.maximumf %34, %35 : vector<1x128xf32>
      %c0_21 = arith.constant 0 : index
      %c0_22 = arith.constant 0 : index
      %37 = vector.load %arg4[%c0_21, %c0_22] : memref<1x128xf32, #tpu.memory_space<vmem>>, vector<1x128xf32>
      %cst_23 = arith.constant 9.99999974E-6 : f32
      %38 = vector.broadcast %cst_23 : f32 to vector<1x128xf32>
      %39 = arith.addf %36, %38 : vector<1x128xf32>
      %40 = math.rsqrt %39 : vector<1x128xf32>
      %41 = arith.mulf %37, %40 : vector<1x128xf32>
      %c0_24 = arith.constant 0 : index
      %c0_25 = arith.constant 0 : index
      %42 = vector.load %arg10[%c0_24, %c0_25] : memref<1x128xf32, #tpu.memory_space<vmem>>, vector<1x128xf32>
      tpu.vector_store %arg10[%c0_24, %c0_25], %41 {strides = array<i32>} : memref<1x128xf32, #tpu.memory_space<vmem>>, vector<1x128xf32>,
      %c0_26 = arith.constant 0 : index
      %c0_27 = arith.constant 0 : index
      %43 = vector.load %arg5[%c0_26, %c0_27] : memref<1x128xf32, #tpu.memory_space<vmem>>, vector<1x128xf32>
      %44 = arith.mulf %29, %41 : vector<1x128xf32>
      %45 = arith.subf %43, %44 : vector<1x128xf32>
      %c0_28 = arith.constant 0 : index
      %c0_29 = arith.constant 0 : index
      %46 = vector.load %arg11[%c0_28, %c0_29] : memref<1x128xf32, #tpu.memory_space<vmem>>, vector<1x128xf32>
      tpu.vector_store %arg11[%c0_28, %c0_29], %45 {strides = array<i32>} : memref<1x128xf32, #tpu.memory_space<vmem>>, vector<1x128xf32>,
    } else {
    }
    %c1_i32_10 = arith.constant 1 : i32
    %22 = arith.cmpi eq, %arg0, %c1_i32_10 : i32
    %23 = arith.extui %22 : i1 to i32
    %c0_i32_11 = arith.constant 0 : i32
    %24 = arith.cmpi ne, %23, %c0_i32_11 : i32
    scf.if %24 {
      %c0_12 = arith.constant 0 : index
      %c0_13 = arith.constant 0 : index
      %25 = vector.load %arg10[%c0_12, %c0_13] : memref<1x128xf32, #tpu.memory_space<vmem>>, vector<1x128xf32>
      %26 = vector.broadcast %25 : vector<1x128xf32> to vector<16x128xf32>
      %27 = arith.mulf %5, %26 : vector<16x128xf32>
      %c0_14 = arith.constant 0 : index
      %c0_15 = arith.constant 0 : index
      %28 = vector.load %arg11[%c0_14, %c0_15] : memref<1x128xf32, #tpu.memory_space<vmem>>, vector<1x128xf32>
      %29 = vector.broadcast %28 : vector<1x128xf32> to vector<16x128xf32>
      %30 = arith.addf %27, %29 : vector<16x128xf32>
      %cst_16 = arith.constant 0.000000e+00 : f32
      %31 = vector.broadcast %cst_16 : f32 to vector<16x128xf32>
      %32 = arith.maximumf %30, %31 : vector<16x128xf32>
      %33 = arith.truncf %32 : vector<16x128xf32> to vector<16x128xbf16>
      %c0_17 = arith.constant 0 : index
      %c0_18 = arith.constant 0 : index
      %34 = vector.load %arg6[%c0_17, %c0_18] : memref<128x128xbf16, #tpu.memory_space<vmem>>, vector<128x128xbf16>
      %cst_19 = arith.constant dense<0.000000e+00> : vector<16x128xf32>
      %35 = tpu.matmul %33, %34, %cst_19 {dimension_numbers = #tpu.dot_dimension_numbers<[1], [0], [0], [1], [0, 0, 1, 1], [], []>} : vector<16x128xbf16>, vector<128x128xbf16>, vector<16x128xf32> -> vector<16x128xf32>
      %c0_20 = arith.constant 0 : index
      %c0_21 = arith.constant 0 : index
      %36 = vector.load %arg7[%c0_20, %c0_21] : memref<1x128xf32, #tpu.memory_space<vmem>>, vector<1x128xf32>
      %37 = vector.broadcast %36 : vector<1x128xf32> to vector<16x128xf32>
      %38 = arith.addf %35, %37 : vector<16x128xf32>
      %c0_22 = arith.constant 0 : index
      %c0_23 = arith.constant 0 : index
      %39 = vector.load %arg8[%c0_22, %c0_23] : memref<16x128xf32, #tpu.memory_space<vmem>>, vector<16x128xf32>
      tpu.vector_store %arg8[%c0_22, %c0_23], %38 {strides = array<i32>} : memref<16x128xf32, #tpu.memory_space<vmem>>, vector<16x128xf32>,
    } else {
    }
    return
  }
  func.func @transform_0(%arg0: i32, %arg1: i32) -> (i32, i32) {
    %c0_i32 = arith.constant 0 : i32
    %c0_i32_0 = arith.constant 0 : i32
    return %arg1, %c0_i32 : i32, i32
  }
  func.func @transform_1(%arg0: i32, %arg1: i32) -> (i32, i32) {
    %c0_i32 = arith.constant 0 : i32
    %c0_i32_0 = arith.constant 0 : i32
    %c0_i32_1 = arith.constant 0 : i32
    return %c0_i32, %c0_i32_0 : i32, i32
  }
  func.func @transform_2(%arg0: i32, %arg1: i32) -> (i32, i32) {
    %c0_i32 = arith.constant 0 : i32
    %c0_i32_0 = arith.constant 0 : i32
    %c0_i32_1 = arith.constant 0 : i32
    return %c0_i32, %c0_i32_0 : i32, i32
  }
  func.func @transform_3(%arg0: i32, %arg1: i32) -> (i32, i32) {
    %c0_i32 = arith.constant 0 : i32
    %c0_i32_0 = arith.constant 0 : i32
    %c0_i32_1 = arith.constant 0 : i32
    return %c0_i32, %c0_i32_0 : i32, i32
  }
  func.func @transform_4(%arg0: i32, %arg1: i32) -> (i32, i32) {
    %c0_i32 = arith.constant 0 : i32
    %c0_i32_0 = arith.constant 0 : i32
    %c0_i32_1 = arith.constant 0 : i32
    return %c0_i32, %c0_i32_0 : i32, i32
  }
  func.func @transform_5(%arg0: i32, %arg1: i32) -> (i32, i32) {
    %c0_i32 = arith.constant 0 : i32
    %c0_i32_0 = arith.constant 0 : i32
    %c0_i32_1 = arith.constant 0 : i32
    return %c0_i32, %c0_i32_0 : i32, i32
  }
  func.func @transform_6(%arg0: i32, %arg1: i32) -> (i32, i32) {
    %0 = arith.muli %arg0, %arg1 : i32
    %c0_i32 = arith.constant 0 : i32
    %c0_i32_0 = arith.constant 0 : i32
    return %0, %c0_i32 : i32, i32
  }
}

module attributes {stable_mosaic.version = 11 : i64} {
  func.func @kernel(%arg0: i32, %arg1: i32, %arg2: memref<16x128xbf16, #tpu.memory_space<vmem>>, %arg3: memref<128x128xbf16, #tpu.memory_space<vmem>>, %arg4: memref<1x128xf32, #tpu.memory_space<vmem>>, %arg5: memref<1x128xf32, #tpu.memory_space<vmem>>, %arg6: memref<16x8xf32, #tpu.memory_space<vmem>>, %arg7: memref<8x128xbf16, #tpu.memory_space<vmem>>, %arg8: memref<128x128xbf16, #tpu.memory_space<vmem>>, %arg9: memref<16x128xbf16, #tpu.memory_space<vmem>>, %arg10: memref<1x128xf32, #tpu.memory_space<vmem>>, %arg11: memref<1x128xf32, #tpu.memory_space<vmem>>, %arg12: memref<1x128xf32, #tpu.memory_space<vmem>>, %arg13: memref<8x128xf32, #tpu.memory_space<vmem>>) attributes {dimension_semantics = [#tpu.dimension_semantics<arbitrary>, #tpu.dimension_semantics<arbitrary>], iteration_bounds = array<i64: 2, 1>, scalar_prefetch = 0 : i64, scratch_operands = 4 : i64, tpu.core_type = #tpu.core_type<tc>, window_params = [{transform_indices = @transform_0, window_bounds = array<i64: 16, 128>}, {pipeline_mode = #tpu.pipeline_mode<synchronous>, transform_indices = @transform_1, window_bounds = array<i64: 128, 128>}, {pipeline_mode = #tpu.pipeline_mode<synchronous>, transform_indices = @transform_2, window_bounds = array<i64: 1, 128>}, {pipeline_mode = #tpu.pipeline_mode<synchronous>, transform_indices = @transform_3, window_bounds = array<i64: 1, 128>}, {transform_indices = @transform_4, window_bounds = array<i64: 16, 8>}, {pipeline_mode = #tpu.pipeline_mode<synchronous>, transform_indices = @transform_5, window_bounds = array<i64: 8, 128>}, {pipeline_mode = #tpu.pipeline_mode<synchronous>, transform_indices = @transform_6, window_bounds = array<i64: 128, 128>}, {transform_indices = @transform_7, window_bounds = array<i64: 16, 128>}]} {
    %c0_i32 = arith.constant 0 : i32
    %0 = arith.cmpi eq, %arg0, %c0_i32 : i32
    %c0_i32_0 = arith.constant 0 : i32
    %1 = arith.cmpi eq, %arg1, %c0_i32_0 : i32
    %2 = arith.andi %0, %1 : i1
    %c0 = arith.constant 0 : index
    %c0_1 = arith.constant 0 : index
    %3 = vector.load %arg2[%c0, %c0_1] : memref<16x128xbf16, #tpu.memory_space<vmem>>, vector<16x128xbf16>
    %c0_2 = arith.constant 0 : index
    %c0_3 = arith.constant 0 : index
    %4 = vector.load %arg3[%c0_2, %c0_3] : memref<128x128xbf16, #tpu.memory_space<vmem>>, vector<128x128xbf16>
    %cst = arith.constant dense<0.000000e+00> : vector<16x128xf32>
    %5 = tpu.matmul %3, %4, %cst {dimension_numbers = #tpu.dot_dimension_numbers<[1], [0], [0], [1], [0, 0, 1, 1], [], []>} : vector<16x128xbf16>, vector<128x128xbf16>, vector<16x128xf32> -> vector<16x128xf32>
    %6 = arith.extui %2 : i1 to i32
    %c0_i32_4 = arith.constant 0 : i32
    %7 = arith.cmpi ne, %6, %c0_i32_4 : i32
    scf.if %7 {
      %c0_18 = arith.constant 0 : index
      %c0_19 = arith.constant 0 : index
      %31 = vector.load %arg7[%c0_18, %c0_19] : memref<8x128xbf16, #tpu.memory_space<vmem>>, vector<8x128xbf16>
      %c0_20 = arith.constant 0 : index
      %c0_21 = arith.constant 0 : index
      %32 = vector.load %arg8[%c0_20, %c0_21] : memref<128x128xbf16, #tpu.memory_space<vmem>>, vector<128x128xbf16>
      %cst_22 = arith.constant dense<0.000000e+00> : vector<8x128xf32>
      %33 = tpu.matmul %31, %32, %cst_22 {dimension_numbers = #tpu.dot_dimension_numbers<[1], [0], [0], [1], [0, 0, 1, 1], [], []>} : vector<8x128xbf16>, vector<128x128xbf16>, vector<8x128xf32> -> vector<8x128xf32>
      %c0_23 = arith.constant 0 : index
      %c0_24 = arith.constant 0 : index
      %34 = vector.load %arg13[%c0_23, %c0_24] : memref<8x128xf32, #tpu.memory_space<vmem>>, vector<8x128xf32>
      tpu.vector_store %arg13[%c0_23, %c0_24], %33 {strides = array<i32>} : memref<8x128xf32, #tpu.memory_space<vmem>>, vector<8x128xf32>,
    } else {
    }
    %c0_5 = arith.constant 0 : index
    %c0_6 = arith.constant 0 : index
    %8 = vector.load %arg6[%c0_5, %c0_6] : memref<16x8xf32, #tpu.memory_space<vmem>>, vector<16x8xf32>
    %c0_7 = arith.constant 0 : index
    %c0_8 = arith.constant 0 : index
    %9 = vector.load %arg13[%c0_7, %c0_8] : memref<8x128xf32, #tpu.memory_space<vmem>>, vector<8x128xf32>
    %cst_9 = arith.constant dense<0.000000e+00> : vector<16x128xf32>
    %10 = tpu.matmul %8, %9, %cst_9 {dimension_numbers = #tpu.dot_dimension_numbers<[1], [0], [0], [1], [0, 0, 1, 1], [], []>} : vector<16x8xf32>, vector<8x128xf32>, vector<16x128xf32> -> vector<16x128xf32>
    %11 = arith.addf %5, %10 : vector<16x128xf32>
    %c16_i32 = arith.constant 16 : i32
    %12 = arith.muli %arg1, %c16_i32 : i32
    %13 = tpu.iota {dimensions = array<i32: 0>} : vector<16x1xi32>
    %14 = vector.broadcast %12 : i32 to vector<16x1xi32>
    %15 = arith.addi %14, %13 : vector<16x1xi32>
    %c16_i32_10 = arith.constant 16 : i32
    %16 = vector.broadcast %c16_i32_10 : i32 to vector<16x1xi32>
    %17 = arith.cmpi slt, %15, %16 : vector<16x1xi32>
    %18 = arith.extui %2 : i1 to i32
    %c0_i32_11 = arith.constant 0 : i32
    %19 = arith.cmpi ne, %18, %c0_i32_11 : i32
    scf.if %19 {
      %cst_18 = arith.constant 0.000000e+00 : f32
      %31 = vector.shape_cast %17 : vector<16x1xi1> to vector<16x1xi1>
      %32 = vector.broadcast %31 : vector<16x1xi1> to vector<16x128xi1>
      %33 = vector.broadcast %cst_18 : f32 to vector<16x128xf32>
      %34 = arith.select %32, %11, %33 : vector<16x128xi1>, vector<16x128xf32>
      %cst_19 = arith.constant dense<0.000000e+00> : vector<128xf32>
      %35 = vector.multi_reduction <add>, %34, %cst_19 [0] : vector<16x128xf32> to vector<128xf32>
      %36 = vector.shape_cast %35 : vector<128xf32> to vector<1x128xf32>
      %cst_20 = arith.constant 6.250000e-02 : f32
      %37 = vector.broadcast %cst_20 : f32 to vector<1x128xf32>
      %38 = arith.mulf %36, %37 : vector<1x128xf32>
      %c0_21 = arith.constant 0 : index
      %c0_22 = arith.constant 0 : index
      %39 = vector.load %arg10[%c0_21, %c0_22] : memref<1x128xf32, #tpu.memory_space<vmem>>, vector<1x128xf32>
      tpu.vector_store %arg10[%c0_21, %c0_22], %38 {strides = array<i32>} : memref<1x128xf32, #tpu.memory_space<vmem>>, vector<1x128xf32>,
      %cst_23 = arith.constant 0.000000e+00 : f32
      %40 = vector.broadcast %cst_23 : f32 to vector<1x128xf32>
      %c0_24 = arith.constant 0 : index
      %c0_25 = arith.constant 0 : index
      %41 = vector.load %arg11[%c0_24, %c0_25] : memref<1x128xf32, #tpu.memory_space<vmem>>, vector<1x128xf32>
      tpu.vector_store %arg11[%c0_24, %c0_25], %40 {strides = array<i32>} : memref<1x128xf32, #tpu.memory_space<vmem>>, vector<1x128xf32>,
      %cst_26 = arith.constant 0.000000e+00 : f32
      %42 = vector.broadcast %cst_26 : f32 to vector<1x128xf32>
      %c0_27 = arith.constant 0 : index
      %c0_28 = arith.constant 0 : index
      %43 = vector.load %arg12[%c0_27, %c0_28] : memref<1x128xf32, #tpu.memory_space<vmem>>, vector<1x128xf32>
      tpu.vector_store %arg12[%c0_27, %c0_28], %42 {strides = array<i32>} : memref<1x128xf32, #tpu.memory_space<vmem>>, vector<1x128xf32>,
    } else {
    }
    %c0_i32_12 = arith.constant 0 : i32
    %20 = arith.cmpi eq, %arg0, %c0_i32_12 : i32
    %21 = arith.extui %20 : i1 to i32
    %c0_i32_13 = arith.constant 0 : i32
    %22 = arith.cmpi ne, %21, %c0_i32_13 : i32
    scf.if %22 {
      %c0_18 = arith.constant 0 : index
      %c0_19 = arith.constant 0 : index
      %31 = vector.load %arg10[%c0_18, %c0_19] : memref<1x128xf32, #tpu.memory_space<vmem>>, vector<1x128xf32>
      %32 = vector.broadcast %31 : vector<1x128xf32> to vector<16x128xf32>
      %33 = arith.subf %11, %32 : vector<16x128xf32>
      %cst_20 = arith.constant 0.000000e+00 : f32
      %34 = vector.shape_cast %17 : vector<16x1xi1> to vector<16x1xi1>
      %35 = vector.broadcast %34 : vector<16x1xi1> to vector<16x128xi1>
      %36 = vector.broadcast %cst_20 : f32 to vector<16x128xf32>
      %37 = arith.select %35, %33, %36 : vector<16x128xi1>, vector<16x128xf32>
      %c0_21 = arith.constant 0 : index
      %c0_22 = arith.constant 0 : index
      %38 = vector.load %arg11[%c0_21, %c0_22] : memref<1x128xf32, #tpu.memory_space<vmem>>, vector<1x128xf32>
      %cst_23 = arith.constant dense<0.000000e+00> : vector<128xf32>
      %39 = vector.multi_reduction <add>, %37, %cst_23 [0] : vector<16x128xf32> to vector<128xf32>
      %40 = vector.shape_cast %39 : vector<128xf32> to vector<1x128xf32>
      %41 = arith.addf %38, %40 : vector<1x128xf32>
      %c0_24 = arith.constant 0 : index
      %c0_25 = arith.constant 0 : index
      %42 = vector.load %arg11[%c0_24, %c0_25] : memref<1x128xf32, #tpu.memory_space<vmem>>, vector<1x128xf32>
      tpu.vector_store %arg11[%c0_24, %c0_25], %41 {strides = array<i32>} : memref<1x128xf32, #tpu.memory_space<vmem>>, vector<1x128xf32>,
      %c0_26 = arith.constant 0 : index
      %c0_27 = arith.constant 0 : index
      %43 = vector.load %arg12[%c0_26, %c0_27] : memref<1x128xf32, #tpu.memory_space<vmem>>, vector<1x128xf32>
      %44 = arith.mulf %37, %37 : vector<16x128xf32>
      %cst_28 = arith.constant dense<0.000000e+00> : vector<128xf32>
      %45 = vector.multi_reduction <add>, %44, %cst_28 [0] : vector<16x128xf32> to vector<128xf32>
      %46 = vector.shape_cast %45 : vector<128xf32> to vector<1x128xf32>
      %47 = arith.addf %43, %46 : vector<1x128xf32>
      %c0_29 = arith.constant 0 : index
      %c0_30 = arith.constant 0 : index
      %48 = vector.load %arg12[%c0_29, %c0_30] : memref<1x128xf32, #tpu.memory_space<vmem>>, vector<1x128xf32>
      tpu.vector_store %arg12[%c0_29, %c0_30], %47 {strides = array<i32>} : memref<1x128xf32, #tpu.memory_space<vmem>>, vector<1x128xf32>,
    } else {
    }
    %c1_i32 = arith.constant 1 : i32
    %23 = arith.cmpi eq, %arg0, %c1_i32 : i32
    %c0_i32_14 = arith.constant 0 : i32
    %24 = arith.cmpi eq, %arg1, %c0_i32_14 : i32
    %25 = arith.andi %23, %24 : i1
    %26 = arith.extui %25 : i1 to i32
    %c0_i32_15 = arith.constant 0 : i32
    %27 = arith.cmpi ne, %26, %c0_i32_15 : i32
    scf.if %27 {
      %c0_18 = arith.constant 0 : index
      %c0_19 = arith.constant 0 : index
      %31 = vector.load %arg11[%c0_18, %c0_19] : memref<1x128xf32, #tpu.memory_space<vmem>>, vector<1x128xf32>
      %cst_20 = arith.constant 6.250000e-02 : f32
      %32 = vector.broadcast %cst_20 : f32 to vector<1x128xf32>
      %33 = arith.mulf %31, %32 : vector<1x128xf32>
      %c0_21 = arith.constant 0 : index
      %c0_22 = arith.constant 0 : index
      %34 = vector.load %arg10[%c0_21, %c0_22] : memref<1x128xf32, #tpu.memory_space<vmem>>, vector<1x128xf32>
      %35 = arith.addf %34, %33 : vector<1x128xf32>
      %c0_23 = arith.constant 0 : index
      %c0_24 = arith.constant 0 : index
      %36 = vector.load %arg12[%c0_23, %c0_24] : memref<1x128xf32, #tpu.memory_space<vmem>>, vector<1x128xf32>
      %cst_25 = arith.constant 6.250000e-02 : f32
      %37 = vector.broadcast %cst_25 : f32 to vector<1x128xf32>
      %38 = arith.mulf %36, %37 : vector<1x128xf32>
      %39 = arith.mulf %33, %33 : vector<1x128xf32>
      %40 = arith.subf %38, %39 : vector<1x128xf32>
      %cst_26 = arith.constant 0.000000e+00 : f32
      %41 = vector.broadcast %cst_26 : f32 to vector<1x128xf32>
      %42 = arith.maximumf %40, %41 : vector<1x128xf32>
      %c0_27 = arith.constant 0 : index
      %c0_28 = arith.constant 0 : index
      %43 = vector.load %arg4[%c0_27, %c0_28] : memref<1x128xf32, #tpu.memory_space<vmem>>, vector<1x128xf32>
      %cst_29 = arith.constant 9.99999974E-6 : f32
      %44 = vector.broadcast %cst_29 : f32 to vector<1x128xf32>
      %45 = arith.addf %42, %44 : vector<1x128xf32>
      %46 = math.rsqrt %45 : vector<1x128xf32>
      %47 = arith.mulf %43, %46 : vector<1x128xf32>
      %c0_30 = arith.constant 0 : index
      %c0_31 = arith.constant 0 : index
      %48 = vector.load %arg11[%c0_30, %c0_31] : memref<1x128xf32, #tpu.memory_space<vmem>>, vector<1x128xf32>
      tpu.vector_store %arg11[%c0_30, %c0_31], %47 {strides = array<i32>} : memref<1x128xf32, #tpu.memory_space<vmem>>, vector<1x128xf32>,
      %c0_32 = arith.constant 0 : index
      %c0_33 = arith.constant 0 : index
      %49 = vector.load %arg5[%c0_32, %c0_33] : memref<1x128xf32, #tpu.memory_space<vmem>>, vector<1x128xf32>
      %50 = arith.mulf %35, %47 : vector<1x128xf32>
      %51 = arith.subf %49, %50 : vector<1x128xf32>
      %c0_34 = arith.constant 0 : index
      %c0_35 = arith.constant 0 : index
      %52 = vector.load %arg12[%c0_34, %c0_35] : memref<1x128xf32, #tpu.memory_space<vmem>>, vector<1x128xf32>
      tpu.vector_store %arg12[%c0_34, %c0_35], %51 {strides = array<i32>} : memref<1x128xf32, #tpu.memory_space<vmem>>, vector<1x128xf32>,
    } else {
    }
    %c1_i32_16 = arith.constant 1 : i32
    %28 = arith.cmpi eq, %arg0, %c1_i32_16 : i32
    %29 = arith.extui %28 : i1 to i32
    %c0_i32_17 = arith.constant 0 : i32
    %30 = arith.cmpi ne, %29, %c0_i32_17 : i32
    scf.if %30 {
      %c0_18 = arith.constant 0 : index
      %c0_19 = arith.constant 0 : index
      %31 = vector.load %arg11[%c0_18, %c0_19] : memref<1x128xf32, #tpu.memory_space<vmem>>, vector<1x128xf32>
      %32 = vector.broadcast %31 : vector<1x128xf32> to vector<16x128xf32>
      %33 = arith.mulf %11, %32 : vector<16x128xf32>
      %c0_20 = arith.constant 0 : index
      %c0_21 = arith.constant 0 : index
      %34 = vector.load %arg12[%c0_20, %c0_21] : memref<1x128xf32, #tpu.memory_space<vmem>>, vector<1x128xf32>
      %35 = vector.broadcast %34 : vector<1x128xf32> to vector<16x128xf32>
      %36 = arith.addf %33, %35 : vector<16x128xf32>
      %cst_22 = arith.constant 0.000000e+00 : f32
      %37 = vector.broadcast %cst_22 : f32 to vector<16x128xf32>
      %38 = arith.maximumf %36, %37 : vector<16x128xf32>
      %39 = arith.truncf %38 : vector<16x128xf32> to vector<16x128xbf16>
      %c0_23 = arith.constant 0 : index
      %c0_24 = arith.constant 0 : index
      %40 = vector.load %arg9[%c0_23, %c0_24] : memref<16x128xbf16, #tpu.memory_space<vmem>>, vector<16x128xbf16>
      tpu.vector_store %arg9[%c0_23, %c0_24], %39 {strides = array<i32>} : memref<16x128xbf16, #tpu.memory_space<vmem>>, vector<16x128xbf16>,
    } else {
    }
    return
  }
  func.func @transform_0(%arg0: i32, %arg1: i32) -> (i32, i32) {
    %c0_i32 = arith.constant 0 : i32
    %c0_i32_0 = arith.constant 0 : i32
    return %arg1, %c0_i32 : i32, i32
  }
  func.func @transform_1(%arg0: i32, %arg1: i32) -> (i32, i32) {
    %c0_i32 = arith.constant 0 : i32
    %c0_i32_0 = arith.constant 0 : i32
    %c0_i32_1 = arith.constant 0 : i32
    return %c0_i32, %c0_i32_0 : i32, i32
  }
  func.func @transform_2(%arg0: i32, %arg1: i32) -> (i32, i32) {
    %c0_i32 = arith.constant 0 : i32
    %c0_i32_0 = arith.constant 0 : i32
    %c0_i32_1 = arith.constant 0 : i32
    return %c0_i32, %c0_i32_0 : i32, i32
  }
  func.func @transform_3(%arg0: i32, %arg1: i32) -> (i32, i32) {
    %c0_i32 = arith.constant 0 : i32
    %c0_i32_0 = arith.constant 0 : i32
    %c0_i32_1 = arith.constant 0 : i32
    return %c0_i32, %c0_i32_0 : i32, i32
  }
  func.func @transform_4(%arg0: i32, %arg1: i32) -> (i32, i32) {
    %c0_i32 = arith.constant 0 : i32
    %c0_i32_0 = arith.constant 0 : i32
    return %arg1, %c0_i32 : i32, i32
  }
  func.func @transform_5(%arg0: i32, %arg1: i32) -> (i32, i32) {
    %c0_i32 = arith.constant 0 : i32
    %c0_i32_0 = arith.constant 0 : i32
    %c0_i32_1 = arith.constant 0 : i32
    return %c0_i32, %c0_i32_0 : i32, i32
  }
  func.func @transform_6(%arg0: i32, %arg1: i32) -> (i32, i32) {
    %c0_i32 = arith.constant 0 : i32
    %c0_i32_0 = arith.constant 0 : i32
    %c0_i32_1 = arith.constant 0 : i32
    return %c0_i32, %c0_i32_0 : i32, i32
  }
  func.func @transform_7(%arg0: i32, %arg1: i32) -> (i32, i32) {
    %0 = arith.muli %arg0, %arg1 : i32
    %c0_i32 = arith.constant 0 : i32
    %c0_i32_0 = arith.constant 0 : i32
    return %0, %c0_i32 : i32, i32
  }
}

</mosaic_0001>

<bundles_post_ra>
// kernel: _lambda_.8
= control target key start
LH: loop header
LB: loop body
LE: loop exit
PB: predicated region body
PF: predicated region fallthrough
CT: control target
= control target key end

     0   :  { %s553_s15 = smov 0   ;;  %s555_s16 = smov 0   ;;  %s613_s0 = inlined_call_operand.vmem [shape: bf16[16,3], index: 0, kind: input, shape index: {}]   ;;  %s614_s1 = inlined_call_operand.vmem [shape: bf16[3,128], index: 1, kind: input, shape index: {}]   ;;  %s615_s2 = inlined_call_operand.vmem [shape: f32[1,128], index: 2, kind: input, shape index: {}]   ;;  %s616_s3 = inlined_call_operand.vmem [shape: f32[1,128], index: 3, kind: input, shape index: {}]   ;;  %s617_s4 = inlined_call_operand.vmem [shape: bf16[16,128], index: 4, kind: output, shape index: {}]  }
   0x1   :  { %s557_s17 = smov 0  }
   0x2 LB: > { %s26_s18 = sadd.s32 1, %s520_s16  ;;  %p449_p0 = scmp.ge.s32.totalorder %s524_s17, 1  ;;  %s524_s17 = sphi %s557_s17, %s14_s17   ;;  %s520_s16 = sphi %s555_s16, %s619_s16   ;;  %s516_s15 = sphi %s553_s15, %s618_s15  }
   0x3   : > { %p28_p1 = scmp.ge.s32.totalorder %s26_s18, 2  ;;  %p177_p2 = scmp.lt.s32.totalorder %s524_s17, 3 }
   0x5   : > { %s621_s18 = smov (%p28_p1, %s26_s18), 0  ;;  %p178_p3 = pnand %p449_p0, %p177_p2 }
   0x6   : > { %p219_p4 = scmp.eq.s32.totalorder (!%p178_p3), %s516_s15, 0 }
   0x7   : > { %181 = sbr.rel (%p178_p3) target bundleno = 257 (0x101), region = 36 }
   0xc   : > { %v225_v0 = vld [vmem:[%s614_s1] sm:$0x3]  ;;  %vm235_vm0 = vcmask 1040384   ;;  %vm236_vm1 = vcmask 1041408   ;;  %v526_v1 = vmov 65535   ;;  %vm231_vm2 = vcmask 23552  }
   0xd   : > { %v237_v2 = vsel %vm235_vm0, 4294967295, %v526_v1  ;;  %v464_v5 = vld [vmem:[%s613_s0] sm:$0xff]  ;;  %v527_v9 = vmov (%p219_p4), 0.0  }
   0xe   : > { %v238_v3 = vsel %vm236_vm1, %v237_v2, 0  ;;  %282 = vst [vmem:[#allocation3] sm:$0x1] (%p219_p4), %v527_v9 }
   0xf   : > { %v240_v4 = vand.u32 %v238_v3, %v225_v0  ;;  %283 = vst [vmem:[#allocation4] sm:$0x1] (%p219_p4), %v527_v9 }
  0x11   : > { %249 = vmatpush.bf16.msra.mxu0 %v240_v4 }
  0x14   : > { %455 = vmatmul.msk.bf16.vlgmr.msra.gmra.mxu0 %vm231_vm2, %v464_v5 }
  0x91   : > { %v580_v6 = vpop.f32.mrf.mxu0 }
  0x95   : > { %266 = sbr.rel (!%p219_p4) target bundleno = 171 (0xab), region = 40 }
  0x99   : > { %v582_v7 = vpop.f32.mrf.mxu0 }
  0x9a   : > { %v273_v8 = vadd.f32 %v582_v7, %v580_v6 }
  0x9c   : > { %v274_v10 = vrot.slane %v273_v8, 4 }
  0x9e   : > { %v275_v11 = vadd.f32 %v274_v10, %v273_v8 }
  0xa0   : > { %v276_v12 = vrot.slane %v275_v11, 2 }
  0xa2   : > { %v277_v13 = vadd.f32 %v276_v12, %v275_v11 }
  0xa4   : > { %v278_v14 = vrot.slane %v277_v13, 1 }
  0xa6   : > { %v279_v15 = vadd.f32 %v278_v14, %v277_v13 }
  0xa8   : > { %v280_v16 = vmul.f32 0.0625, %v279_v15 }
  0xaa   : > { %281 = vst [vmem:[#allocation2] sm:$0x1] %v280_v16 }
  0xab PF: > { %p456_p5 = scmp.ne.s32.totalorder %s516_s15, 0 }
  0xad   : > { %286 = sbr.rel (%p456_p5) target bundleno = 200 (0xc8), region = 44 }
  0xb2   : > { %v497_v17 = vld [vmem:[#allocation2] ss:$0 sm:$0xff]  ;;  %v299_v33 = vld [vmem:[#allocation3] sm:$0x1]  ;;  %v309_v36 = vld [vmem:[#allocation4] sm:$0x1] }
  0xb3   : > { %v291_v18 = vsub.f32 %v580_v6, %v497_v17  ;;  %v292_v19 = vsub.f32 %v582_v7, %v497_v17 }
  0xb5   : > { %v300_v20 = vadd.f32 %v292_v19, %v291_v18  ;;  %v310_v21 = vmul.f32 %v291_v18, %v291_v18  ;;  %v311_v22 = vmul.f32 %v292_v19, %v292_v19 }
  0xb7   : > { %v301_v23 = vrot.slane %v300_v20, 4  ;;  %v312_v24 = vadd.f32 %v311_v22, %v310_v21 }
  0xb9   : > { %v302_v25 = vadd.f32 %v301_v23, %v300_v20  ;;  %v313_v26 = vrot.slane %v312_v24, 4 }
  0xbb   : > { %v303_v27 = vrot.slane %v302_v25, 2  ;;  %v314_v28 = vadd.f32 %v313_v26, %v312_v24 }
  0xbd   : > { %v304_v29 = vadd.f32 %v303_v27, %v302_v25  ;;  %v315_v30 = vrot.slane %v314_v28, 2 }
  0xbf   : > { %v305_v31 = vrot.slane %v304_v29, 1  ;;  %v316_v32 = vadd.f32 %v315_v30, %v314_v28 }
  0xc1   : > { %v306_v34 = vadd.f32 %v305_v31, %v304_v29  ;;  %v317_v35 = vrot.slane %v316_v32, 1 }
  0xc3   : > { %v307_v37 = vadd.f32 %v306_v34, %v299_v33  ;;  %v318_v38 = vadd.f32 %v317_v35, %v316_v32 }
  0xc5   : > { %308 = vst [vmem:[#allocation3] sm:$0x1] %v307_v37  ;;  %v319_v39 = vadd.f32 %v318_v38, %v309_v36 }
  0xc7   : > { %320 = vst [vmem:[#allocation4] sm:$0x1] %v319_v39 }
  0xc8 PF: > { %p321_p6 = scmp.eq.s32.totalorder %s516_s15, 1 }
  0xc9   : > { %v328_v52 = vld [vmem:[#allocation2] sm:$0x1] (%p321_p6) }
  0xca   : > { %325 = sbr.rel (!%p321_p6) target bundleno = 240 (0xf0), region = 48  ;;  %v335_v54 = vld [vmem:[%s615_s2] sm:$0x1] (%p321_p6) }
  0xcb   : > { %v349_v59 = vld [vmem:[%s616_s3] sm:$0x1] (%p321_p6) }
  0xcc   : > { %v326_v40 = vld [vmem:[#allocation3] sm:$0x1] (%p321_p6) }
  0xcd   : > { %v327_v42 = vmul.f32 (%p321_p6), 0.0625, %v326_v40 }
  0xce   : > { %v330_v41 = vld [vmem:[#allocation4] sm:$0x1] (%p321_p6) }
  0xcf   : > { %v331_v43 = vmul.f32 0.0625, %v330_v41  ;;  %v332_v44 = vmul.f32 %v327_v42, %v327_v42  ;;  %v329_v56 = vadd.f32 %v328_v52, %v327_v42 }
  0xd1   : > { %v333_v45 = vsub.f32 %v331_v43, %v332_v44 }
  0xd3   : > { %v334_v46 = vmax.f32 %v333_v45, 0.0 }
  0xd5   : > { %v336_v47 = vadd.f32 1e-05, %v334_v46 }
  0xd7   : > { %498 = vrsqrt.f32 %v336_v47  ;;  %vm343_vm3 = vweird.f32 %v336_v47 }
  0xdd   : > { %v499_v48 = vpop.eup %498 }
  0xde   : > { %v338_v49 = vmul.f32 %v499_v48, %v336_v47  ;;  %vm344_vm4 = vweird.f32 %v499_v48 }
  0xdf   : > { %vm345_vm5 = vmor %vm343_vm3, %vm344_vm4 }
  0xe0   : > { %v339_v50 = vmul.f32 %v499_v48, %v338_v49 }
  0xe2   : > { %v340_v51 = vmul.f32 0.5, %v339_v50 }
  0xe4   : > { %v341_v53 = vsub.f32 1.5, %v340_v51 }
  0xe6   : > { %v342_v55 = vmul.f32 %v499_v48, %v341_v53 }
  0xe8   : > { %v346_v57 = vsel %vm345_vm5, %v499_v48, %v342_v55 }
  0xe9   : > { %v347_v58 = vmul.f32 %v346_v57, %v335_v54 }
  0xeb   : > { %348 = vst [vmem:[#allocation3] sm:$0x1] %v347_v58  ;;  %v350_v60 = vmul.f32 %v347_v58, %v329_v56 }
  0xed   : > { %v351_v61 = vsub.f32 %v349_v59, %v350_v60 }
  0xef   : > { %352 = vst [vmem:[#allocation4] sm:$0x1] %v351_v61 }
  0xf0 PF: > { %p458_p7 = scmp.ne.s32.totalorder %s516_s15, 1 }
  0xf2   : > { %355 = sbr.rel (%p458_p7) target bundleno = 257 (0x101), region = 52 }
  0xf7   : > { %v500_v62 = vld [vmem:[#allocation3] ss:$0 sm:$0xff]  ;;  %v501_v63 = vld [vmem:[#allocation4] ss:$0 sm:$0xff] }
  0xf8   : > { %v360_v0 = vmul.f32 %v500_v62, %v580_v6  ;;  %v361_v1 = vmul.f32 %v500_v62, %v582_v7 }
  0xfa   : > { %v366_v2 = vadd.f32 %v501_v63, %v360_v0  ;;  %v367_v3 = vadd.f32 %v501_v63, %v361_v1 }
  0xfc   : > { %v368_v4 = vmax.f32 %v366_v2, 0.0  ;;  %v369_v5 = vmax.f32 %v367_v3, 0.0 }
  0xfe   : > { %v469_v8 = vpack.c.bf16 %v369_v5, %v368_v4 }
 0x100   : > { %470 = vst [vmem:[%s617_s4] sm:$0xff] %v469_v8  }
 0x101 PF: > { %s14_s17 = sadd.s32 1, %s524_s17   ;;  %s618_s15 = smov %s520_s16 }
 0x102   : > { %p11_p8 = scmp.ge.s32.totalorder %s14_s17, 4   ;;  %s619_s16 = smov %s621_s18 }
 0x104   :  { %13 = sbr.rel (!%p11_p8) target bundleno = 2 (0x2), region = 82 }

// kernel: _lambda_.9
= control target key start
LH: loop header
LB: loop body
LE: loop exit
PB: predicated region body
PF: predicated region fallthrough
CT: control target
= control target key end

     0   :  { %9 = vsyncpa [#allocation6], 0  ;;  %s723_s15 = smov 0   ;;  %s725_s16 = smov 0   ;;  %s784_s0 = inlined_call_operand.vmem [shape: bf16[16,128], index: 0, kind: input, shape index: {}]   ;;  %s785_s1 = inlined_call_operand.hbm [shape: bf16[128,128], index: 1, kind: input, shape index: {}]   ;;  %s786_s2 = inlined_call_operand.vmem [shape: f32[1,128], index: 2, kind: input, shape index: {}]   ;;  %s787_s3 = inlined_call_operand.vmem [shape: f32[1,128], index: 3, kind: input, shape index: {}]   ;;  %s788_s4 = inlined_call_operand.vmem [shape: bf16[16,128], index: 4, kind: output, shape index: {}]  }
   0x1   :  { %s727_s17 = smov 0  }
   0x2 LB: > { %s526_s18 = sadd.s32 4294967295, %s692_s17   ;;  %s27_s19 = sadd.s32 1, %s688_s16  ;;  %s692_s17 = sphi %s727_s17, %s15_s17   ;;  %s688_s16 = sphi %s725_s16, %s790_s16   ;;  %s684_s15 = sphi %s723_s15, %s789_s15  }
   0x3   : > { %p29_p0 = scmp.ge.s32.totalorder %s27_s19, 2  ;;  %p528_p1 = scmp.ge.s32.totalorder %s692_s17, 1 }
   0x4   : > { %p149_p2 = scmp.lt.s32.totalorder %s692_s17, 3  ;;  %p601_p4 = scmp.eq.s32.totalorder %s526_s18, 0 }
   0x5   : > { %s792_s19 = smov (%p29_p0, %s27_s19), 0  ;;  %s169_s22 = sshll.u32 %s785_s1, 4  ;;  %s170_s22 = int_to_ptr.hbm [resolvable:$true] %s169_s22 }
   0x6   : > { %p150_p3 = pnand %p528_p1, %p149_p2  ;;  %s694_s23 = smov [#allocation5]  }
   0x7   : > { %s171_s24 = sshll.u32 %s694_s23, 4  ;;  %s695_s25 = smov 64   ;;  %s172_s24 = int_to_ptr.vmem [resolvable:$true] %s171_s24 }
   0x8   : > { %p597_p5 = pneg %p150_p3  ;;  %s696_s26 = smov 4  }
   0x9   : > { %193 = sbr.rel (%p150_p3) target bundleno = 284 (0x11c), region = 36 }
   0xa   : > { %p598_p6 = pnand %p601_p4, %p597_p5 }
   0xc   : > { %600 = dma.hbm_to_vmem [thread:$0]  (!%p598_p6), %s170_s22, 1024, %s172_s24, [#allocation6], %s695_s25, %s695_s25, %s696_s26  }
   0xe   : > { %679 = dma.done.wait (%p601_p4), [#allocation6], 1024  }
   0xf   : > { %681 = vsyncadd (%p601_p4), [#allocation6], 4294966272  ;;  %p235_p7 = scmp.eq.s32.totalorder %s684_s15, 0  ;;  %v586_v0 = vld [vmem:[#allocation5 + $0x38] sm:$0xff]  ;;  %v585_v1 = vld [vmem:[#allocation5 + $0x30] sm:$0xff] }
  0x10   : > { %311 = vmatpush.bf16.msra.mxu0 %v586_v0  ;;  %v584_v2 = vld [vmem:[#allocation5 + $0x28] sm:$0xff]  ;;  %v583_v3 = vld [vmem:[#allocation5 + $0x20] sm:$0xff]  ;;  %v582_v4 = vld [vmem:[#allocation5 + $0x18] sm:$0xff]  ;;  %v697_v12 = vmov (%p235_p7), 0.0  }
  0x11   : > { %v581_v5 = vld [vmem:[#allocation5 + $0x10] sm:$0xff]  ;;  %v580_v6 = vld [vmem:[#allocation5 + $0x8] sm:$0xff]  ;;  %v579_v7 = vld [vmem:[#allocation5] sm:$0xff]  ;;  %351 = vst [vmem:[#allocation3] sm:$0x1] (%p235_p7), %v697_v12 }
  0x12   : > { %v578_v8 = vld [vmem:[%s784_s0] sm:$0xff]  ;;  %352 = vst [vmem:[#allocation4] sm:$0x1] (%p235_p7), %v697_v12 }
  0x14   : > { %312 = vmatpush.bf16.msra.mxu0 %v585_v1 }
  0x18   : > { %313 = vmatpush.bf16.msra.mxu0 %v584_v2 }
  0x1c   : > { %314 = vmatpush.bf16.msra.mxu0 %v583_v3 }
  0x20   : > { %315 = vmatpush.bf16.msra.mxu0 %v582_v4 }
  0x24   : > { %316 = vmatpush.bf16.msra.mxu0 %v581_v5 }
  0x28   : > { %317 = vmatpush.bf16.msra.mxu0 %v580_v6 }
  0x2c   : > { %318 = vmatpush.bf16.msra.mxu0 %v579_v7 }
  0x2f   : > { %319 = vmatmul.bf16.vlgmr.msra.gmra.mxu0 %v578_v8 }
  0xac   : > { %v751_v9 = vpop.f32.mrf.mxu0 }
  0xb0   : > { %335 = sbr.rel (!%p235_p7) target bundleno = 198 (0xc6), region = 44 }
  0xb4   : > { %v753_v10 = vpop.f32.mrf.mxu0 }
  0xb5   : > { %v342_v11 = vadd.f32 %v753_v10, %v751_v9 }
  0xb7   : > { %v343_v13 = vrot.slane %v342_v11, 4 }
  0xb9   : > { %v344_v14 = vadd.f32 %v343_v13, %v342_v11 }
  0xbb   : > { %v345_v15 = vrot.slane %v344_v14, 2 }
  0xbd   : > { %v346_v16 = vadd.f32 %v345_v15, %v344_v14 }
  0xbf   : > { %v347_v17 = vrot.slane %v346_v16, 1 }
  0xc1   : > { %v348_v18 = vadd.f32 %v347_v17, %v346_v16 }
  0xc3   : > { %v349_v19 = vmul.f32 0.0625, %v348_v18 }
  0xc5   : > { %350 = vst [vmem:[#allocation2] sm:$0x1] %v349_v19 }
  0xc6 PF: > { %p570_p8 = scmp.ne.s32.totalorder %s684_s15, 0 }
  0xc8   : > { %355 = sbr.rel (%p570_p8) target bundleno = 227 (0xe3), region = 48 }
  0xcd   : > { %v631_v20 = vld [vmem:[#allocation2] ss:$0 sm:$0xff]  ;;  %v368_v36 = vld [vmem:[#allocation3] sm:$0x1]  ;;  %v378_v39 = vld [vmem:[#allocation4] sm:$0x1] }
  0xce   : > { %v360_v21 = vsub.f32 %v751_v9, %v631_v20  ;;  %v361_v22 = vsub.f32 %v753_v10, %v631_v20 }
  0xd0   : > { %v369_v23 = vadd.f32 %v361_v22, %v360_v21  ;;  %v379_v24 = vmul.f32 %v360_v21, %v360_v21  ;;  %v380_v25 = vmul.f32 %v361_v22, %v361_v22 }
  0xd2   : > { %v370_v26 = vrot.slane %v369_v23, 4  ;;  %v381_v27 = vadd.f32 %v380_v25, %v379_v24 }
  0xd4   : > { %v371_v28 = vadd.f32 %v370_v26, %v369_v23  ;;  %v382_v29 = vrot.slane %v381_v27, 4 }
  0xd6   : > { %v372_v30 = vrot.slane %v371_v28, 2  ;;  %v383_v31 = vadd.f32 %v382_v29, %v381_v27 }
  0xd8   : > { %v373_v32 = vadd.f32 %v372_v30, %v371_v28  ;;  %v384_v33 = vrot.slane %v383_v31, 2 }
  0xda   : > { %v374_v34 = vrot.slane %v373_v32, 1  ;;  %v385_v35 = vadd.f32 %v384_v33, %v383_v31 }
  0xdc   : > { %v375_v37 = vadd.f32 %v374_v34, %v373_v32  ;;  %v386_v38 = vrot.slane %v385_v35, 1 }
  0xde   : > { %v376_v40 = vadd.f32 %v375_v37, %v368_v36  ;;  %v387_v41 = vadd.f32 %v386_v38, %v385_v35 }
  0xe0   : > { %377 = vst [vmem:[#allocation3] sm:$0x1] %v376_v40  ;;  %v388_v42 = vadd.f32 %v387_v41, %v378_v39 }
  0xe2   : > { %389 = vst [vmem:[#allocation4] sm:$0x1] %v388_v42 }
  0xe3 PF: > { %p390_p9 = scmp.eq.s32.totalorder %s684_s15, 1 }
  0xe4   : > { %v397_v55 = vld [vmem:[#allocation2] sm:$0x1] (%p390_p9) }
  0xe5   : > { %394 = sbr.rel (!%p390_p9) target bundleno = 267 (0x10b), region = 52  ;;  %v404_v57 = vld [vmem:[%s786_s2] sm:$0x1] (%p390_p9) }
  0xe6   : > { %v418_v62 = vld [vmem:[%s787_s3] sm:$0x1] (%p390_p9) }
  0xe7   : > { %v395_v43 = vld [vmem:[#allocation3] sm:$0x1] (%p390_p9) }
  0xe8   : > { %v396_v45 = vmul.f32 (%p390_p9), 0.0625, %v395_v43 }
  0xe9   : > { %v399_v44 = vld [vmem:[#allocation4] sm:$0x1] (%p390_p9) }
  0xea   : > { %v400_v46 = vmul.f32 0.0625, %v399_v44  ;;  %v401_v47 = vmul.f32 %v396_v45, %v396_v45  ;;  %v398_v59 = vadd.f32 %v397_v55, %v396_v45 }
  0xec   : > { %v402_v48 = vsub.f32 %v400_v46, %v401_v47 }
  0xee   : > { %v403_v49 = vmax.f32 %v402_v48, 0.0 }
  0xf0   : > { %v405_v50 = vadd.f32 1e-05, %v403_v49 }
  0xf2   : > { %632 = vrsqrt.f32 %v405_v50  ;;  %vm412_vm0 = vweird.f32 %v405_v50 }
  0xf8   : > { %v633_v51 = vpop.eup %632 }
  0xf9   : > { %v407_v52 = vmul.f32 %v633_v51, %v405_v50  ;;  %vm413_vm1 = vweird.f32 %v633_v51 }
  0xfa   : > { %vm414_vm2 = vmor %vm412_vm0, %vm413_vm1 }
  0xfb   : > { %v408_v53 = vmul.f32 %v633_v51, %v407_v52 }
  0xfd   : > { %v409_v54 = vmul.f32 0.5, %v408_v53 }
  0xff   : > { %v410_v56 = vsub.f32 1.5, %v409_v54 }
 0x101   : > { %v411_v58 = vmul.f32 %v633_v51, %v410_v56 }
 0x103   : > { %v415_v60 = vsel %vm414_vm2, %v633_v51, %v411_v58 }
 0x104   : > { %v416_v61 = vmul.f32 %v415_v60, %v404_v57 }
 0x106   : > { %417 = vst [vmem:[#allocation3] sm:$0x1] %v416_v61  ;;  %v419_v63 = vmul.f32 %v416_v61, %v398_v59 }
 0x108   : > { %v420_v0 = vsub.f32 %v418_v62, %v419_v63 }
 0x10a   : > { %421 = vst [vmem:[#allocation4] sm:$0x1] %v420_v0 }
 0x10b PF: > { %p572_p10 = scmp.ne.s32.totalorder %s684_s15, 1 }
 0x10d   : > { %424 = sbr.rel (%p572_p10) target bundleno = 284 (0x11c), region = 56 }
 0x112   : > { %v634_v1 = vld [vmem:[#allocation3] ss:$0 sm:$0xff]  ;;  %v635_v2 = vld [vmem:[#allocation4] ss:$0 sm:$0xff] }
 0x113   : > { %v429_v3 = vmul.f32 %v634_v1, %v751_v9  ;;  %v430_v4 = vmul.f32 %v634_v1, %v753_v10 }
 0x115   : > { %v435_v5 = vadd.f32 %v635_v2, %v429_v3  ;;  %v436_v6 = vadd.f32 %v635_v2, %v430_v4 }
 0x117   : > { %v437_v7 = vmax.f32 %v435_v5, 0.0  ;;  %v438_v8 = vmax.f32 %v436_v6, 0.0 }
 0x119   : > { %v591_v11 = vpack.c.bf16 %v438_v8, %v437_v7 }
 0x11b   : > { %592 = vst [vmem:[%s788_s4] sm:$0xff] %v591_v11  }
 0x11c PF: > { %s15_s17 = sadd.s32 1, %s692_s17   ;;  %s789_s15 = smov %s688_s16 }
 0x11d   : > { %p12_p11 = scmp.ge.s32.totalorder %s15_s17, 4   ;;  %s790_s16 = smov %s792_s19 }
 0x11f   :  { %14 = sbr.rel (!%p12_p11) target bundleno = 2 (0x2), region = 87 }
 0x124   :  { %468 = vsyncpa [#allocation6], 1 }
 0x125   :  { %470 = vsyncpa [#allocation6 + $0x1], 1 }

// kernel: _lambda_.10
= control target key start
LH: loop header
LB: loop body
LE: loop exit
PB: predicated region body
PF: predicated region fallthrough
CT: control target
= control target key end

     0   :  { %s594_s15 = smov 0   ;;  %s596_s16 = smov 0   ;;  %s672_s0 = inlined_call_operand.vmem [shape: bf16[8,128], index: 0, kind: input, shape index: {}]   ;;  %s673_s1 = inlined_call_operand.vmem [shape: bf16[128,128], index: 1, kind: input, shape index: {}]   ;;  %s674_s2 = inlined_call_operand.vmem [shape: f32[1,128], index: 2, kind: input, shape index: {}]   ;;  %s675_s3 = inlined_call_operand.vmem [shape: f32[1,128], index: 3, kind: input, shape index: {}]   ;;  %s676_s4 = inlined_call_operand.vmem [shape: bf16[8,128], index: 4, kind: output, shape index: {}]  }
   0x1   :  { %s598_s17 = smov 0  }
   0x2 LB: > { %s26_s18 = sadd.s32 1, %s562_s16  ;;  %p463_p0 = scmp.ge.s32.totalorder %s566_s17, 1  ;;  %s566_s17 = sphi %s598_s17, %s14_s17   ;;  %s562_s16 = sphi %s596_s16, %s678_s16   ;;  %s558_s15 = sphi %s594_s15, %s677_s15  }
   0x3   : > { %p28_p1 = scmp.ge.s32.totalorder %s26_s18, 2  ;;  %p175_p2 = scmp.lt.s32.totalorder %s566_s17, 3 }
   0x5   : > { %s680_s18 = smov (%p28_p1, %s26_s18), 0  ;;  %p176_p3 = pnand %p463_p0, %p175_p2 }
   0x6   : > { %p210_p4 = scmp.eq.s32.totalorder (!%p176_p3), %s558_s15, 0 }
   0x7   : > { %179 = sbr.rel (%p176_p3) target bundleno = 271 (0x10f), region = 36 }
   0xc   : > { %v512_v0 = vld [vmem:[%s673_s1 + $0x38] sm:$0xff]  ;;  %v511_v1 = vld [vmem:[%s673_s1 + $0x30] sm:$0xff]  ;;  %v510_v2 = vld [vmem:[%s673_s1 + $0x28] sm:$0xff]  ;;  %v293_v9 = vlaneseq  ;;  %v568_v15 = vmov (%p210_p4), 0.0  }
   0xd   : > { %279 = vmatpush.bf16.msra.mxu0 %v512_v0  ;;  %v509_v3 = vld [vmem:[%s673_s1 + $0x20] sm:$0xff]  ;;  %v508_v4 = vld [vmem:[%s673_s1 + $0x18] sm:$0xff]  ;;  %v507_v5 = vld [vmem:[%s673_s1 + $0x10] sm:$0xff]  ;;  %311 = vst [vmem:[#allocation3] sm:$0x1] (%p210_p4), %v568_v15 }
   0xe   : > { %v506_v6 = vld [vmem:[%s673_s1 + $0x8] sm:$0xff]  ;;  %v505_v7 = vld [vmem:[%s673_s1] sm:$0xff]  ;;  %v294_v10 = vshrl.u32 %v293_v9, 7  ;;  %312 = vst [vmem:[#allocation4] sm:$0x1] (%p210_p4), %v568_v15 }
   0xf   : > { %v214_v8 = vld [vmem:[%s672_s0] sm:$0xf] }
  0x10   : > { %vm297_vm0 = vcmp.lt.s32.totalorder %v294_v10, 2 }
  0x11   : > { %280 = vmatpush.bf16.msra.mxu0 %v511_v1 }
  0x15   : > { %281 = vmatpush.bf16.msra.mxu0 %v510_v2 }
  0x19   : > { %282 = vmatpush.bf16.msra.mxu0 %v509_v3 }
  0x1d   : > { %283 = vmatpush.bf16.msra.mxu0 %v508_v4 }
  0x21   : > { %284 = vmatpush.bf16.msra.mxu0 %v507_v5 }
  0x25   : > { %285 = vmatpush.bf16.msra.mxu0 %v506_v6 }
  0x29   : > { %286 = vmatpush.bf16.msra.mxu0 %v505_v7 }
  0x2c   : > { %287 = vmatmul.bf16.vlgmr.msra.gmra.mxu0 %v214_v8 }
  0xa9   : > { %v642_v11 = vpop.f32.mrf.mxu0 }
  0xaa   : > { %v302_v13 = vsel (%p210_p4), %vm297_vm0, %v642_v11, 0.0 }
  0xab   : > { %v303_v14 = vrot.slane (%p210_p4), %v302_v13, 4 }
  0xad   : > { %299 = sbr.rel (!%p210_p4) target bundleno = 186 (0xba), region = 40  ;;  %v304_v16 = vadd.f32 (%p210_p4), %v303_v14, %v302_v13 }
  0xaf   : > { %v305_v17 = vrot.slane (%p210_p4), %v304_v16, 2 }
  0xb1   : > { %v290_v12 = vpop.f32.mrf.mxu0  ;;  %v306_v18 = vadd.f32 (%p210_p4), %v305_v17, %v304_v16 }
  0xb3   : > { %v307_v19 = vrot.slane %v306_v18, 1 }
  0xb5   : > { %v308_v20 = vadd.f32 %v307_v19, %v306_v18 }
  0xb7   : > { %v309_v21 = vmul.f32 0.5, %v308_v20 }
  0xb9   : > { %310 = vst [vmem:[#allocation2] sm:$0x1] %v309_v21 }
  0xba PF: > { %p497_p5 = scmp.ne.s32.totalorder %s558_s15, 0 }
  0xbc   : > { %315 = sbr.rel (%p497_p5) target bundleno = 214 (0xd6), region = 44 }
  0xc1   : > { %v539_v22 = vld [vmem:[#allocation2] ss:$0 sm:$0xff]  ;;  %v324_v35 = vld [vmem:[#allocation3] sm:$0x1]  ;;  %v333_v38 = vld [vmem:[#allocation4] sm:$0x1] }
  0xc2   : > { %v320_v23 = vsub.f32 %v642_v11, %v539_v22 }
  0xc4   : > { %v323_v24 = vsel %vm297_vm0, %v320_v23, 0.0 }
  0xc5   : > { %v325_v25 = vrot.slane %v323_v24, 4  ;;  %v334_v26 = vmul.f32 %v323_v24, %v323_v24 }
  0xc7   : > { %v326_v27 = vadd.f32 %v325_v25, %v323_v24  ;;  %v335_v28 = vrot.slane %v334_v26, 4 }
  0xc9   : > { %v327_v29 = vrot.slane %v326_v27, 2  ;;  %v336_v30 = vadd.f32 %v335_v28, %v334_v26 }
  0xcb   : > { %v328_v31 = vadd.f32 %v327_v29, %v326_v27  ;;  %v337_v32 = vrot.slane %v336_v30, 2 }
  0xcd   : > { %v329_v33 = vrot.slane %v328_v31, 1  ;;  %v338_v34 = vadd.f32 %v337_v32, %v336_v30 }
  0xcf   : > { %v330_v36 = vadd.f32 %v329_v33, %v328_v31  ;;  %v339_v37 = vrot.slane %v338_v34, 1 }
  0xd1   : > { %v331_v39 = vadd.f32 %v330_v36, %v324_v35  ;;  %v340_v40 = vadd.f32 %v339_v37, %v338_v34 }
  0xd3   : > { %332 = vst [vmem:[#allocation3] sm:$0x1] %v331_v39  ;;  %v341_v41 = vadd.f32 %v340_v40, %v333_v38 }
  0xd5   : > { %342 = vst [vmem:[#allocation4] sm:$0x1] %v341_v41 }
  0xd6 PF: > { %p343_p6 = scmp.eq.s32.totalorder %s558_s15, 1 }
  0xd7   : > { %v350_v54 = vld [vmem:[#allocation2] sm:$0x1] (%p343_p6) }
  0xd8   : > { %347 = sbr.rel (!%p343_p6) target bundleno = 254 (0xfe), region = 48  ;;  %v357_v56 = vld [vmem:[%s674_s2] sm:$0x1] (%p343_p6) }
  0xd9   : > { %v371_v61 = vld [vmem:[%s675_s3] sm:$0x1] (%p343_p6) }
  0xda   : > { %v348_v42 = vld [vmem:[#allocation3] sm:$0x1] (%p343_p6) }
  0xdb   : > { %v349_v44 = vmul.f32 (%p343_p6), 0.5, %v348_v42 }
  0xdc   : > { %v352_v43 = vld [vmem:[#allocation4] sm:$0x1] (%p343_p6) }
  0xdd   : > { %v353_v45 = vmul.f32 0.5, %v352_v43  ;;  %v354_v46 = vmul.f32 %v349_v44, %v349_v44  ;;  %v351_v58 = vadd.f32 %v350_v54, %v349_v44 }
  0xdf   : > { %v355_v47 = vsub.f32 %v353_v45, %v354_v46 }
  0xe1   : > { %v356_v48 = vmax.f32 %v355_v47, 0.0 }
  0xe3   : > { %v358_v49 = vadd.f32 1e-05, %v356_v48 }
  0xe5   : > { %540 = vrsqrt.f32 %v358_v49  ;;  %vm365_vm1 = vweird.f32 %v358_v49 }
  0xeb   : > { %v541_v50 = vpop.eup %540 }
  0xec   : > { %v360_v51 = vmul.f32 %v541_v50, %v358_v49  ;;  %vm366_vm2 = vweird.f32 %v541_v50 }
  0xed   : > { %vm367_vm3 = vmor %vm365_vm1, %vm366_vm2 }
  0xee   : > { %v361_v52 = vmul.f32 %v541_v50, %v360_v51 }
  0xf0   : > { %v362_v53 = vmul.f32 0.5, %v361_v52 }
  0xf2   : > { %v363_v55 = vsub.f32 1.5, %v362_v53 }
  0xf4   : > { %v364_v57 = vmul.f32 %v541_v50, %v363_v55 }
  0xf6   : > { %v368_v59 = vsel %vm367_vm3, %v541_v50, %v364_v57 }
  0xf7   : > { %v369_v60 = vmul.f32 %v368_v59, %v357_v56 }
  0xf9   : > { %370 = vst [vmem:[#allocation3] sm:$0x1] %v369_v60  ;;  %v372_v62 = vmul.f32 %v369_v60, %v351_v58 }
  0xfb   : > { %v373_v63 = vsub.f32 %v371_v61, %v372_v62 }
  0xfd   : > { %374 = vst [vmem:[#allocation4] sm:$0x1] %v373_v63 }
  0xfe PF: > { %p499_p7 = scmp.ne.s32.totalorder %s558_s15, 1 }
 0x100   : > { %377 = sbr.rel (%p499_p7) target bundleno = 271 (0x10f), region = 52 }
 0x105   : > { %v542_v0 = vld [vmem:[#allocation3] ss:$0 sm:$0xff]  ;;  %v543_v1 = vld [vmem:[#allocation4] ss:$0 sm:$0xff] }
 0x106   : > { %v382_v2 = vmul.f32 %v542_v0, %v642_v11 }
 0x108   : > { %v387_v3 = vadd.f32 %v543_v1, %v382_v2 }
 0x10a   : > { %v388_v4 = vmax.f32 %v387_v3, 0.0 }
 0x10c   : > { %v389_v5 = vpack.c.bf16 %v388_v4, %v388_v4 }
 0x10e   : > { %390 = vst [vmem:[%s676_s4] sm:$0xf] %v389_v5 }
 0x10f PF: > { %s14_s17 = sadd.s32 1, %s566_s17   ;;  %s677_s15 = smov %s562_s16 }
 0x110   : > { %p11_p8 = scmp.ge.s32.totalorder %s14_s17, 4   ;;  %s678_s16 = smov %s680_s18 }
 0x112   :  { %13 = sbr.rel (!%p11_p8) target bundleno = 2 (0x2), region = 82 }

// kernel: _lambda_.11
= control target key start
LH: loop header
LB: loop body
LE: loop exit
PB: predicated region body
PF: predicated region fallthrough
CT: control target
= control target key end

     0   :  { %s780_s21 = smov 0   ;;  %s782_s22 = smov 0   ;;  %s885_s0 = inlined_call_operand.vmem [shape: bf16[8,128], index: 0, kind: input, shape index: {}]   ;;  %s886_s1 = inlined_call_operand.vmem [shape: bf16[128,128], index: 1, kind: input, shape index: {}]   ;;  %s887_s2 = inlined_call_operand.vmem [shape: f32[1,128], index: 2, kind: input, shape index: {}]   ;;  %s888_s3 = inlined_call_operand.vmem [shape: f32[1,128], index: 3, kind: input, shape index: {}]   ;;  %s889_s4 = inlined_call_operand.vmem [shape: bf16[128,128], index: 4, kind: input, shape index: {}]   ;;  %s890_s5 = inlined_call_operand.vmem [shape: f32[1,128], index: 5, kind: input, shape index: {}]   ;;  %s891_s6 = inlined_call_operand.vmem [shape: f32[8,128], index: 6, kind: output, shape index: {}]  }
   0x1   :  { %s784_s23 = smov 0  }
   0x2 LB: > { %s28_s24 = sadd.s32 1, %s738_s22  ;;  %p598_p0 = scmp.ge.s32.totalorder %s742_s23, 1  ;;  %s742_s23 = sphi %s784_s23, %s16_s23   ;;  %s738_s22 = sphi %s782_s22, %s893_s22   ;;  %s734_s21 = sphi %s780_s21, %s892_s21  }
   0x3   : > { %p30_p1 = scmp.ge.s32.totalorder %s28_s24, 2  ;;  %p225_p2 = scmp.lt.s32.totalorder %s742_s23, 3 }
   0x5   : > { %s895_s24 = smov (%p30_p1, %s28_s24), 0  ;;  %p226_p3 = pnand %p598_p0, %p225_p2 }
   0x6   : > { %p264_p4 = scmp.eq.s32.totalorder (!%p226_p3), %s734_s21, 0 }
   0x7   : > { %229 = sbr.rel (%p226_p3) target bundleno = 427 (0x1ab), region = 44 }
   0xc   : > { %v679_v0 = vld [vmem:[%s886_s1 + $0x38] sm:$0xff]  ;;  %v678_v1 = vld [vmem:[%s886_s1 + $0x30] sm:$0xff]  ;;  %v677_v2 = vld [vmem:[%s886_s1 + $0x28] sm:$0xff]  ;;  %v347_v9 = vlaneseq  ;;  %v744_v15 = vmov (%p264_p4), 0.0  }
   0xd   : > { %333 = vmatpush.bf16.msra.mxu0 %v679_v0  ;;  %v676_v3 = vld [vmem:[%s886_s1 + $0x20] sm:$0xff]  ;;  %v675_v4 = vld [vmem:[%s886_s1 + $0x18] sm:$0xff]  ;;  %v674_v5 = vld [vmem:[%s886_s1 + $0x10] sm:$0xff]  ;;  %365 = vst [vmem:[#allocation3] sm:$0x1] (%p264_p4), %v744_v15 }
   0xe   : > { %v673_v6 = vld [vmem:[%s886_s1 + $0x8] sm:$0xff]  ;;  %v672_v7 = vld [vmem:[%s886_s1] sm:$0xff]  ;;  %v348_v10 = vshrl.u32 %v347_v9, 7  ;;  %366 = vst [vmem:[#allocation4] sm:$0x1] (%p264_p4), %v744_v15 }
   0xf   : > { %v268_v8 = vld [vmem:[%s885_s0] sm:$0xf] }
  0x10   : > { %vm351_vm0 = vcmp.lt.s32.totalorder %v348_v10, 2 }
  0x11   : > { %334 = vmatpush.bf16.msra.mxu0 %v678_v1 }
  0x15   : > { %335 = vmatpush.bf16.msra.mxu0 %v677_v2 }
  0x19   : > { %336 = vmatpush.bf16.msra.mxu0 %v676_v3 }
  0x1d   : > { %337 = vmatpush.bf16.msra.mxu0 %v675_v4 }
  0x21   : > { %338 = vmatpush.bf16.msra.mxu0 %v674_v5 }
  0x25   : > { %339 = vmatpush.bf16.msra.mxu0 %v673_v6 }
  0x29   : > { %340 = vmatpush.bf16.msra.mxu0 %v672_v7 }
  0x2c   : > { %341 = vmatmul.bf16.vlgmr.msra.gmra.mxu0 %v268_v8 }
  0xa9   : > { %v828_v11 = vpop.f32.mrf.mxu0 }
  0xaa   : > { %v356_v13 = vsel (%p264_p4), %vm351_vm0, %v828_v11, 0.0 }
  0xab   : > { %v357_v14 = vrot.slane (%p264_p4), %v356_v13, 4 }
  0xad   : > { %353 = sbr.rel (!%p264_p4) target bundleno = 186 (0xba), region = 48  ;;  %v358_v16 = vadd.f32 (%p264_p4), %v357_v14, %v356_v13 }
  0xaf   : > { %v359_v17 = vrot.slane (%p264_p4), %v358_v16, 2 }
  0xb1   : > { %v344_v12 = vpop.f32.mrf.mxu0  ;;  %v360_v18 = vadd.f32 (%p264_p4), %v359_v17, %v358_v16 }
  0xb3   : > { %v361_v19 = vrot.slane %v360_v18, 1 }
  0xb5   : > { %v362_v20 = vadd.f32 %v361_v19, %v360_v18 }
  0xb7   : > { %v363_v21 = vmul.f32 0.5, %v362_v20 }
  0xb9   : > { %364 = vst [vmem:[#allocation2] sm:$0x1] %v363_v21 }
  0xba PF: > { %p632_p5 = scmp.ne.s32.totalorder %s734_s21, 0 }
  0xbc   : > { %369 = sbr.rel (%p632_p5) target bundleno = 214 (0xd6), region = 52 }
  0xc1   : > { %v714_v22 = vld [vmem:[#allocation2] ss:$0 sm:$0xff]  ;;  %v378_v35 = vld [vmem:[#allocation3] sm:$0x1]  ;;  %v387_v38 = vld [vmem:[#allocation4] sm:$0x1] }
  0xc2   : > { %v374_v23 = vsub.f32 %v828_v11, %v714_v22 }
  0xc4   : > { %v377_v24 = vsel %vm351_vm0, %v374_v23, 0.0 }
  0xc5   : > { %v379_v25 = vrot.slane %v377_v24, 4  ;;  %v388_v26 = vmul.f32 %v377_v24, %v377_v24 }
  0xc7   : > { %v380_v27 = vadd.f32 %v379_v25, %v377_v24  ;;  %v389_v28 = vrot.slane %v388_v26, 4 }
  0xc9   : > { %v381_v29 = vrot.slane %v380_v27, 2  ;;  %v390_v30 = vadd.f32 %v389_v28, %v388_v26 }
  0xcb   : > { %v382_v31 = vadd.f32 %v381_v29, %v380_v27  ;;  %v391_v32 = vrot.slane %v390_v30, 2 }
  0xcd   : > { %v383_v33 = vrot.slane %v382_v31, 1  ;;  %v392_v34 = vadd.f32 %v391_v32, %v390_v30 }
  0xcf   : > { %v384_v36 = vadd.f32 %v383_v33, %v382_v31  ;;  %v393_v37 = vrot.slane %v392_v34, 1 }
  0xd1   : > { %v385_v39 = vadd.f32 %v384_v36, %v378_v35  ;;  %v394_v40 = vadd.f32 %v393_v37, %v392_v34 }
  0xd3   : > { %386 = vst [vmem:[#allocation3] sm:$0x1] %v385_v39  ;;  %v395_v41 = vadd.f32 %v394_v40, %v387_v38 }
  0xd5   : > { %396 = vst [vmem:[#allocation4] sm:$0x1] %v395_v41 }
  0xd6 PF: > { %p397_p6 = scmp.eq.s32.totalorder %s734_s21, 1 }
  0xd7   : > { %v404_v54 = vld [vmem:[#allocation2] sm:$0x1] (%p397_p6) }
  0xd8   : > { %401 = sbr.rel (!%p397_p6) target bundleno = 254 (0xfe), region = 56  ;;  %v411_v56 = vld [vmem:[%s887_s2] sm:$0x1] (%p397_p6) }
  0xd9   : > { %v425_v61 = vld [vmem:[%s888_s3] sm:$0x1] (%p397_p6) }
  0xda   : > { %v402_v42 = vld [vmem:[#allocation3] sm:$0x1] (%p397_p6) }
  0xdb   : > { %v403_v44 = vmul.f32 (%p397_p6), 0.5, %v402_v42 }
  0xdc   : > { %v406_v43 = vld [vmem:[#allocation4] sm:$0x1] (%p397_p6) }
  0xdd   : > { %v407_v45 = vmul.f32 0.5, %v406_v43  ;;  %v408_v46 = vmul.f32 %v403_v44, %v403_v44  ;;  %v405_v58 = vadd.f32 %v404_v54, %v403_v44 }
  0xdf   : > { %v409_v47 = vsub.f32 %v407_v45, %v408_v46 }
  0xe1   : > { %v410_v48 = vmax.f32 %v409_v47, 0.0 }
  0xe3   : > { %v412_v49 = vadd.f32 1e-05, %v410_v48 }
  0xe5   : > { %715 = vrsqrt.f32 %v412_v49  ;;  %vm419_vm1 = vweird.f32 %v412_v49 }
  0xeb   : > { %v716_v50 = vpop.eup %715 }
  0xec   : > { %v414_v51 = vmul.f32 %v716_v50, %v412_v49  ;;  %vm420_vm2 = vweird.f32 %v716_v50 }
  0xed   : > { %vm421_vm3 = vmor %vm419_vm1, %vm420_vm2 }
  0xee   : > { %v415_v52 = vmul.f32 %v716_v50, %v414_v51 }
  0xf0   : > { %v416_v53 = vmul.f32 0.5, %v415_v52 }
  0xf2   : > { %v417_v55 = vsub.f32 1.5, %v416_v53 }
  0xf4   : > { %v418_v57 = vmul.f32 %v716_v50, %v417_v55 }
  0xf6   : > { %v422_v59 = vsel %vm421_vm3, %v716_v50, %v418_v57 }
  0xf7   : > { %v423_v60 = vmul.f32 %v422_v59, %v411_v56 }
  0xf9   : > { %424 = vst [vmem:[#allocation3] sm:$0x1] %v423_v60  ;;  %v426_v62 = vmul.f32 %v423_v60, %v405_v58 }
  0xfb   : > { %v427_v63 = vsub.f32 %v425_v61, %v426_v62 }
  0xfd   : > { %428 = vst [vmem:[#allocation4] sm:$0x1] %v427_v63 }
  0xfe PF: > { %p634_p7 = scmp.ne.s32.totalorder %s734_s21, 1 }
 0x100   : > { %431 = sbr.rel (%p634_p7) target bundleno = 427 (0x1ab), region = 60 }
 0x105   : > { %v688_v0 = vld [vmem:[%s889_s4 + $0x38] sm:$0xff]  ;;  %v687_v1 = vld [vmem:[%s889_s4 + $0x30] sm:$0xff]  ;;  %v686_v2 = vld [vmem:[%s889_s4 + $0x28] sm:$0xff] }
 0x106   : > { %512 = vmatpush.bf16.msra.mxu0 %v688_v0  ;;  %v685_v3 = vld [vmem:[%s889_s4 + $0x20] sm:$0xff]  ;;  %v684_v5 = vld [vmem:[%s889_s4 + $0x18] sm:$0xff]  ;;  %v683_v8 = vld [vmem:[%s889_s4 + $0x10] sm:$0xff] }
 0x107   : > { %v717_v4 = vld [vmem:[#allocation3] ss:$0 sm:$0xff]  ;;  %v718_v7 = vld [vmem:[#allocation4] ss:$0 sm:$0xff]  ;;  %v682_v10 = vld [vmem:[%s889_s4 + $0x8] sm:$0xff] }
 0x108   : > { %v436_v6 = vmul.f32 %v717_v4, %v828_v11  ;;  %v681_v13 = vld [vmem:[%s889_s4] sm:$0xff] }
 0x109   : > { %v719_v11 = vld [vmem:[%s890_s5] ss:$0 sm:$0xff] }
 0x10a   : > { %513 = vmatpush.bf16.msra.mxu0 %v687_v1  ;;  %v441_v9 = vadd.f32 %v718_v7, %v436_v6 }
 0x10c   : > { %v442_v12 = vmax.f32 %v441_v9, 0.0 }
 0x10e   : > { %514 = vmatpush.bf16.msra.mxu0 %v686_v2  ;;  %v443_v14 = vpack.c.bf16 %v442_v12, %v442_v12 }
 0x112   : > { %515 = vmatpush.bf16.msra.mxu0 %v685_v3 }
 0x116   : > { %516 = vmatpush.bf16.msra.mxu0 %v684_v5 }
 0x11a   : > { %517 = vmatpush.bf16.msra.mxu0 %v683_v8 }
 0x11e   : > { %518 = vmatpush.bf16.msra.mxu0 %v682_v10 }
 0x122   : > { %519 = vmatpush.bf16.msra.mxu0 %v681_v13 }
 0x125   : > { %520 = vmatmul.bf16.vlgmr.msra.gmra.mxu0 %v443_v14 }
 0x1a2   : > { %v521_v15 = vpop.f32.mrf.mxu0 }
 0x1a3   : > { %v522_v16 = vadd.f32 %v719_v11, %v521_v15 }
 0x1a5   : > { %525 = vst [vmem:[%s891_s6] sm:$0xff] %v522_v16 }
 0x1aa   : > { %v523_v17 = vpop.f32.mrf.mxu0 }
 0x1ab PF: > { %s16_s23 = sadd.s32 1, %s742_s23   ;;  %s892_s21 = smov %s738_s22 }
 0x1ac   : > { %p13_p8 = scmp.ge.s32.totalorder %s16_s23, 4   ;;  %s893_s22 = smov %s895_s24 }
 0x1ae   :  { %15 = sbr.rel (!%p13_p8) target bundleno = 2 (0x2), region = 90 }

// kernel: _lambda_.13
= control target key start
LH: loop header
LB: loop body
LE: loop exit
PB: predicated region body
PF: predicated region fallthrough
CT: control target
= control target key end

     0   :  { %s642_s15 = smov 0   ;;  %s644_s16 = smov 0   ;;  %s723_s0 = inlined_call_operand.vmem [shape: bf16[16,128], index: 0, kind: input, shape index: {}]   ;;  %s724_s1 = inlined_call_operand.vmem [shape: bf16[128,128], index: 1, kind: input, shape index: {}]   ;;  %s725_s2 = inlined_call_operand.vmem [shape: f32[1,128], index: 2, kind: input, shape index: {}]   ;;  %s726_s3 = inlined_call_operand.vmem [shape: f32[1,128], index: 3, kind: input, shape index: {}]   ;;  %s727_s4 = inlined_call_operand.vmem [shape: bf16[16,128], index: 4, kind: output, shape index: {}]  }
   0x1   :  { %s646_s17 = smov 0  }
   0x2 LB: > { %s26_s18 = sadd.s32 1, %s610_s16  ;;  %p501_p0 = scmp.ge.s32.totalorder %s614_s17, 1  ;;  %s614_s17 = sphi %s646_s17, %s14_s17   ;;  %s610_s16 = sphi %s644_s16, %s729_s16   ;;  %s606_s15 = sphi %s642_s15, %s728_s15  }
   0x3   : > { %p28_p1 = scmp.ge.s32.totalorder %s26_s18, 2  ;;  %p177_p2 = scmp.lt.s32.totalorder %s614_s17, 3 }
   0x5   : > { %s731_s18 = smov (%p28_p1, %s26_s18), 0  ;;  %p178_p3 = pnand %p501_p0, %p177_p2 }
   0x6   : > { %p218_p4 = scmp.eq.s32.totalorder (!%p178_p3), %s606_s15, 0 }
   0x7   : > { %181 = sbr.rel (%p178_p3) target bundleno = 281 (0x119), region = 36 }
   0xc   : > { %v555_v0 = vld [vmem:[%s724_s1 + $0x38] sm:$0xff]  ;;  %v554_v1 = vld [vmem:[%s724_s1 + $0x30] sm:$0xff]  ;;  %v553_v2 = vld [vmem:[%s724_s1 + $0x28] sm:$0xff]  ;;  %v616_v12 = vmov (%p218_p4), 0.0  }
   0xd   : > { %294 = vmatpush.bf16.msra.mxu0 %v555_v0  ;;  %v552_v3 = vld [vmem:[%s724_s1 + $0x20] sm:$0xff]  ;;  %v551_v4 = vld [vmem:[%s724_s1 + $0x18] sm:$0xff]  ;;  %v550_v5 = vld [vmem:[%s724_s1 + $0x10] sm:$0xff]  ;;  %334 = vst [vmem:[#allocation3] sm:$0x1] (%p218_p4), %v616_v12 }
   0xe   : > { %v549_v6 = vld [vmem:[%s724_s1 + $0x8] sm:$0xff]  ;;  %v548_v7 = vld [vmem:[%s724_s1] sm:$0xff]  ;;  %335 = vst [vmem:[#allocation4] sm:$0x1] (%p218_p4), %v616_v12 }
   0xf   : > { %v547_v8 = vld [vmem:[%s723_s0] sm:$0xff] }
  0x11   : > { %295 = vmatpush.bf16.msra.mxu0 %v554_v1 }
  0x15   : > { %296 = vmatpush.bf16.msra.mxu0 %v553_v2 }
  0x19   : > { %297 = vmatpush.bf16.msra.mxu0 %v552_v3 }
  0x1d   : > { %298 = vmatpush.bf16.msra.mxu0 %v551_v4 }
  0x21   : > { %299 = vmatpush.bf16.msra.mxu0 %v550_v5 }
  0x25   : > { %300 = vmatpush.bf16.msra.mxu0 %v549_v6 }
  0x29   : > { %301 = vmatpush.bf16.msra.mxu0 %v548_v7 }
  0x2c   : > { %302 = vmatmul.bf16.vlgmr.msra.gmra.mxu0 %v547_v8 }
  0xa9   : > { %v690_v9 = vpop.f32.mrf.mxu0 }
  0xad   : > { %318 = sbr.rel (!%p218_p4) target bundleno = 195 (0xc3), region = 40 }
  0xb1   : > { %v692_v10 = vpop.f32.mrf.mxu0 }
  0xb2   : > { %v325_v11 = vadd.f32 %v692_v10, %v690_v9 }
  0xb4   : > { %v326_v13 = vrot.slane %v325_v11, 4 }
  0xb6   : > { %v327_v14 = vadd.f32 %v326_v13, %v325_v11 }
  0xb8   : > { %v328_v15 = vrot.slane %v327_v14, 2 }
  0xba   : > { %v329_v16 = vadd.f32 %v328_v15, %v327_v14 }
  0xbc   : > { %v330_v17 = vrot.slane %v329_v16, 1 }
  0xbe   : > { %v331_v18 = vadd.f32 %v330_v17, %v329_v16 }
  0xc0   : > { %v332_v19 = vmul.f32 0.0625, %v331_v18 }
  0xc2   : > { %333 = vst [vmem:[#allocation2] sm:$0x1] %v332_v19 }
  0xc3 PF: > { %p539_p5 = scmp.ne.s32.totalorder %s606_s15, 0 }
  0xc5   : > { %338 = sbr.rel (%p539_p5) target bundleno = 224 (0xe0), region = 44 }
  0xca   : > { %v587_v20 = vld [vmem:[#allocation2] ss:$0 sm:$0xff]  ;;  %v351_v36 = vld [vmem:[#allocation3] sm:$0x1]  ;;  %v361_v39 = vld [vmem:[#allocation4] sm:$0x1] }
  0xcb   : > { %v343_v21 = vsub.f32 %v690_v9, %v587_v20  ;;  %v344_v22 = vsub.f32 %v692_v10, %v587_v20 }
  0xcd   : > { %v352_v23 = vadd.f32 %v344_v22, %v343_v21  ;;  %v362_v24 = vmul.f32 %v343_v21, %v343_v21  ;;  %v363_v25 = vmul.f32 %v344_v22, %v344_v22 }
  0xcf   : > { %v353_v26 = vrot.slane %v352_v23, 4  ;;  %v364_v27 = vadd.f32 %v363_v25, %v362_v24 }
  0xd1   : > { %v354_v28 = vadd.f32 %v353_v26, %v352_v23  ;;  %v365_v29 = vrot.slane %v364_v27, 4 }
  0xd3   : > { %v355_v30 = vrot.slane %v354_v28, 2  ;;  %v366_v31 = vadd.f32 %v365_v29, %v364_v27 }
  0xd5   : > { %v356_v32 = vadd.f32 %v355_v30, %v354_v28  ;;  %v367_v33 = vrot.slane %v366_v31, 2 }
  0xd7   : > { %v357_v34 = vrot.slane %v356_v32, 1  ;;  %v368_v35 = vadd.f32 %v367_v33, %v366_v31 }
  0xd9   : > { %v358_v37 = vadd.f32 %v357_v34, %v356_v32  ;;  %v369_v38 = vrot.slane %v368_v35, 1 }
  0xdb   : > { %v359_v40 = vadd.f32 %v358_v37, %v351_v36  ;;  %v370_v41 = vadd.f32 %v369_v38, %v368_v35 }
  0xdd   : > { %360 = vst [vmem:[#allocation3] sm:$0x1] %v359_v40  ;;  %v371_v42 = vadd.f32 %v370_v41, %v361_v39 }
  0xdf   : > { %372 = vst [vmem:[#allocation4] sm:$0x1] %v371_v42 }
  0xe0 PF: > { %p373_p6 = scmp.eq.s32.totalorder %s606_s15, 1 }
  0xe1   : > { %v380_v55 = vld [vmem:[#allocation2] sm:$0x1] (%p373_p6) }
  0xe2   : > { %377 = sbr.rel (!%p373_p6) target bundleno = 264 (0x108), region = 48  ;;  %v387_v57 = vld [vmem:[%s725_s2] sm:$0x1] (%p373_p6) }
  0xe3   : > { %v401_v62 = vld [vmem:[%s726_s3] sm:$0x1] (%p373_p6) }
  0xe4   : > { %v378_v43 = vld [vmem:[#allocation3] sm:$0x1] (%p373_p6) }
  0xe5   : > { %v379_v45 = vmul.f32 (%p373_p6), 0.0625, %v378_v43 }
  0xe6   : > { %v382_v44 = vld [vmem:[#allocation4] sm:$0x1] (%p373_p6) }
  0xe7   : > { %v383_v46 = vmul.f32 0.0625, %v382_v44  ;;  %v384_v47 = vmul.f32 %v379_v45, %v379_v45  ;;  %v381_v59 = vadd.f32 %v380_v55, %v379_v45 }
  0xe9   : > { %v385_v48 = vsub.f32 %v383_v46, %v384_v47 }
  0xeb   : > { %v386_v49 = vmax.f32 %v385_v48, 0.0 }
  0xed   : > { %v388_v50 = vadd.f32 1e-05, %v386_v49 }
  0xef   : > { %588 = vrsqrt.f32 %v388_v50  ;;  %vm395_vm0 = vweird.f32 %v388_v50 }
  0xf5   : > { %v589_v51 = vpop.eup %588 }
  0xf6   : > { %v390_v52 = vmul.f32 %v589_v51, %v388_v50  ;;  %vm396_vm1 = vweird.f32 %v589_v51 }
  0xf7   : > { %vm397_vm2 = vmor %vm395_vm0, %vm396_vm1 }
  0xf8   : > { %v391_v53 = vmul.f32 %v589_v51, %v390_v52 }
  0xfa   : > { %v392_v54 = vmul.f32 0.5, %v391_v53 }
  0xfc   : > { %v393_v56 = vsub.f32 1.5, %v392_v54 }
  0xfe   : > { %v394_v58 = vmul.f32 %v589_v51, %v393_v56 }
 0x100   : > { %v398_v60 = vsel %vm397_vm2, %v589_v51, %v394_v58 }
 0x101   : > { %v399_v61 = vmul.f32 %v398_v60, %v387_v57 }
 0x103   : > { %400 = vst [vmem:[#allocation3] sm:$0x1] %v399_v61  ;;  %v402_v63 = vmul.f32 %v399_v61, %v381_v59 }
 0x105   : > { %v403_v0 = vsub.f32 %v401_v62, %v402_v63 }
 0x107   : > { %404 = vst [vmem:[#allocation4] sm:$0x1] %v403_v0 }
 0x108 PF: > { %p541_p7 = scmp.ne.s32.totalorder %s606_s15, 1 }
 0x10a   : > { %407 = sbr.rel (%p541_p7) target bundleno = 281 (0x119), region = 52 }
 0x10f   : > { %v590_v1 = vld [vmem:[#allocation3] ss:$0 sm:$0xff]  ;;  %v591_v2 = vld [vmem:[#allocation4] ss:$0 sm:$0xff] }
 0x110   : > { %v412_v3 = vmul.f32 %v590_v1, %v690_v9  ;;  %v413_v4 = vmul.f32 %v590_v1, %v692_v10 }
 0x112   : > { %v418_v5 = vadd.f32 %v591_v2, %v412_v3  ;;  %v419_v6 = vadd.f32 %v591_v2, %v413_v4 }
 0x114   : > { %v420_v7 = vmax.f32 %v418_v5, 0.0  ;;  %v421_v8 = vmax.f32 %v419_v6, 0.0 }
 0x116   : > { %v560_v11 = vpack.c.bf16 %v421_v8, %v420_v7 }
 0x118   : > { %561 = vst [vmem:[%s727_s4] sm:$0xff] %v560_v11  }
 0x119 PF: > { %s14_s17 = sadd.s32 1, %s614_s17   ;;  %s728_s15 = smov %s610_s16 }
 0x11a   : > { %p11_p8 = scmp.ge.s32.totalorder %s14_s17, 4   ;;  %s729_s16 = smov %s731_s18 }
 0x11c   :  { %13 = sbr.rel (!%p11_p8) target bundleno = 2 (0x2), region = 82 }

// kernel: _lambda_.15
= control target key start
LH: loop header
LB: loop body
LE: loop exit
PB: predicated region body
PF: predicated region fallthrough
CT: control target
= control target key end

     0   :  { %s823_s21 = smov 0   ;;  %s825_s22 = smov 0   ;;  %s934_s0 = inlined_call_operand.vmem [shape: bf16[16,128], index: 0, kind: input, shape index: {}]   ;;  %s935_s1 = inlined_call_operand.vmem [shape: bf16[128,128], index: 1, kind: input, shape index: {}]   ;;  %s936_s2 = inlined_call_operand.vmem [shape: f32[1,128], index: 2, kind: input, shape index: {}]   ;;  %s937_s3 = inlined_call_operand.vmem [shape: f32[1,128], index: 3, kind: input, shape index: {}]   ;;  %s938_s4 = inlined_call_operand.vmem [shape: bf16[128,128], index: 4, kind: input, shape index: {}]   ;;  %s939_s5 = inlined_call_operand.vmem [shape: f32[1,128], index: 5, kind: input, shape index: {}]   ;;  %s940_s6 = inlined_call_operand.vmem [shape: f32[16,128], index: 6, kind: output, shape index: {}]  }
   0x1   :  { %s827_s23 = smov 0  }
   0x2 LB: > { %s28_s24 = sadd.s32 1, %s781_s22  ;;  %p636_p0 = scmp.ge.s32.totalorder %s785_s23, 1  ;;  %s785_s23 = sphi %s827_s23, %s16_s23   ;;  %s781_s22 = sphi %s825_s22, %s942_s22   ;;  %s777_s21 = sphi %s823_s21, %s941_s21  }
   0x3   : > { %p30_p1 = scmp.ge.s32.totalorder %s28_s24, 2  ;;  %p227_p2 = scmp.lt.s32.totalorder %s785_s23, 3 }
   0x5   : > { %s944_s24 = smov (%p30_p1, %s28_s24), 0  ;;  %p228_p3 = pnand %p636_p0, %p227_p2 }
   0x6   : > { %p272_p4 = scmp.eq.s32.totalorder (!%p228_p3), %s777_s21, 0 }
   0x7   : > { %231 = sbr.rel (%p228_p3) target bundleno = 440 (0x1b8), region = 44 }
   0xc   : > { %v722_v0 = vld [vmem:[%s935_s1 + $0x38] sm:$0xff]  ;;  %v721_v1 = vld [vmem:[%s935_s1 + $0x30] sm:$0xff]  ;;  %v720_v2 = vld [vmem:[%s935_s1 + $0x28] sm:$0xff]  ;;  %v787_v12 = vmov (%p272_p4), 0.0  }
   0xd   : > { %348 = vmatpush.bf16.msra.mxu0 %v722_v0  ;;  %v719_v3 = vld [vmem:[%s935_s1 + $0x20] sm:$0xff]  ;;  %v718_v4 = vld [vmem:[%s935_s1 + $0x18] sm:$0xff]  ;;  %v717_v5 = vld [vmem:[%s935_s1 + $0x10] sm:$0xff]  ;;  %388 = vst [vmem:[#allocation3] sm:$0x1] (%p272_p4), %v787_v12 }
   0xe   : > { %v716_v6 = vld [vmem:[%s935_s1 + $0x8] sm:$0xff]  ;;  %v715_v7 = vld [vmem:[%s935_s1] sm:$0xff]  ;;  %389 = vst [vmem:[#allocation4] sm:$0x1] (%p272_p4), %v787_v12 }
   0xf   : > { %v714_v8 = vld [vmem:[%s934_s0] sm:$0xff] }
  0x11   : > { %349 = vmatpush.bf16.msra.mxu0 %v721_v1 }
  0x15   : > { %350 = vmatpush.bf16.msra.mxu0 %v720_v2 }
  0x19   : > { %351 = vmatpush.bf16.msra.mxu0 %v719_v3 }
  0x1d   : > { %352 = vmatpush.bf16.msra.mxu0 %v718_v4 }
  0x21   : > { %353 = vmatpush.bf16.msra.mxu0 %v717_v5 }
  0x25   : > { %354 = vmatpush.bf16.msra.mxu0 %v716_v6 }
  0x29   : > { %355 = vmatpush.bf16.msra.mxu0 %v715_v7 }
  0x2c   : > { %356 = vmatmul.bf16.vlgmr.msra.gmra.mxu0 %v714_v8 }
  0xa9   : > { %v871_v9 = vpop.f32.mrf.mxu0 }
  0xad   : > { %372 = sbr.rel (!%p272_p4) target bundleno = 195 (0xc3), region = 48 }
  0xb1   : > { %v873_v10 = vpop.f32.mrf.mxu0 }
  0xb2   : > { %v379_v11 = vadd.f32 %v873_v10, %v871_v9 }
  0xb4   : > { %v380_v13 = vrot.slane %v379_v11, 4 }
  0xb6   : > { %v381_v14 = vadd.f32 %v380_v13, %v379_v11 }
  0xb8   : > { %v382_v15 = vrot.slane %v381_v14, 2 }
  0xba   : > { %v383_v16 = vadd.f32 %v382_v15, %v381_v14 }
  0xbc   : > { %v384_v17 = vrot.slane %v383_v16, 1 }
  0xbe   : > { %v385_v18 = vadd.f32 %v384_v17, %v383_v16 }
  0xc0   : > { %v386_v19 = vmul.f32 0.0625, %v385_v18 }
  0xc2   : > { %387 = vst [vmem:[#allocation2] sm:$0x1] %v386_v19 }
  0xc3 PF: > { %p674_p5 = scmp.ne.s32.totalorder %s777_s21, 0 }
  0xc5   : > { %392 = sbr.rel (%p674_p5) target bundleno = 224 (0xe0), region = 52 }
  0xca   : > { %v757_v20 = vld [vmem:[#allocation2] ss:$0 sm:$0xff]  ;;  %v405_v36 = vld [vmem:[#allocation3] sm:$0x1]  ;;  %v415_v39 = vld [vmem:[#allocation4] sm:$0x1] }
  0xcb   : > { %v397_v21 = vsub.f32 %v871_v9, %v757_v20  ;;  %v398_v22 = vsub.f32 %v873_v10, %v757_v20 }
  0xcd   : > { %v406_v23 = vadd.f32 %v398_v22, %v397_v21  ;;  %v416_v24 = vmul.f32 %v397_v21, %v397_v21  ;;  %v417_v25 = vmul.f32 %v398_v22, %v398_v22 }
  0xcf   : > { %v407_v26 = vrot.slane %v406_v23, 4  ;;  %v418_v27 = vadd.f32 %v417_v25, %v416_v24 }
  0xd1   : > { %v408_v28 = vadd.f32 %v407_v26, %v406_v23  ;;  %v419_v29 = vrot.slane %v418_v27, 4 }
  0xd3   : > { %v409_v30 = vrot.slane %v408_v28, 2  ;;  %v420_v31 = vadd.f32 %v419_v29, %v418_v27 }
  0xd5   : > { %v410_v32 = vadd.f32 %v409_v30, %v408_v28  ;;  %v421_v33 = vrot.slane %v420_v31, 2 }
  0xd7   : > { %v411_v34 = vrot.slane %v410_v32, 1  ;;  %v422_v35 = vadd.f32 %v421_v33, %v420_v31 }
  0xd9   : > { %v412_v37 = vadd.f32 %v411_v34, %v410_v32  ;;  %v423_v38 = vrot.slane %v422_v35, 1 }
  0xdb   : > { %v413_v40 = vadd.f32 %v412_v37, %v405_v36  ;;  %v424_v41 = vadd.f32 %v423_v38, %v422_v35 }
  0xdd   : > { %414 = vst [vmem:[#allocation3] sm:$0x1] %v413_v40  ;;  %v425_v42 = vadd.f32 %v424_v41, %v415_v39 }
  0xdf   : > { %426 = vst [vmem:[#allocation4] sm:$0x1] %v425_v42 }
  0xe0 PF: > { %p427_p6 = scmp.eq.s32.totalorder %s777_s21, 1 }
  0xe1   : > { %v434_v55 = vld [vmem:[#allocation2] sm:$0x1] (%p427_p6) }
  0xe2   : > { %431 = sbr.rel (!%p427_p6) target bundleno = 264 (0x108), region = 56  ;;  %v441_v57 = vld [vmem:[%s936_s2] sm:$0x1] (%p427_p6) }
  0xe3   : > { %v455_v62 = vld [vmem:[%s937_s3] sm:$0x1] (%p427_p6) }
  0xe4   : > { %v432_v43 = vld [vmem:[#allocation3] sm:$0x1] (%p427_p6) }
  0xe5   : > { %v433_v45 = vmul.f32 (%p427_p6), 0.0625, %v432_v43 }
  0xe6   : > { %v436_v44 = vld [vmem:[#allocation4] sm:$0x1] (%p427_p6) }
  0xe7   : > { %v437_v46 = vmul.f32 0.0625, %v436_v44  ;;  %v438_v47 = vmul.f32 %v433_v45, %v433_v45  ;;  %v435_v59 = vadd.f32 %v434_v55, %v433_v45 }
  0xe9   : > { %v439_v48 = vsub.f32 %v437_v46, %v438_v47 }
  0xeb   : > { %v440_v49 = vmax.f32 %v439_v48, 0.0 }
  0xed   : > { %v442_v50 = vadd.f32 1e-05, %v440_v49 }
  0xef   : > { %758 = vrsqrt.f32 %v442_v50  ;;  %vm449_vm0 = vweird.f32 %v442_v50 }
  0xf5   : > { %v759_v51 = vpop.eup %758 }
  0xf6   : > { %v444_v52 = vmul.f32 %v759_v51, %v442_v50  ;;  %vm450_vm1 = vweird.f32 %v759_v51 }
  0xf7   : > { %vm451_vm2 = vmor %vm449_vm0, %vm450_vm1 }
  0xf8   : > { %v445_v53 = vmul.f32 %v759_v51, %v444_v52 }
  0xfa   : > { %v446_v54 = vmul.f32 0.5, %v445_v53 }
  0xfc   : > { %v447_v56 = vsub.f32 1.5, %v446_v54 }
  0xfe   : > { %v448_v58 = vmul.f32 %v759_v51, %v447_v56 }
 0x100   : > { %v452_v60 = vsel %vm451_vm2, %v759_v51, %v448_v58 }
 0x101   : > { %v453_v61 = vmul.f32 %v452_v60, %v441_v57 }
 0x103   : > { %454 = vst [vmem:[#allocation3] sm:$0x1] %v453_v61  ;;  %v456_v63 = vmul.f32 %v453_v61, %v435_v59 }
 0x105   : > { %v457_v0 = vsub.f32 %v455_v62, %v456_v63 }
 0x107   : > { %458 = vst [vmem:[#allocation4] sm:$0x1] %v457_v0 }
 0x108 PF: > { %p676_p7 = scmp.ne.s32.totalorder %s777_s21, 1 }
 0x10a   : > { %461 = sbr.rel (%p676_p7) target bundleno = 440 (0x1b8), region = 60 }
 0x10f   : > { %v731_v1 = vld [vmem:[%s938_s4 + $0x38] sm:$0xff]  ;;  %v730_v2 = vld [vmem:[%s938_s4 + $0x30] sm:$0xff]  ;;  %v729_v3 = vld [vmem:[%s938_s4 + $0x28] sm:$0xff] }
 0x110   : > { %545 = vmatpush.bf16.msra.mxu0 %v731_v1  ;;  %v728_v4 = vld [vmem:[%s938_s4 + $0x20] sm:$0xff]  ;;  %v727_v6 = vld [vmem:[%s938_s4 + $0x18] sm:$0xff]  ;;  %v726_v12 = vld [vmem:[%s938_s4 + $0x10] sm:$0xff] }
 0x111   : > { %v760_v5 = vld [vmem:[#allocation3] ss:$0 sm:$0xff]  ;;  %v761_v11 = vld [vmem:[#allocation4] ss:$0 sm:$0xff]  ;;  %v725_v15 = vld [vmem:[%s938_s4 + $0x8] sm:$0xff] }
 0x112   : > { %v466_v7 = vmul.f32 %v760_v5, %v871_v9  ;;  %v467_v8 = vmul.f32 %v760_v5, %v873_v10  ;;  %v724_v9 = vld [vmem:[%s938_s4] sm:$0xff] }
 0x113   : > { %v762_v18 = vld [vmem:[%s939_s5] ss:$0 sm:$0xff] }
 0x114   : > { %546 = vmatpush.bf16.msra.mxu0 %v730_v2  ;;  %v472_v13 = vadd.f32 %v761_v11, %v466_v7  ;;  %v473_v14 = vadd.f32 %v761_v11, %v467_v8 }
 0x116   : > { %v474_v16 = vmax.f32 %v472_v13, 0.0  ;;  %v475_v17 = vmax.f32 %v473_v14, 0.0 }
 0x118   : > { %547 = vmatpush.bf16.msra.mxu0 %v729_v3  ;;  %v476_v10 = vpack.c.bf16 %v475_v17, %v474_v16 }
 0x11c   : > { %548 = vmatpush.bf16.msra.mxu0 %v728_v4 }
 0x120   : > { %549 = vmatpush.bf16.msra.mxu0 %v727_v6 }
 0x124   : > { %550 = vmatpush.bf16.msra.mxu0 %v726_v12 }
 0x128   : > { %551 = vmatpush.bf16.msra.mxu0 %v725_v15 }
 0x12c   : > { %552 = vmatpush.bf16.msra.mxu0 %v724_v9 }
 0x12f   : > { %553 = vmatmul.bf16.vlgmr.msra.gmra.mxu0 %v476_v10 }
 0x1ac   : > { %v554_v19 = vpop.f32.mrf.mxu0 }
 0x1ad   : > { %v555_v20 = vadd.f32 %v762_v18, %v554_v19 }
 0x1af   : > { %559 = vst [vmem:[%s940_s6] sm:$0xff] %v555_v20 }
 0x1b4   : > { %v556_v21 = vpop.f32.mrf.mxu0 }
 0x1b5   : > { %v557_v22 = vadd.f32 %v762_v18, %v556_v21 }
 0x1b7   : > { %560 = vst [vmem:[%s940_s6 + $0x8] sm:$0xff] %v557_v22 }
 0x1b8 PF: > { %s16_s23 = sadd.s32 1, %s785_s23   ;;  %s941_s21 = smov %s781_s22 }
 0x1b9   : > { %p13_p8 = scmp.ge.s32.totalorder %s16_s23, 4   ;;  %s942_s22 = smov %s944_s24 }
 0x1bb   :  { %15 = sbr.rel (!%p13_p8) target bundleno = 2 (0x2), region = 90 }

// kernel: _lambda_.14
= control target key start
LH: loop header
LB: loop body
LE: loop exit
PB: predicated region body
PF: predicated region fallthrough
CT: control target
= control target key end

     0   :  { %s932_s24 = smov 0   ;;  %s934_s25 = smov 0   ;;  %s1081_s0 = inlined_call_operand.vmem [shape: bf16[16,128], index: 0, kind: input, shape index: {}]   ;;  %s1082_s1 = inlined_call_operand.vmem [shape: bf16[128,128], index: 1, kind: input, shape index: {}]   ;;  %s1083_s2 = inlined_call_operand.vmem [shape: f32[1,128], index: 2, kind: input, shape index: {}]   ;;  %s1084_s3 = inlined_call_operand.vmem [shape: f32[1,128], index: 3, kind: input, shape index: {}]   ;;  %s1085_s4 = inlined_call_operand.vmem [shape: f32[16,8], index: 4, kind: input, shape index: {}]   ;;  %s1086_s5 = inlined_call_operand.vmem [shape: bf16[8,128], index: 5, kind: input, shape index: {}]   ;;  %s1087_s6 = inlined_call_operand.vmem [shape: bf16[128,128], index: 6, kind: input, shape index: {}]   ;;  %s1088_s7 = inlined_call_operand.vmem [shape: bf16[16,128], index: 7, kind: output, shape index: {}]  }
   0x1   :  { %s936_s26 = smov 0  }
   0x2 LB: > { %s29_s27 = sadd.s32 1, %s885_s25  ;;  %p734_p0 = scmp.ge.s32.totalorder %s889_s26, 1  ;;  %s889_s26 = sphi %s936_s26, %s17_s26   ;;  %s885_s25 = sphi %s934_s25, %s1090_s25   ;;  %s881_s24 = sphi %s932_s24, %s1089_s24  }
   0x3   : > { %p31_p1 = scmp.ge.s32.totalorder %s29_s27, 2  ;;  %p263_p2 = scmp.lt.s32.totalorder %s889_s26, 3 }
   0x5   : > { %s1092_s27 = smov (%p31_p1, %s29_s27), 0  ;;  %p264_p3 = pnand %p734_p0, %p263_p2 }
   0x6   : > { %p321_p4 = scmp.eq.s32.totalorder (!%p264_p3), %s881_s24, 0 }
   0x7   : > { %267 = sbr.rel (%p264_p3) target bundleno = 456 (0x1c8), region = 48 }
   0xc   : > { %v956_v0 = vld [vmem:[%s1081_s0] sm:$0xf]  ;;  %v961_v1 = vld [vmem:[%s1081_s0] sm:$0xf0]  ;;  %v780_v4 = vld [vmem:[%s1082_s1 + $0x8] sm:$0xf] }
   0xd   : > { %v776_v2 = vld [vmem:[%s1082_s1] sm:$0xf]  ;;  %v815_v3 = vld [vmem:[%s1082_s1] sm:$0xf0]  ;;  %v816_v5 = vld [vmem:[%s1082_s1 + $0x8] sm:$0xf0] }
   0xe   : > { %v784_v6 = vld [vmem:[%s1082_s1 + $0x10] sm:$0xf]  ;;  %v817_v7 = vld [vmem:[%s1082_s1 + $0x10] sm:$0xf0]  ;;  %v788_v8 = vld [vmem:[%s1082_s1 + $0x18] sm:$0xf] }
   0xf   : > { %v818_v9 = vld [vmem:[%s1082_s1 + $0x18] sm:$0xf0]  ;;  %v792_v10 = vld [vmem:[%s1082_s1 + $0x20] sm:$0xf]  ;;  %v819_v11 = vld [vmem:[%s1082_s1 + $0x20] sm:$0xf0] }
  0x10   : > { %v796_v12 = vld [vmem:[%s1082_s1 + $0x28] sm:$0xf]  ;;  %v820_v13 = vld [vmem:[%s1082_s1 + $0x28] sm:$0xf0]  ;;  %v800_v14 = vld [vmem:[%s1082_s1 + $0x30] sm:$0xf] }
  0x11   : > { %v821_v15 = vld [vmem:[%s1082_s1 + $0x30] sm:$0xf0]  ;;  %v804_v16 = vld [vmem:[%s1082_s1 + $0x38] sm:$0xf]  ;;  %v822_v17 = vld [vmem:[%s1082_s1 + $0x38] sm:$0xf0] }
  0x12   : > { %344 = sbr.rel (!%p321_p4) target bundleno = 184 (0xb8), region = 52  ;;  %v830_v18 = vld [vmem:[%s1087_s6 + $0x38] sm:$0xff] (%p321_p4)  ;;  %v829_v19 = vld [vmem:[%s1087_s6 + $0x30] sm:$0xff] (%p321_p4)  ;;  %v828_v20 = vld [vmem:[%s1087_s6 + $0x28] sm:$0xff] (%p321_p4) }
  0x13   : > { %410 = vmatpush.bf16.msra.mxu0 (%p321_p4), %v830_v18  ;;  %v827_v21 = vld [vmem:[%s1087_s6 + $0x20] sm:$0xff] (%p321_p4)  ;;  %v826_v22 = vld [vmem:[%s1087_s6 + $0x18] sm:$0xff] (%p321_p4)  ;;  %v825_v23 = vld [vmem:[%s1087_s6 + $0x10] sm:$0xff] (%p321_p4) }
  0x14   : > { %v824_v24 = vld [vmem:[%s1087_s6 + $0x8] sm:$0xff] (%p321_p4)  ;;  %v823_v25 = vld [vmem:[%s1087_s6] sm:$0xff] (%p321_p4) }
  0x15   : > { %v345_v26 = vld [vmem:[%s1086_s5] sm:$0xf] (%p321_p4) }
  0x17   : > { %411 = vmatpush.bf16.msra.mxu0 %v829_v19 }
  0x1b   : > { %412 = vmatpush.bf16.msra.mxu0 %v828_v20 }
  0x1f   : > { %413 = vmatpush.bf16.msra.mxu0 %v827_v21 }
  0x23   : > { %414 = vmatpush.bf16.msra.mxu0 %v826_v22 }
  0x27   : > { %415 = vmatpush.bf16.msra.mxu0 %v825_v23 }
  0x2b   : > { %416 = vmatpush.bf16.msra.mxu0 %v824_v24 }
  0x2f   : > { %417 = vmatpush.bf16.msra.mxu0 %v823_v25 }
  0x32   : > { %418 = vmatmul.bf16.vlgmr.msra.gmra.mxu0 %v345_v26 }
  0xaf   : > { %v419_v27 = vpop.f32.mrf.mxu0 }
  0xb0   : > { %423 = vst [vmem:[#allocation5] sm:$0xff] %v419_v27 }
  0xb7   : > { %v421_v28 = vpop.f32.mrf.mxu0 }
  0xb8 PF: > { %v805_v29 = vor.u32 %v822_v17, %v804_v16  ;;  %v426_v30 = vld [vmem:[#allocation5] sm:$0xff]  ;;  %v801_v32 = vor.u32 %v821_v15, %v800_v14  ;;  %vm427_vm0 = vcmask 64512   ;;  %v797_v33 = vor.u32 %v820_v13, %v796_v12 }
  0xb9   : > { %v424_v31 = vld [vmem:[%s1085_s4] sm:$0xff]  ;;  %449 = vmatpush.msra.mxu0 %v426_v30  ;;  %v425_v34 = vld [vmem:[%s1085_s4 + $0x8] sm:$0xff]  ;;  %v793_v35 = vor.u32 %v819_v11, %v792_v10  ;;  %v789_v36 = vor.u32 %v818_v9, %v788_v8  ;;  %v785_v37 = vor.u32 %v817_v7, %v784_v6  ;;  %v781_v38 = vor.u32 %v816_v5, %v780_v4 }
  0xba   : > { %511 = vmatpush.bf16.msra.mxu1 %v805_v29  ;;  %768 = vmatmul.msk.f32.vlgmr.msra.gmra.mxu0 %vm427_vm0, %v424_v31  ;;  %v777_v39 = vor.u32 %v815_v3, %v776_v2  ;;  %v773_v40 = vor.u32 %v961_v1, %v956_v0  ;;  %v891_v48 = vmov (%p321_p4), 0.0  }
  0xbb   : > { %551 = vst [vmem:[#allocation3] sm:$0x1] (%p321_p4), %v891_v48 }
  0xbc   : > { %552 = vst [vmem:[#allocation4] sm:$0x1] (%p321_p4), %v891_v48 }
  0xbe   : > { %512 = vmatpush.bf16.msra.mxu1 %v801_v32 }
  0xc2   : > { %513 = vmatpush.bf16.msra.mxu1 %v797_v33  ;;  %769 = vmatmul.msk.f32.gmra.mxu0 %vm427_vm0, %v425_v34 }
  0xc6   : > { %514 = vmatpush.bf16.msra.mxu1 %v793_v35 }
  0xca   : > { %515 = vmatpush.bf16.msra.mxu1 %v789_v36 }
  0xce   : > { %516 = vmatpush.bf16.msra.mxu1 %v785_v37 }
  0xd2   : > { %517 = vmatpush.bf16.msra.mxu1 %v781_v38 }
  0xd6   : > { %518 = vmatpush.bf16.msra.mxu1 %v777_v39 }
  0xd9   : > { %519 = vmatmul.bf16.vlgmr.msra.gmra.mxu1 %v773_v40 }
 0x137   : > { %v451_v41 = vpop.f32.mrf.mxu0 }
 0x13f   : > { %v454_v44 = vpop.f32.mrf.mxu0 }
 0x156   : > { %v520_v42 = vpop.f32.mrf.mxu1 }
 0x157   : > { %v1048_v43 = vadd.f32 %v520_v42, %v451_v41 }
 0x15b   : > { %535 = sbr.rel (!%p321_p4) target bundleno = 370 (0x172), region = 56 }
 0x15e   : > { %v522_v45 = vpop.f32.mrf.mxu1 }
 0x15f   : > { %v1050_v46 = vadd.f32 %v522_v45, %v454_v44 }
 0x161   : > { %v542_v47 = vadd.f32 %v1050_v46, %v1048_v43 }
 0x163   : > { %v543_v49 = vrot.slane %v542_v47, 4 }
 0x165   : > { %v544_v50 = vadd.f32 %v543_v49, %v542_v47 }
 0x167   : > { %v545_v51 = vrot.slane %v544_v50, 2 }
 0x169   : > { %v546_v52 = vadd.f32 %v545_v51, %v544_v50 }
 0x16b   : > { %v547_v53 = vrot.slane %v546_v52, 1 }
 0x16d   : > { %v548_v54 = vadd.f32 %v547_v53, %v546_v52 }
 0x16f   : > { %v549_v55 = vmul.f32 0.0625, %v548_v54 }
 0x171   : > { %550 = vst [vmem:[#allocation2] sm:$0x1] %v549_v55 }
 0x172 PF: > { %p806_p5 = scmp.ne.s32.totalorder %s881_s24, 0 }
 0x174   : > { %555 = sbr.rel (%p806_p5) target bundleno = 399 (0x18f), region = 60 }
 0x179   : > { %v862_v56 = vld [vmem:[#allocation2] ss:$0 sm:$0xff]  ;;  %v568_v8 = vld [vmem:[#allocation3] sm:$0x1]  ;;  %v578_v11 = vld [vmem:[#allocation4] sm:$0x1] }
 0x17a   : > { %v560_v57 = vsub.f32 %v1048_v43, %v862_v56  ;;  %v561_v58 = vsub.f32 %v1050_v46, %v862_v56 }
 0x17c   : > { %v569_v59 = vadd.f32 %v561_v58, %v560_v57  ;;  %v579_v60 = vmul.f32 %v560_v57, %v560_v57  ;;  %v580_v61 = vmul.f32 %v561_v58, %v561_v58 }
 0x17e   : > { %v570_v62 = vrot.slane %v569_v59, 4  ;;  %v581_v63 = vadd.f32 %v580_v61, %v579_v60 }
 0x180   : > { %v571_v0 = vadd.f32 %v570_v62, %v569_v59  ;;  %v582_v1 = vrot.slane %v581_v63, 4 }
 0x182   : > { %v572_v2 = vrot.slane %v571_v0, 2  ;;  %v583_v3 = vadd.f32 %v582_v1, %v581_v63 }
 0x184   : > { %v573_v4 = vadd.f32 %v572_v2, %v571_v0  ;;  %v584_v5 = vrot.slane %v583_v3, 2 }
 0x186   : > { %v574_v6 = vrot.slane %v573_v4, 1  ;;  %v585_v7 = vadd.f32 %v584_v5, %v583_v3 }
 0x188   : > { %v575_v9 = vadd.f32 %v574_v6, %v573_v4  ;;  %v586_v10 = vrot.slane %v585_v7, 1 }
 0x18a   : > { %v576_v12 = vadd.f32 %v575_v9, %v568_v8  ;;  %v587_v13 = vadd.f32 %v586_v10, %v585_v7 }
 0x18c   : > { %577 = vst [vmem:[#allocation3] sm:$0x1] %v576_v12  ;;  %v588_v14 = vadd.f32 %v587_v13, %v578_v11 }
 0x18e   : > { %589 = vst [vmem:[#allocation4] sm:$0x1] %v588_v14 }
 0x18f PF: > { %p590_p6 = scmp.eq.s32.totalorder %s881_s24, 1 }
 0x190   : > { %v597_v27 = vld [vmem:[#allocation2] sm:$0x1] (%p590_p6) }
 0x191   : > { %594 = sbr.rel (!%p590_p6) target bundleno = 439 (0x1b7), region = 64  ;;  %v604_v29 = vld [vmem:[%s1083_s2] sm:$0x1] (%p590_p6) }
 0x192   : > { %v618_v34 = vld [vmem:[%s1084_s3] sm:$0x1] (%p590_p6) }
 0x193   : > { %v595_v15 = vld [vmem:[#allocation3] sm:$0x1] (%p590_p6) }
 0x194   : > { %v596_v17 = vmul.f32 (%p590_p6), 0.0625, %v595_v15 }
 0x195   : > { %v599_v16 = vld [vmem:[#allocation4] sm:$0x1] (%p590_p6) }
 0x196   : > { %v600_v18 = vmul.f32 0.0625, %v599_v16  ;;  %v601_v19 = vmul.f32 %v596_v17, %v596_v17  ;;  %v598_v31 = vadd.f32 %v597_v27, %v596_v17 }
 0x198   : > { %v602_v20 = vsub.f32 %v600_v18, %v601_v19 }
 0x19a   : > { %v603_v21 = vmax.f32 %v602_v20, 0.0 }
 0x19c   : > { %v605_v22 = vadd.f32 1e-05, %v603_v21 }
 0x19e   : > { %863 = vrsqrt.f32 %v605_v22  ;;  %vm612_vm1 = vweird.f32 %v605_v22 }
 0x1a4   : > { %v864_v23 = vpop.eup %863 }
 0x1a5   : > { %v607_v24 = vmul.f32 %v864_v23, %v605_v22  ;;  %vm613_vm2 = vweird.f32 %v864_v23 }
 0x1a6   : > { %vm614_vm3 = vmor %vm612_vm1, %vm613_vm2 }
 0x1a7   : > { %v608_v25 = vmul.f32 %v864_v23, %v607_v24 }
 0x1a9   : > { %v609_v26 = vmul.f32 0.5, %v608_v25 }
 0x1ab   : > { %v610_v28 = vsub.f32 1.5, %v609_v26 }
 0x1ad   : > { %v611_v30 = vmul.f32 %v864_v23, %v610_v28 }
 0x1af   : > { %v615_v32 = vsel %vm614_vm3, %v864_v23, %v611_v30 }
 0x1b0   : > { %v616_v33 = vmul.f32 %v615_v32, %v604_v29 }
 0x1b2   : > { %617 = vst [vmem:[#allocation3] sm:$0x1] %v616_v33  ;;  %v619_v35 = vmul.f32 %v616_v33, %v598_v31 }
 0x1b4   : > { %v620_v36 = vsub.f32 %v618_v34, %v619_v35 }
 0x1b6   : > { %621 = vst [vmem:[#allocation4] sm:$0x1] %v620_v36 }
 0x1b7 PF: > { %p808_p7 = scmp.ne.s32.totalorder %s881_s24, 1 }
 0x1b9   : > { %624 = sbr.rel (%p808_p7) target bundleno = 456 (0x1c8), region = 68 }
 0x1be   : > { %v865_v37 = vld [vmem:[#allocation3] ss:$0 sm:$0xff]  ;;  %v866_v38 = vld [vmem:[#allocation4] ss:$0 sm:$0xff] }
 0x1bf   : > { %v629_v39 = vmul.f32 %v865_v37, %v1048_v43  ;;  %v630_v40 = vmul.f32 %v865_v37, %v1050_v46 }
 0x1c1   : > { %v635_v41 = vadd.f32 %v866_v38, %v629_v39  ;;  %v636_v42 = vadd.f32 %v866_v38, %v630_v40 }
 0x1c3   : > { %v637_v44 = vmax.f32 %v635_v41, 0.0  ;;  %v638_v45 = vmax.f32 %v636_v42, 0.0 }
 0x1c5   : > { %v835_v47 = vpack.c.bf16 %v638_v45, %v637_v44 }
 0x1c7   : > { %836 = vst [vmem:[%s1088_s7] sm:$0xff] %v835_v47  }
 0x1c8 PF: > { %s17_s26 = sadd.s32 1, %s889_s26   ;;  %s1089_s24 = smov %s885_s25 }
 0x1c9   : > { %p14_p8 = scmp.ge.s32.totalorder %s17_s26, 4   ;;  %s1090_s25 = smov %s1092_s27 }
 0x1cb   :  { %16 = sbr.rel (!%p14_p8) target bundleno = 2 (0x2), region = 101 }

</bundles_post_ra>
